<compile_context>
chip_gen: v7x
topology: tpu7x:2x2x1
jax: 0.10.0
libtpu: 0.0.40
codegen_flags: <defaults>
</compile_context>

<pallas_src>
import jax
import jax.numpy as jnp
from jax.experimental import pallas as pl
from jax.experimental.pallas import tpu as pltpu


D_PAD = 128      # every feature width zero-padded to one lane-dense width
W_SLOTS = 8      # conv1..3, folded attention, conv4..7


# ---------------------------------------------------------------------------
# Pallas kernel: full GCN_CN_v4_AE forward for one block-diagonal super-graph
# ---------------------------------------------------------------------------
def gcn_ae_kernel(adj_ref, x_ref, w_ref, b_ref, out_ref):
    # adj_ref: [M, M]        bf16  block-diagonal sym-normalized adjacency (M = G*N)
    # x_ref:   [M, 128]      bf16  node features, zero-padded to 128 lanes
    # w_ref:   [8, 128, 128] bf16  packed zero-padded weights (layer-major, [in,out])
    # b_ref:   [8, 128]      f32   packed zero-padded biases
    # out_ref: [M, 128]      bf16

    def xw(h, li):
        # X @ W on the full (M, 128) row block -> one big-M MXU matmul, f32 accumulation
        return jnp.dot(h.astype(jnp.bfloat16), w_ref[li],
                       preferred_element_type=jnp.float32)

    def gcn_layer(h, li):
        # GCNConv: A_norm @ (H @ W) + b, then ReLU (bias/ReLU kept in f32).
        # TODO(synk): dropout skipped (eval-mode semantics, training=False -> identity)
        hw = xw(h, li).astype(jnp.bfloat16)
        # re-read adj from VMEM here (not hoisted) to keep vreg pressure low
        agg = jnp.dot(adj_ref[...], hw, preferred_element_type=jnp.float32)
        return jnp.maximum(agg + b_ref[li][None, :], 0.0)

    def linear(h, li):
        # plain affine layer (the folded length-1-sequence attention)
        return xw(h, li) + b_ref[li][None, :]

    h = x_ref[...]
    h = gcn_layer(h, 0)          # conv1: F  -> 64
    h = gcn_layer(h, 1)          # conv2: 64 -> 32
    h = gcn_layer(h, 2)          # conv3: 32 -> 32
    h = linear(h, 3)             # attention (out_proj o v_proj folded): 32 -> 32
    h = gcn_layer(h, 4)          # conv4: 32 -> 16 (bottleneck)
    h = gcn_layer(h, 5)          # conv5: 16 -> 32
    h = gcn_layer(h, 6)          # conv6: 32 -> 64
    h = gcn_layer(h, 7)          # conv7: 64 -> F
    out_ref[...] = h.astype(out_ref.dtype)


# ---------------------------------------------------------------------------
# Wrapper
# ---------------------------------------------------------------------------
def gcn_cn_v4_ae_forward(adj_norm, features, w_packed, b_packed, *,
                         graphs_per_step=4):
    """adj_norm: [B,N,N] normalized adjacency; features: [B,N,F]. Returns [B,N,F] f32."""
    B, N, _ = adj_norm.shape
    F = features.shape[-1]
    G = graphs_per_step
    assert B % G == 0, "batch must be a multiple of graphs_per_step"
    S = B // G
    M = G * N
    assert M % 8 == 0, "G*N must satisfy the sublane constraint"

    # Block-diagonal super-graph adjacency per grid step: [S, M, M] (JAX glue, outside kernel).
    adj_r = adj_norm.reshape(S, G, N, N)
    adj_bd = jnp.zeros((S, M, M), adj_norm.dtype)
    for g in range(G):
        adj_bd = adj_bd.at[:, g * N:(g + 1) * N, g * N:(g + 1) * N].set(adj_r[:, g])
    adj_bd = adj_bd.astype(jnp.bfloat16)

    # Node features flattened per step and zero-padded to a lane-dense 128.
    x_flat = features.reshape(S, M, F)
    x_pad = jnp.zeros((S, M, D_PAD), jnp.float32).at[:, :, :F].set(x_flat)
    x_pad = x_pad.astype(jnp.bfloat16)

    out = pl.pallas_call(
        gcn_ae_kernel,
        out_shape=jax.ShapeDtypeStruct((S, M, D_PAD), jnp.bfloat16),
        grid_spec=pltpu.PrefetchScalarGridSpec(
            num_scalar_prefetch=0,
            grid=(S,),
            in_specs=[
                pl.BlockSpec((None, M, M), lambda s: (s, 0, 0)),          # adj (block-diag)
                pl.BlockSpec((None, M, D_PAD), lambda s: (s, 0, 0)),      # features
                pl.BlockSpec((W_SLOTS, D_PAD, D_PAD), lambda s: (0, 0, 0)),  # weights (resident)
                pl.BlockSpec((W_SLOTS, D_PAD), lambda s: (0, 0)),         # biases  (resident)
            ],
            out_specs=pl.BlockSpec((None, M, D_PAD), lambda s: (s, 0, 0)),
        ),
        compiler_params=pltpu.CompilerParams(
            dimension_semantics=("parallel",)),   # shard batch steps across TCs (v7x)
    )(adj_bd, x_pad, w_packed, b_packed)

    # Slice away lane padding and upcast outside the kernel (keeps in-kernel stores lane-dense).
    return out.reshape(B, N, D_PAD)[:, :, :F].astype(jnp.float32)


def gcn_normalize(adj_raw):
    """GCNConv-style sym normalization (plain JAX glue): D^-1/2 (A + I) D^-1/2."""
    n = adj_raw.shape[0]
    a_hat = adj_raw + jnp.eye(n, dtype=adj_raw.dtype)
    deg = jnp.sum(a_hat, axis=1)
    d_inv_sqrt = jnp.where(deg > 0, 1.0 / jnp.sqrt(deg), 0.0)
    return a_hat * d_inv_sqrt[:, None] * d_inv_sqrt[None, :]


def init_packed_params(key, feature_dim):
    """Pack all layer weights/biases into zero-padded VMEM-friendly slabs.

    Slot layout: [conv1, conv2, conv3, attn(folded), conv4, conv5, conv6, conv7].
    The attention slot holds W_v^T @ W_o^T (exact fold of the two affines, valid
    because the sequence length is 1 and there is no nonlinearity between them).
    Biases are zero (torch default init for GCNConv bias / MHA in_proj & out_proj bias);
    for a trained model load b_attn = b_v @ W_o^T + b_o into slot 3.
    """
    f1, f2, f3, bn = 64, 32, 32, 16
    dims = [
        (feature_dim, f1),   # conv1
        (f1, f2),            # conv2
        (f2, f3),            # conv3
        (f3, f3),            # attention (folded v_proj -> out_proj)
        (f3, bn),            # conv4
        (bn, f2),            # conv5
        (f2, f1),            # conv6
        (f1, feature_dim),   # conv7
    ]
    ks = jax.random.split(key, len(dims))
    w_packed = jnp.zeros((W_SLOTS, D_PAD, D_PAD), jnp.float32)
    b_packed = jnp.zeros((W_SLOTS, D_PAD), jnp.float32)
    for i, ((fi, fo), k) in enumerate(zip(dims, ks)):
        limit = (6.0 / (fi + fo)) ** 0.5
        if i == 3:
            # fold the two attention affines: W = W_v^T @ W_o^T (both stored [in, out])
            kv, ko = jax.random.split(k)
            wv = jax.random.uniform(kv, (f3, f3), jnp.float32, -limit, limit)
            wo = jax.random.uniform(ko, (f3, f3), jnp.float32, -limit, limit)
            w = wv @ wo
        else:
            w = jax.random.uniform(k, (fi, fo), jnp.float32, -limit, limit)
        w_packed = w_packed.at[i, :fi, :fo].set(w)
    return w_packed.astype(jnp.bfloat16), b_packed


# ---------------------------------------------------------------------------
# Main
# ---------------------------------------------------------------------------
if __name__ == "__main__":
    B = 8                  # graphs per batch
    N = 64                 # nodes per graph
    FEATURE_DIM = 32       # feature_dim_size (also the autoencoder output width)
    NUM_CLASSES = 4        # unused by the forward (AE returns node features)
    DROPOUT = 0.5          # eval-mode -> identity

    key = jax.random.PRNGKey(0)
    k_adj, k_feat, k_params = jax.random.split(key, 3)

    # Random symmetric binary adjacency per graph (no self loops; normalization adds them).
    a = (jax.random.uniform(k_adj, (B, N, N)) < 0.1).astype(jnp.float32)
    a = jnp.maximum(a, jnp.swapaxes(a, 1, 2)) * (1.0 - jnp.eye(N, dtype=jnp.float32))
    adj_norm = jax.vmap(gcn_normalize)(a)

    features = jax.random.normal(k_feat, (B, N, FEATURE_DIM), jnp.float32)
    w_packed, b_packed = init_packed_params(k_params, FEATURE_DIM)

    # G=4 -> grid=(2,), one parallel step per TC on v7x; set graphs_per_step=B for
    # single-TensorCore v5e/v6e (grid of 1) to drop the ~0.35us/step overhead.
    out = gcn_cn_v4_ae_forward(adj_norm, features, w_packed, b_packed,
                               graphs_per_step=4)
    out = jax.block_until_ready(out)
    assert out.shape == (B, N, FEATURE_DIM)
    assert bool(jnp.all(jnp.isfinite(out)))
    print("KERNEL_OK")
</pallas_src>

<mosaic_0001>
module attributes {stable_mosaic.version = 11 : i64} {
  func.func @gcn_ae_kernel(%arg0: i32, %arg1: memref<1x256x256xbf16, #tpu.memory_space<vmem>>, %arg2: memref<1x256x128xbf16, #tpu.memory_space<vmem>>, %arg3: memref<8x128x128xbf16, #tpu.memory_space<vmem>>, %arg4: memref<8x128xf32, #tpu.memory_space<vmem>>, %arg5: memref<1x256x128xbf16, #tpu.memory_space<vmem>>) attributes {dimension_semantics = [#tpu.dimension_semantics<parallel>], iteration_bounds = array<i64: 2>, scalar_prefetch = 0 : i64, scratch_operands = 0 : i64, tpu.core_type = #tpu.core_type<tc>, window_params = [{transform_indices = @transform_0, window_bounds = array<i64: 1, 256, 256>}, {transform_indices = @transform_1, window_bounds = array<i64: 1, 256, 128>}, {pipeline_mode = #tpu.pipeline_mode<synchronous>, transform_indices = @transform_2, window_bounds = array<i64: 8, 128, 128>}, {pipeline_mode = #tpu.pipeline_mode<synchronous>, transform_indices = @transform_3, window_bounds = array<i64: 8, 128>}, {transform_indices = @transform_4, window_bounds = array<i64: 1, 256, 128>}]} {
    %c0 = arith.constant 0 : index
    %c0_0 = arith.constant 0 : index
    %c0_1 = arith.constant 0 : index
    %0 = vector.load %arg2[%c0, %c0_0, %c0_1] : memref<1x256x128xbf16, #tpu.memory_space<vmem>>, vector<1x256x128xbf16>
    %1 = vector.shape_cast %0 : vector<1x256x128xbf16> to vector<256x128xbf16>
    %c0_2 = arith.constant 0 : index
    %c0_3 = arith.constant 0 : index
    %c0_4 = arith.constant 0 : index
    %2 = vector.load %arg3[%c0_2, %c0_3, %c0_4] : memref<8x128x128xbf16, #tpu.memory_space<vmem>>, vector<1x128x128xbf16>
    %3 = vector.shape_cast %2 : vector<1x128x128xbf16> to vector<128x128xbf16>
    %cst = arith.constant dense<0.000000e+00> : vector<256x128xf32>
    %4 = tpu.matmul %1, %3, %cst {dimension_numbers = #tpu.dot_dimension_numbers<[1], [0], [0], [1], [0, 0, 1, 1], [], []>} : vector<256x128xbf16>, vector<128x128xbf16>, vector<256x128xf32> -> vector<256x128xf32>
    %5 = arith.truncf %4 : vector<256x128xf32> to vector<256x128xbf16>
    %c0_5 = arith.constant 0 : index
    %c0_6 = arith.constant 0 : index
    %c0_7 = arith.constant 0 : index
    %6 = vector.load %arg1[%c0_5, %c0_6, %c0_7] : memref<1x256x256xbf16, #tpu.memory_space<vmem>>, vector<1x256x256xbf16>
    %7 = vector.shape_cast %6 : vector<1x256x256xbf16> to vector<256x256xbf16>
    %cst_8 = arith.constant dense<0.000000e+00> : vector<256x128xf32>
    %8 = tpu.matmul %7, %5, %cst_8 {dimension_numbers = #tpu.dot_dimension_numbers<[1], [0], [0], [1], [0, 0, 1, 1], [], []>} : vector<256x256xbf16>, vector<256x128xbf16>, vector<256x128xf32> -> vector<256x128xf32>
    %c0_9 = arith.constant 0 : index
    %c0_10 = arith.constant 0 : index
    %9 = vector.load %arg4[%c0_9, %c0_10] : memref<8x128xf32, #tpu.memory_space<vmem>>, vector<1x128xf32>
    %10 = vector.shape_cast %9 : vector<1x128xf32> to vector<128xf32>
    %11 = vector.shape_cast %10 : vector<128xf32> to vector<1x128xf32>
    %12 = vector.broadcast %11 : vector<1x128xf32> to vector<256x128xf32>
    %13 = arith.addf %8, %12 : vector<256x128xf32>
    %cst_11 = arith.constant 0.000000e+00 : f32
    %14 = vector.broadcast %cst_11 : f32 to vector<256x128xf32>
    %15 = arith.maximumf %13, %14 : vector<256x128xf32>
    %16 = arith.truncf %15 : vector<256x128xf32> to vector<256x128xbf16>
    %c1 = arith.constant 1 : index
    %c0_12 = arith.constant 0 : index
    %c0_13 = arith.constant 0 : index
    %17 = vector.load %arg3[%c1, %c0_12, %c0_13] : memref<8x128x128xbf16, #tpu.memory_space<vmem>>, vector<1x128x128xbf16>
    %18 = vector.shape_cast %17 : vector<1x128x128xbf16> to vector<128x128xbf16>
    %cst_14 = arith.constant dense<0.000000e+00> : vector<256x128xf32>
    %19 = tpu.matmul %16, %18, %cst_14 {dimension_numbers = #tpu.dot_dimension_numbers<[1], [0], [0], [1], [0, 0, 1, 1], [], []>} : vector<256x128xbf16>, vector<128x128xbf16>, vector<256x128xf32> -> vector<256x128xf32>
    %20 = arith.truncf %19 : vector<256x128xf32> to vector<256x128xbf16>
    %c0_15 = arith.constant 0 : index
    %c0_16 = arith.constant 0 : index
    %c0_17 = arith.constant 0 : index
    %21 = vector.load %arg1[%c0_15, %c0_16, %c0_17] : memref<1x256x256xbf16, #tpu.memory_space<vmem>>, vector<1x256x256xbf16>
    %22 = vector.shape_cast %21 : vector<1x256x256xbf16> to vector<256x256xbf16>
    %cst_18 = arith.constant dense<0.000000e+00> : vector<256x128xf32>
    %23 = tpu.matmul %22, %20, %cst_18 {dimension_numbers = #tpu.dot_dimension_numbers<[1], [0], [0], [1], [0, 0, 1, 1], [], []>} : vector<256x256xbf16>, vector<256x128xbf16>, vector<256x128xf32> -> vector<256x128xf32>
    %c1_19 = arith.constant 1 : index
    %c0_20 = arith.constant 0 : index
    %24 = vector.load %arg4[%c1_19, %c0_20] : memref<8x128xf32, #tpu.memory_space<vmem>>, vector<1x128xf32>
    %25 = vector.shape_cast %24 : vector<1x128xf32> to vector<128xf32>
    %26 = vector.shape_cast %25 : vector<128xf32> to vector<1x128xf32>
    %27 = vector.broadcast %26 : vector<1x128xf32> to vector<256x128xf32>
    %28 = arith.addf %23, %27 : vector<256x128xf32>
    %cst_21 = arith.constant 0.000000e+00 : f32
    %29 = vector.broadcast %cst_21 : f32 to vector<256x128xf32>
    %30 = arith.maximumf %28, %29 : vector<256x128xf32>
    %31 = arith.truncf %30 : vector<256x128xf32> to vector<256x128xbf16>
    %c2 = arith.constant 2 : index
    %c0_22 = arith.constant 0 : index
    %c0_23 = arith.constant 0 : index
    %32 = vector.load %arg3[%c2, %c0_22, %c0_23] : memref<8x128x128xbf16, #tpu.memory_space<vmem>>, vector<1x128x128xbf16>
    %33 = vector.shape_cast %32 : vector<1x128x128xbf16> to vector<128x128xbf16>
    %cst_24 = arith.constant dense<0.000000e+00> : vector<256x128xf32>
    %34 = tpu.matmul %31, %33, %cst_24 {dimension_numbers = #tpu.dot_dimension_numbers<[1], [0], [0], [1], [0, 0, 1, 1], [], []>} : vector<256x128xbf16>, vector<128x128xbf16>, vector<256x128xf32> -> vector<256x128xf32>
    %35 = arith.truncf %34 : vector<256x128xf32> to vector<256x128xbf16>
    %c0_25 = arith.constant 0 : index
    %c0_26 = arith.constant 0 : index
    %c0_27 = arith.constant 0 : index
    %36 = vector.load %arg1[%c0_25, %c0_26, %c0_27] : memref<1x256x256xbf16, #tpu.memory_space<vmem>>, vector<1x256x256xbf16>
    %37 = vector.shape_cast %36 : vector<1x256x256xbf16> to vector<256x256xbf16>
    %cst_28 = arith.constant dense<0.000000e+00> : vector<256x128xf32>
    %38 = tpu.matmul %37, %35, %cst_28 {dimension_numbers = #tpu.dot_dimension_numbers<[1], [0], [0], [1], [0, 0, 1, 1], [], []>} : vector<256x256xbf16>, vector<256x128xbf16>, vector<256x128xf32> -> vector<256x128xf32>
    %c2_29 = arith.constant 2 : index
    %c0_30 = arith.constant 0 : index
    %39 = vector.load %arg4[%c2_29, %c0_30] : memref<8x128xf32, #tpu.memory_space<vmem>>, vector<1x128xf32>
    %40 = vector.shape_cast %39 : vector<1x128xf32> to vector<128xf32>
    %41 = vector.shape_cast %40 : vector<128xf32> to vector<1x128xf32>
    %42 = vector.broadcast %41 : vector<1x128xf32> to vector<256x128xf32>
    %43 = arith.addf %38, %42 : vector<256x128xf32>
    %cst_31 = arith.constant 0.000000e+00 : f32
    %44 = vector.broadcast %cst_31 : f32 to vector<256x128xf32>
    %45 = arith.maximumf %43, %44 : vector<256x128xf32>
    %46 = arith.truncf %45 : vector<256x128xf32> to vector<256x128xbf16>
    %c3 = arith.constant 3 : index
    %c0_32 = arith.constant 0 : index
    %c0_33 = arith.constant 0 : index
    %47 = vector.load %arg3[%c3, %c0_32, %c0_33] : memref<8x128x128xbf16, #tpu.memory_space<vmem>>, vector<1x128x128xbf16>
    %48 = vector.shape_cast %47 : vector<1x128x128xbf16> to vector<128x128xbf16>
    %cst_34 = arith.constant dense<0.000000e+00> : vector<256x128xf32>
    %49 = tpu.matmul %46, %48, %cst_34 {dimension_numbers = #tpu.dot_dimension_numbers<[1], [0], [0], [1], [0, 0, 1, 1], [], []>} : vector<256x128xbf16>, vector<128x128xbf16>, vector<256x128xf32> -> vector<256x128xf32>
    %c3_35 = arith.constant 3 : index
    %c0_36 = arith.constant 0 : index
    %50 = vector.load %arg4[%c3_35, %c0_36] : memref<8x128xf32, #tpu.memory_space<vmem>>, vector<1x128xf32>
    %51 = vector.shape_cast %50 : vector<1x128xf32> to vector<128xf32>
    %52 = vector.shape_cast %51 : vector<128xf32> to vector<1x128xf32>
    %53 = vector.broadcast %52 : vector<1x128xf32> to vector<256x128xf32>
    %54 = arith.addf %49, %53 : vector<256x128xf32>
    %55 = arith.truncf %54 : vector<256x128xf32> to vector<256x128xbf16>
    %c4 = arith.constant 4 : index
    %c0_37 = arith.constant 0 : index
    %c0_38 = arith.constant 0 : index
    %56 = vector.load %arg3[%c4, %c0_37, %c0_38] : memref<8x128x128xbf16, #tpu.memory_space<vmem>>, vector<1x128x128xbf16>
    %57 = vector.shape_cast %56 : vector<1x128x128xbf16> to vector<128x128xbf16>
    %cst_39 = arith.constant dense<0.000000e+00> : vector<256x128xf32>
    %58 = tpu.matmul %55, %57, %cst_39 {dimension_numbers = #tpu.dot_dimension_numbers<[1], [0], [0], [1], [0, 0, 1, 1], [], []>} : vector<256x128xbf16>, vector<128x128xbf16>, vector<256x128xf32> -> vector<256x128xf32>
    %59 = arith.truncf %58 : vector<256x128xf32> to vector<256x128xbf16>
    %c0_40 = arith.constant 0 : index
    %c0_41 = arith.constant 0 : index
    %c0_42 = arith.constant 0 : index
    %60 = vector.load %arg1[%c0_40, %c0_41, %c0_42] : memref<1x256x256xbf16, #tpu.memory_space<vmem>>, vector<1x256x256xbf16>
    %61 = vector.shape_cast %60 : vector<1x256x256xbf16> to vector<256x256xbf16>
    %cst_43 = arith.constant dense<0.000000e+00> : vector<256x128xf32>
    %62 = tpu.matmul %61, %59, %cst_43 {dimension_numbers = #tpu.dot_dimension_numbers<[1], [0], [0], [1], [0, 0, 1, 1], [], []>} : vector<256x256xbf16>, vector<256x128xbf16>, vector<256x128xf32> -> vector<256x128xf32>
    %c4_44 = arith.constant 4 : index
    %c0_45 = arith.constant 0 : index
    %63 = vector.load %arg4[%c4_44, %c0_45] : memref<8x128xf32, #tpu.memory_space<vmem>>, vector<1x128xf32>
    %64 = vector.shape_cast %63 : vector<1x128xf32> to vector<128xf32>
    %65 = vector.shape_cast %64 : vector<128xf32> to vector<1x128xf32>
    %66 = vector.broadcast %65 : vector<1x128xf32> to vector<256x128xf32>
    %67 = arith.addf %62, %66 : vector<256x128xf32>
    %cst_46 = arith.constant 0.000000e+00 : f32
    %68 = vector.broadcast %cst_46 : f32 to vector<256x128xf32>
    %69 = arith.maximumf %67, %68 : vector<256x128xf32>
    %70 = arith.truncf %69 : vector<256x128xf32> to vector<256x128xbf16>
    %c5 = arith.constant 5 : index
    %c0_47 = arith.constant 0 : index
    %c0_48 = arith.constant 0 : index
    %71 = vector.load %arg3[%c5, %c0_47, %c0_48] : memref<8x128x128xbf16, #tpu.memory_space<vmem>>, vector<1x128x128xbf16>
    %72 = vector.shape_cast %71 : vector<1x128x128xbf16> to vector<128x128xbf16>
    %cst_49 = arith.constant dense<0.000000e+00> : vector<256x128xf32>
    %73 = tpu.matmul %70, %72, %cst_49 {dimension_numbers = #tpu.dot_dimension_numbers<[1], [0], [0], [1], [0, 0, 1, 1], [], []>} : vector<256x128xbf16>, vector<128x128xbf16>, vector<256x128xf32> -> vector<256x128xf32>
    %74 = arith.truncf %73 : vector<256x128xf32> to vector<256x128xbf16>
    %c0_50 = arith.constant 0 : index
    %c0_51 = arith.constant 0 : index
    %c0_52 = arith.constant 0 : index
    %75 = vector.load %arg1[%c0_50, %c0_51, %c0_52] : memref<1x256x256xbf16, #tpu.memory_space<vmem>>, vector<1x256x256xbf16>
    %76 = vector.shape_cast %75 : vector<1x256x256xbf16> to vector<256x256xbf16>
    %cst_53 = arith.constant dense<0.000000e+00> : vector<256x128xf32>
    %77 = tpu.matmul %76, %74, %cst_53 {dimension_numbers = #tpu.dot_dimension_numbers<[1], [0], [0], [1], [0, 0, 1, 1], [], []>} : vector<256x256xbf16>, vector<256x128xbf16>, vector<256x128xf32> -> vector<256x128xf32>
    %c5_54 = arith.constant 5 : index
    %c0_55 = arith.constant 0 : index
    %78 = vector.load %arg4[%c5_54, %c0_55] : memref<8x128xf32, #tpu.memory_space<vmem>>, vector<1x128xf32>
    %79 = vector.shape_cast %78 : vector<1x128xf32> to vector<128xf32>
    %80 = vector.shape_cast %79 : vector<128xf32> to vector<1x128xf32>
    %81 = vector.broadcast %80 : vector<1x128xf32> to vector<256x128xf32>
    %82 = arith.addf %77, %81 : vector<256x128xf32>
    %cst_56 = arith.constant 0.000000e+00 : f32
    %83 = vector.broadcast %cst_56 : f32 to vector<256x128xf32>
    %84 = arith.maximumf %82, %83 : vector<256x128xf32>
    %85 = arith.truncf %84 : vector<256x128xf32> to vector<256x128xbf16>
    %c6 = arith.constant 6 : index
    %c0_57 = arith.constant 0 : index
    %c0_58 = arith.constant 0 : index
    %86 = vector.load %arg3[%c6, %c0_57, %c0_58] : memref<8x128x128xbf16, #tpu.memory_space<vmem>>, vector<1x128x128xbf16>
    %87 = vector.shape_cast %86 : vector<1x128x128xbf16> to vector<128x128xbf16>
    %cst_59 = arith.constant dense<0.000000e+00> : vector<256x128xf32>
    %88 = tpu.matmul %85, %87, %cst_59 {dimension_numbers = #tpu.dot_dimension_numbers<[1], [0], [0], [1], [0, 0, 1, 1], [], []>} : vector<256x128xbf16>, vector<128x128xbf16>, vector<256x128xf32> -> vector<256x128xf32>
    %89 = arith.truncf %88 : vector<256x128xf32> to vector<256x128xbf16>
    %c0_60 = arith.constant 0 : index
    %c0_61 = arith.constant 0 : index
    %c0_62 = arith.constant 0 : index
    %90 = vector.load %arg1[%c0_60, %c0_61, %c0_62] : memref<1x256x256xbf16, #tpu.memory_space<vmem>>, vector<1x256x256xbf16>
    %91 = vector.shape_cast %90 : vector<1x256x256xbf16> to vector<256x256xbf16>
    %cst_63 = arith.constant dense<0.000000e+00> : vector<256x128xf32>
    %92 = tpu.matmul %91, %89, %cst_63 {dimension_numbers = #tpu.dot_dimension_numbers<[1], [0], [0], [1], [0, 0, 1, 1], [], []>} : vector<256x256xbf16>, vector<256x128xbf16>, vector<256x128xf32> -> vector<256x128xf32>
    %c6_64 = arith.constant 6 : index
    %c0_65 = arith.constant 0 : index
    %93 = vector.load %arg4[%c6_64, %c0_65] : memref<8x128xf32, #tpu.memory_space<vmem>>, vector<1x128xf32>
    %94 = vector.shape_cast %93 : vector<1x128xf32> to vector<128xf32>
    %95 = vector.shape_cast %94 : vector<128xf32> to vector<1x128xf32>
    %96 = vector.broadcast %95 : vector<1x128xf32> to vector<256x128xf32>
    %97 = arith.addf %92, %96 : vector<256x128xf32>
    %cst_66 = arith.constant 0.000000e+00 : f32
    %98 = vector.broadcast %cst_66 : f32 to vector<256x128xf32>
    %99 = arith.maximumf %97, %98 : vector<256x128xf32>
    %100 = arith.truncf %99 : vector<256x128xf32> to vector<256x128xbf16>
    %c7 = arith.constant 7 : index
    %c0_67 = arith.constant 0 : index
    %c0_68 = arith.constant 0 : index
    %101 = vector.load %arg3[%c7, %c0_67, %c0_68] : memref<8x128x128xbf16, #tpu.memory_space<vmem>>, vector<1x128x128xbf16>
    %102 = vector.shape_cast %101 : vector<1x128x128xbf16> to vector<128x128xbf16>
    %cst_69 = arith.constant dense<0.000000e+00> : vector<256x128xf32>
    %103 = tpu.matmul %100, %102, %cst_69 {dimension_numbers = #tpu.dot_dimension_numbers<[1], [0], [0], [1], [0, 0, 1, 1], [], []>} : vector<256x128xbf16>, vector<128x128xbf16>, vector<256x128xf32> -> vector<256x128xf32>
    %104 = arith.truncf %103 : vector<256x128xf32> to vector<256x128xbf16>
    %c0_70 = arith.constant 0 : index
    %c0_71 = arith.constant 0 : index
    %c0_72 = arith.constant 0 : index
    %105 = vector.load %arg1[%c0_70, %c0_71, %c0_72] : memref<1x256x256xbf16, #tpu.memory_space<vmem>>, vector<1x256x256xbf16>
    %106 = vector.shape_cast %105 : vector<1x256x256xbf16> to vector<256x256xbf16>
    %cst_73 = arith.constant dense<0.000000e+00> : vector<256x128xf32>
    %107 = tpu.matmul %106, %104, %cst_73 {dimension_numbers = #tpu.dot_dimension_numbers<[1], [0], [0], [1], [0, 0, 1, 1], [], []>} : vector<256x256xbf16>, vector<256x128xbf16>, vector<256x128xf32> -> vector<256x128xf32>
    %c7_74 = arith.constant 7 : index
    %c0_75 = arith.constant 0 : index
    %108 = vector.load %arg4[%c7_74, %c0_75] : memref<8x128xf32, #tpu.memory_space<vmem>>, vector<1x128xf32>
    %109 = vector.shape_cast %108 : vector<1x128xf32> to vector<128xf32>
    %110 = vector.shape_cast %109 : vector<128xf32> to vector<1x128xf32>
    %111 = vector.broadcast %110 : vector<1x128xf32> to vector<256x128xf32>
    %112 = arith.addf %107, %111 : vector<256x128xf32>
    %cst_76 = arith.constant 0.000000e+00 : f32
    %113 = vector.broadcast %cst_76 : f32 to vector<256x128xf32>
    %114 = arith.maximumf %112, %113 : vector<256x128xf32>
    %115 = arith.truncf %114 : vector<256x128xf32> to vector<256x128xbf16>
    %c0_77 = arith.constant 0 : index
    %c0_78 = arith.constant 0 : index
    %c0_79 = arith.constant 0 : index
    %116 = vector.load %arg5[%c0_77, %c0_78, %c0_79] : memref<1x256x128xbf16, #tpu.memory_space<vmem>>, vector<1x256x128xbf16>
    %117 = vector.shape_cast %116 : vector<1x256x128xbf16> to vector<256x128xbf16>
    %118 = vector.shape_cast %115 : vector<256x128xbf16> to vector<1x256x128xbf16>
    tpu.vector_store %arg5[%c0_77, %c0_78, %c0_79], %118 {strides = array<i32>} : memref<1x256x128xbf16, #tpu.memory_space<vmem>>, vector<1x256x128xbf16>,
    return
  }
  func.func @transform_0(%arg0: i32) -> (i32, i32, i32) {
    %c0_i32 = arith.constant 0 : i32
    %c0_i32_0 = arith.constant 0 : i32
    %c0_i32_1 = arith.constant 0 : i32
    return %arg0, %c0_i32, %c0_i32_0 : i32, i32, i32
  }
  func.func @transform_1(%arg0: i32) -> (i32, i32, i32) {
    %c0_i32 = arith.constant 0 : i32
    %c0_i32_0 = arith.constant 0 : i32
    %c0_i32_1 = arith.constant 0 : i32
    return %arg0, %c0_i32, %c0_i32_0 : i32, i32, i32
  }
  func.func @transform_2(%arg0: i32) -> (i32, i32, i32) {
    %c0_i32 = arith.constant 0 : i32
    %c0_i32_0 = arith.constant 0 : i32
    %c0_i32_1 = arith.constant 0 : i32
    %c0_i32_2 = arith.constant 0 : i32
    return %c0_i32, %c0_i32_0, %c0_i32_1 : i32, i32, i32
  }
  func.func @transform_3(%arg0: i32) -> (i32, i32) {
    %c0_i32 = arith.constant 0 : i32
    %c0_i32_0 = arith.constant 0 : i32
    %c0_i32_1 = arith.constant 0 : i32
    return %c0_i32, %c0_i32_0 : i32, i32
  }
  func.func @transform_4(%arg0: i32) -> (i32, i32, i32) {
    %c0_i32 = arith.constant 0 : i32
    %c0_i32_0 = arith.constant 0 : i32
    %c0_i32_1 = arith.constant 0 : i32
    return %arg0, %c0_i32, %c0_i32_0 : i32, i32, i32
  }
}

</mosaic_0001>

<bundles_post_ra>
// kernel: tpu_custom_call.1
= control target key start
LH: loop header
LB: loop body
LE: loop exit
PB: predicated region body
PF: predicated region fallthrough
CT: control target
= control target key end

     0   :  { %s7548_s0 = inlined_call_operand.hbm [shape: bf16[2,256,256], index: 0, kind: input, shape index: {}]   ;;  %s7549_s1 = inlined_call_operand.hbm [shape: bf16[2,256,128], index: 1, kind: input, shape index: {}]   ;;  %s7550_s2 = inlined_call_operand.hbm [shape: bf16[8,128,128], index: 2, kind: input, shape index: {}]   ;;  %s7551_s3 = inlined_call_operand.vmem [shape: f32[8,128], index: 3, kind: input, shape index: {}]   ;;  %s7552_s4 = inlined_call_operand.hbm [shape: bf16[2,256,128], index: 4, kind: output, shape index: {}]  }
   0x1   :  { %7558 = sst [smem:[#allocation13_spill]] %s7548_s0 }
   0x2   :  { %7559 = sst [smem:[#allocation14_spill]] %s7550_s2 }
   0x3   :  { %9 = vsyncpa [#allocation3], 0 }
   0x4   :  { %11 = vsyncpa [#allocation3 + $0x1], 0 }
   0x5   :  { %12 = vsyncpa [#allocation6], 0 }
   0x6   :  { %14 = vsyncpa [#allocation6 + $0x1], 0 }
   0x7   :  { %15 = vsyncpa [#allocation4], 0 }
   0x8   :  { %17 = vsyncpa [#allocation4 + $0x1], 0  ;;  %s6445_s15 = smov 0   ;;  %s6447_s16 = smov 0  }
   0x9   :  { %s6449_s17 = smov 0   ;;  %s6451_s18 = smov 0  }
   0xa LB: > { %s6466_s19 = sadd.s32 4294967295, %s6408_s18   ;;  %s4292_s20 = sadd.s32 4294967294, %s6408_s18   ;;  %s6408_s18 = sphi %s6451_s18, %s7580_s18   ;;  %s6404_s17 = sphi %s6449_s17, %s7579_s17   ;;  %s6400_s16 = sphi %s6447_s16, %s7578_s16   ;;  %s6396_s15 = sphi %s6445_s15, %s7577_s15  }
   0xb   : > { %p43_p0 = scmp.ne.s32.totalorder %s6400_s16, %s6396_s15  ;;  %p7553_p1 = scmp.eq.s32.totalorder %s6466_s19, 0 }
   0xc   : > { %p141_p3 = scmp.eq.s32.totalorder %s4292_s20, 1  ;;  %p4293_p5 = scmp.ge.s32.totalorder %s6408_s18, 1 }
   0xd   : > { %p6475_p4 = por %p7553_p1, %p43_p0  ;;  %p148_p7 = scmp.lt.s32.totalorder %s6408_s18, 3 }
   0xe   : > { %p6480_p6 = por %p141_p3, %p43_p0  ;;  %s6410_s24 = smov [#allocation7]  }
   0xf   : > { %s7560_s21 = scalar_select %p6475_p4, 1, 0 }
  0x10   : > { %s7561_s22 = scalar_select %p6480_p6, 1, 0 }
  0x11   : > { %p6485_p8 = pnand %p4293_p5, %p148_p7  ;;  %s160_s25 = sshll.u32 %s6410_s24, 4  ;;  %s6489_s25 = int_to_ptr.vmem [resolvable:$true] %s160_s25 }
  0x12   : > { %s6501_s27 = sadd.s32 1, %s6408_s18   ;;  %s30_s28 = sadd.s32 1, %s6404_s17 }
  0x13   : > { %s7562_s23 = scalar_select %p6485_p8, 1, 0 }
  0x14   : > { %p5964_p9 = pneg %p6485_p8  ;;  %s27_s29 = ssub.s32 %s6408_s18, %s6501_s27 }
  0x15   : > { %s7564_s2 = sld [smem:[#allocation14_spill]] }
  0x16   : > { %p6496_p11 = pnand %p5964_p9, %p7553_p1 }
  0x18   : > { %p6248_p13 = pneg %p6496_p11 }
  0x1b   : > { %s6246_s6 = scalar_lea.hbm %s7564_s2, 8192 }
  0x1c   : > { %p6247_p12 = scmp.ne.s32.totalorder %s7564_s2, %s6246_s6  ;;  %p6253_p5 = scmp.lt.u32.totalorder %s6246_s6, %s7564_s2 }
  0x1e   : > { %p6249_p0 = pnand %p6248_p13, %p6247_p12 }
  0x20   : > { %p6250_p3 = pneg %p6249_p0 }
  0x22   : > { %p6255_p7 = pnand %p6253_p5, %p6250_p3 }
  0x24   : > { %6258 = shalt.err (!%p6255_p7)
}
  0x25   : > { %s6259_s11 = scalar_lea.vmem %s6489_s25, 8192  ;;  %p6267_p2 = scmp.lt.s32.totalorder %s6489_s25, %s6489_s25 }
  0x26   : > { %p6260_p9 = scmp.ne.s32.totalorder %s6489_s25, %s6259_s11  ;;  %p6268_p6 = scmp.lt.s32.totalorder %s6259_s11, %s6259_s11 }
  0x28   : > { %p6262_p10 = pnand %p6260_p9, %p6248_p13  ;;  %p6269_p4 = por %p6268_p6, %p6267_p2 }
  0x2a   : > { %p6263_p1 = pneg %p6262_p10 }
  0x2c   : > { %p6270_p8 = pnand %p6269_p4, %p6263_p1 }
  0x2e   : > { %6273 = shalt.err (!%p6270_p8)
}
  0x2f   : > { %s7556_s12 = smov 64   ;;  %s7557_s13 = smov 4  }
  0x30   : > { %5967 = dma.hbm_to_vmem [thread:$0]  (!%p6496_p11), %s7564_s2, 8192, %s6489_s25, [#allocation6], %s7556_s12, %s7556_s12, %s7557_s13  }
  0x31   : > { %p28_p1 = scmp.eq.s32.totalorder %s27_s29, 0  ;;  %p37_p2 = scmp.ne.s32.totalorder %s6404_s17, %s6400_s16 }
  0x32   : > { %p38_p4 = scmp.eq.s32.totalorder %s6408_s18, 0  ;;  %p5980_p6 = scmp.lt.s32.totalorder %s6408_s18, 2 }
  0x33   : > { %s6535_s24 = scalar_select %p28_p1, %s6404_s17, %s30_s28  }
  0x34   : > { %p39_p8 = por %p38_p4, %p37_p2  ;;  %p7565_p10 = scmp.eq.s32.totalorder %s6466_s19, 1 }
  0x35   : > { %s6544_s26 = sand.u32 1, %s6404_s17   ;;  %s4464_s5 = sshll.u32 %s6408_s18, 12 }
  0x36   : > { %p6539_p12 = por %p7565_p10, %p37_p2  ;;  %s4296_s6 = sshll.u32 %s6544_s26, 8 }
  0x37   : > { %s7567_s0 = sld [smem:[#allocation13_spill]]  ;;  %s181_s28 = scalar_lea.vmem [#allocation2], %s4296_s6 }
  0x38   : > { %s188_s8 = sshll.u32 %s181_s28, 4  ;;  %p6553_p11 = pnand %p5980_p6, %p39_p8  ;;  %s6557_s8 = int_to_ptr.vmem [resolvable:$true] %s188_s8 }
  0x39   : > { %s178_s10 = scalar_lea.sflag [#allocation3], %s6544_s26 }
  0x3a   : > { %p6276_p0 = pneg %p6553_p11 }
  0x3d   : > { %s6551_s29 = scalar_lea.hbm %s7567_s0, %s4464_s5  ;;  %s6279_s5 = scalar_lea.hbm %s7567_s0, 8192 }
  0x3e   : > { %s6274_s11 = scalar_lea.hbm %s6551_s29, 4096  ;;  %p6280_p7 = scmp.lt.u32.totalorder %s6551_s29, %s7567_s0 }
  0x3f   : > { %p6275_p13 = scmp.ne.s32.totalorder %s6551_s29, %s6274_s11  ;;  %p6281_p9 = scmp.lt.u32.totalorder %s6279_s5, %s6274_s11 }
  0x40   : > { %p6283_p2 = scmp.lt.u32.totalorder %s6274_s11, %s6551_s29 }
  0x41   : > { %p6277_p3 = pnand %p6276_p0, %p6275_p13  ;;  %p6282_p1 = por %p6281_p9, %p6280_p7 }
  0x43   : > { %p6278_p5 = pneg %p6277_p3  ;;  %p6284_p4 = por %p6283_p2, %p6282_p1 }
  0x45   : > { %p6285_p6 = pnand %p6284_p4, %p6278_p5 }
  0x47   : > { %6288 = shalt.err (!%p6285_p6)
}
  0x48   : > { %s6289_s25 = scalar_lea.vmem %s6557_s8, 4096  ;;  %s6413_s28 = smov [#allocation2]  }
  0x49   : > { %p6290_p8 = scmp.ne.s32.totalorder %s6557_s8, %s6289_s25  ;;  %s6294_s14 = sshll.u32 %s6413_s28, 4  ;;  %s6295_s14 = int_to_ptr.vmem [resolvable:$false] %s6294_s14 }
  0x4a   : > { %s6296_s20 = scalar_lea.vmem %s6295_s14, 8192  ;;  %p6297_p3 = scmp.lt.s32.totalorder %s6557_s8, %s6295_s14 }
  0x4b   : > { %p6292_p10 = pnand %p6290_p8, %p6276_p0  ;;  %p6298_p7 = scmp.lt.s32.totalorder %s6296_s20, %s6289_s25 }
  0x4d   : > { %p6293_p13 = pneg %p6292_p10  ;;  %p6299_p9 = por %p6298_p7, %p6297_p3 }
  0x4f   : > { %p6300_p1 = pnand %p6299_p9, %p6293_p13 }
  0x51   : > { %6303 = shalt.err (!%p6300_p1)
}
  0x52   : > { %s6414_s11 = smov 128   ;;  %s6415_s5 = smov 8  }
  0x53   : > { %5971 = dma.hbm_to_vmem [thread:$0]  (!%p6553_p11), %s6551_s29, 4096, %s6557_s8, %s178_s10, %s6414_s11, %s6414_s11, %s6415_s5  }
  0x54   : > { %s198_s6 = sand.u32 1, %s6408_s18   ;;  %s4299_s7 = sshll.u32 %s6544_s26, 7 }
  0x55   : > { %s4465_s28 = sshll.u32 %s6408_s18, 11  ;;  %s202_s25 = scalar_lea.vmem [#allocation5], %s4299_s7 }
  0x56   : > { %s209_s14 = sshll.u32 %s202_s25, 4  ;;  %s6593_s13 = scalar_lea.hbm %s7549_s1, %s4465_s28  ;;  %s6595_s14 = int_to_ptr.vmem [resolvable:$true] %s209_s14 }
  0x57   : > { %s6597_s0 = scalar_lea.sflag [#allocation6], %s198_s6  ;;  %s6304_s2 = scalar_lea.hbm %s6593_s13, 2048 }
  0x58   : > { %p6305_p5 = scmp.ne.s32.totalorder %s6593_s13, %s6304_s2  ;;  %s6309_s12 = scalar_lea.hbm %s7549_s1, 4096 }
  0x59   : > { %p6310_p6 = scmp.lt.u32.totalorder %s6593_s13, %s7549_s1  ;;  %p6311_p8 = scmp.lt.u32.totalorder %s6309_s12, %s6304_s2 }
  0x5a   : > { %p6307_p2 = pnand %p6305_p5, %p6276_p0  ;;  %p6313_p13 = scmp.lt.u32.totalorder %s6304_s2, %s6593_s13 }
  0x5b   : > { %p6312_p10 = por %p6311_p8, %p6310_p6 }
  0x5c   : > { %p6308_p4 = pneg %p6307_p2 }
  0x5d   : > { %p6314_p3 = por %p6313_p13, %p6312_p10 }
  0x5f   : > { %p6315_p7 = pnand %p6314_p3, %p6308_p4 }
  0x61   : > { %6318 = shalt.err (!%p6315_p7)
}
  0x62   : > { %s6319_s11 = scalar_lea.vmem %s6595_s14, 2048  ;;  %s6416_s5 = smov [#allocation5]  }
  0x63   : > { %p6320_p9 = scmp.ne.s32.totalorder %s6595_s14, %s6319_s11  ;;  %s6324_s6 = sshll.u32 %s6416_s5, 4  ;;  %s6325_s6 = int_to_ptr.vmem [resolvable:$false] %s6324_s6 }
  0x64   : > { %s6326_s7 = scalar_lea.vmem %s6325_s6, 4096  ;;  %p6327_p2 = scmp.lt.s32.totalorder %s6595_s14, %s6325_s6 }
  0x65   : > { %p6322_p1 = pnand %p6320_p9, %p6276_p0  ;;  %p6328_p6 = scmp.lt.s32.totalorder %s6326_s7, %s6319_s11 }
  0x67   : > { %p6323_p5 = pneg %p6322_p1  ;;  %p6329_p8 = por %p6328_p6, %p6327_p2 }
  0x69   : > { %p6330_p10 = pnand %p6329_p8, %p6323_p5 }
  0x6b   : > { %6333 = shalt.err (!%p6330_p10)
}
  0x6c   : > { %s7569_s2 = smov 4   ;;  %s7570_s28 = smov 64  }
  0x6d   : > { %5974 = dma.hbm_to_vmem [thread:$0]  (!%p6553_p11), %s6593_s13, 2048, %s6595_s14, %s6597_s0, %s7570_s28, %s7570_s28, %s7569_s2  }
  0x6e   : > { %p7571_p0 = scmp.ne.s32.totalorder %s7562_s23, 0 }
  0x6f   : > { %s6629_s25 = sand.u32 (!%p7571_p0), 1, %s6400_s16   ;;  %p7572_p4 = scmp.ne.s32.totalorder (!%p7571_p0), %s7560_s21, 0 }
  0x70   : > { %221 = sbr.rel (%p7571_p0) target bundleno = 4426 (0x114a), region = 36  ;;  %s4303_s20 = sshll.u32 (!%p7571_p0), %s6629_s25, 8 }
  0x71   : > { %s224_s26 = scalar_lea.sflag (!%p7571_p0), [#allocation3], %s6629_s25  ;;  %s6633_s29 = scalar_lea.vmem (!%p7571_p0), [#allocation2], %s4303_s20 }
  0x77   : > { %6379 = dma.done.wait (%p7572_p4), %s224_s26, 4096  }
  0x78   : > { %6381 = vsyncadd (%p7572_p4), %s224_s26, 4294963200  ;;  %s232_s0 = sand.u32 1, %s6466_s19   ;;  %s4304_s23 = sshll.u32 %s6629_s25, 7 }
  0x79   : > { %s233_s13 = scalar_lea.sflag [#allocation6], %s232_s0  ;;  %s6643_s9 = scalar_lea.vmem [#allocation5], %s4304_s23 }
  0x7a   : > { %6383 = dma.done.wait (%p7572_p4), %s233_s13, 2048  }
  0x7b   : > { %6385 = vsyncadd (%p7572_p4), %s233_s13, 4294965248  ;;  %p7573_p11 = scmp.eq.s32.totalorder %s6466_s19, 0 }
  0x7d   : > { %6387 = dma.done.wait (%p7573_p11), [#allocation6], 8192   ;;  %p7574_p13 = pmov %p7573_p11 }
  0x7e   : > { %v6022_v0 = vld [vmem:[#allocation7] sm:$0xff]   ;;  %v6023_v1 = vld [vmem:[#allocation7 + $0x8] sm:$0xff]   ;;  %v6024_v2 = vld [vmem:[#allocation7 + $0x10] sm:$0xff]   ;;  %s4174_s10 = scalar_lea.sflag [#allocation4], %s6629_s25 }
  0x7f   : > { %6389 = vsyncadd (%p7574_p13), [#allocation6], 4294959104  ;;  %5570 = vmatprep.subr.bf16.mxu1 %v6022_v0  ;;  %v6025_v3 = vld [vmem:[#allocation7 + $0x18] sm:$0xff]   ;;  %v6030_v4 = vld [vmem:[%s6643_s9] sm:$0xff]  }
  0x80   : > { %5571 = vmatpush3.bf16.msra.mxu1 %v6022_v0  ;;  %5586 = vmatprep.mubr.bf16.mxu1 %v6030_v4  ;;  %v6026_v5 = vld [vmem:[#allocation7 + $0x20] sm:$0xff]   ;;  %v6027_v6 = vld [vmem:[#allocation7 + $0x28] sm:$0xff]   ;;  %v6028_v7 = vld [vmem:[#allocation7 + $0x30] sm:$0xff]  }
  0x81   : > { %5572 = vmatprep.subr.bf16.mxu1 %v6023_v1  ;;  %v6029_v8 = vld [vmem:[#allocation7 + $0x38] sm:$0xff]   ;;  %v6031_v9 = vld [vmem:[%s6643_s9 + $0x8] sm:$0xff]   ;;  %v6032_v10 = vld [vmem:[%s6643_s9 + $0x10] sm:$0xff]  }
  0x82   : > { %v6033_v11 = vld [vmem:[%s6643_s9 + $0x18] sm:$0xff]   ;;  %v6034_v12 = vld [vmem:[%s6643_s9 + $0x20] sm:$0xff]   ;;  %v6035_v13 = vld [vmem:[%s6643_s9 + $0x28] sm:$0xff]  }
  0x83   : > { %v6036_v14 = vld [vmem:[%s6643_s9 + $0x30] sm:$0xff]   ;;  %v6037_v15 = vld [vmem:[%s6643_s9 + $0x38] sm:$0xff]   ;;  %v6038_v16 = vld [vmem:[%s6643_s9 + $0x40] sm:$0xff]  }
  0x84   : > { %5573 = vmatpush3.bf16.msra.mxu1 %v6023_v1  ;;  %v6039_v17 = vld [vmem:[%s6643_s9 + $0x48] sm:$0xff]   ;;  %v6040_v18 = vld [vmem:[%s6643_s9 + $0x50] sm:$0xff]   ;;  %v6041_v19 = vld [vmem:[%s6643_s9 + $0x58] sm:$0xff]  }
  0x85   : > { %5574 = vmatprep.subr.bf16.mxu1 %v6024_v2  ;;  %v6042_v20 = vld [vmem:[%s6643_s9 + $0x60] sm:$0xff]   ;;  %v6043_v21 = vld [vmem:[%s6643_s9 + $0x68] sm:$0xff]   ;;  %v6044_v22 = vld [vmem:[%s6643_s9 + $0x70] sm:$0xff]  }
  0x86   : > { %v6045_v23 = vld [vmem:[%s6643_s9 + $0x78] sm:$0xff]   ;;  %v6670_v24 = vld [vmem:[%s6633_s29 + $0x4] ss:$8 sps:$4 sm:$0xff]  }
  0x88   : > { %5575 = vmatpush3.bf16.msra.mxu1 %v6024_v2 }
  0x89   : > { %5576 = vmatprep.subr.bf16.mxu1 %v6025_v3 }
  0x8c   : > { %5577 = vmatpush3.bf16.msra.mxu1 %v6025_v3 }
  0x8d   : > { %5578 = vmatprep.subr.bf16.mxu1 %v6026_v5 }
  0x90   : > { %5579 = vmatpush3.bf16.msra.mxu1 %v6026_v5 }
  0x91   : > { %5580 = vmatprep.subr.bf16.mxu1 %v6027_v6 }
  0x94   : > { %5581 = vmatpush3.bf16.msra.mxu1 %v6027_v6 }
  0x95   : > { %5582 = vmatprep.subr.bf16.mxu1 %v6028_v7 }
  0x98   : > { %5583 = vmatpush3.bf16.msra.mxu1 %v6028_v7 }
  0x99   : > { %5584 = vmatprep.subr.bf16.mxu1 %v6029_v8 }
  0x9c   : > { %5585 = vmatpush3.bf16.msra.mxu1 %v6029_v8 }
  0x9f   : > { %5587 = vmatmul.mubr.bf16.vlgmr.msra.gmra.mrb[0].mxu1 %v6031_v9  ;;  %v6094_v9 = vld [vmem:[#allocation7 + $0x40] sm:$0xff]  }
  0xa0   : > { %5590 = vmatprep.mubr.bf16.mxu1 %v6032_v10  ;;  %v6095_v10 = vld [vmem:[#allocation7 + $0x48] sm:$0xff]   ;;  %5618 = vmatprep.subr.bf16.mxu0 %v6094_v9 }
  0xa1   : > { %5619 = vmatpush3.bf16.msra.mxu0 %v6094_v9 }
  0xa2   : > { %5620 = vmatprep.subr.bf16.mxu0 %v6095_v10 }
  0xa5   : > { %5621 = vmatpush3.bf16.msra.mxu0 %v6095_v10 }
  0xa7   : > { %5591 = vmatmul.mubr.bf16.gmra.mrb[4].mxu1 %v6033_v11  ;;  %v6674_v11 = vld [vmem:[%s6633_s29] ss:$8 sps:$4 sm:$0xff]  }
  0xa8   : > { %5594 = vmatprep.mubr.bf16.mxu1 %v6034_v12  ;;  %v6096_v12 = vld [vmem:[#allocation7 + $0x50] sm:$0xff]  }
  0xa9   : > { %5622 = vmatprep.subr.bf16.mxu0 %v6096_v12 }
  0xaa   : > { %5623 = vmatpush3.bf16.msra.mxu0 %v6096_v12 }
  0xaf   : > { %5595 = vmatmul.mubr.bf16.gmra.mrb[8].mxu1 %v6035_v13  ;;  %v6677_v13 = vld [vmem:[%s6633_s29 + $0x14] ss:$8 sps:$4 sm:$0xff]  }
  0xb0   : > { %5598 = vmatprep.mubr.bf16.mxu1 %v6036_v14  ;;  %v6682_v14 = vld [vmem:[%s6633_s29 + $0x10] ss:$8 sps:$4 sm:$0xff]  }
  0xb7   : > { %5599 = vmatmul.mubr.bf16.gmra.mrb[12].mxu1 %v6037_v15  ;;  %v6685_v15 = vld [vmem:[%s6633_s29 + $0x24] ss:$8 sps:$4 sm:$0xff]  }
  0xb8   : > { %5602 = vmatprep.mubr.bf16.mxu1 %v6038_v16  ;;  %v6690_v16 = vld [vmem:[%s6633_s29 + $0x20] ss:$8 sps:$4 sm:$0xff]  }
  0xbf   : > { %5603 = vmatmul.mubr.bf16.gmra.mrb[16].mxu1 %v6039_v17  ;;  %v6693_v17 = vld [vmem:[%s6633_s29 + $0x34] ss:$8 sps:$4 sm:$0xff]  }
  0xc0   : > { %5606 = vmatprep.mubr.bf16.mxu1 %v6040_v18  ;;  %v6698_v18 = vld [vmem:[%s6633_s29 + $0x30] ss:$8 sps:$4 sm:$0xff]  }
  0xc7   : > { %5607 = vmatmul.mubr.bf16.gmra.mrb[20].mxu1 %v6041_v19  ;;  %v6701_v19 = vld [vmem:[%s6633_s29 + $0x44] ss:$8 sps:$4 sm:$0xff]  }
  0xc8   : > { %5610 = vmatprep.mubr.bf16.mxu1 %v6042_v20  ;;  %v6706_v20 = vld [vmem:[%s6633_s29 + $0x40] ss:$8 sps:$4 sm:$0xff]  }
  0xcf   : > { %5611 = vmatmul.mubr.bf16.gmra.mrb[24].mxu1 %v6043_v21  ;;  %v6709_v21 = vld [vmem:[%s6633_s29 + $0x54] ss:$8 sps:$4 sm:$0xff]  }
  0xd0   : > { %5614 = vmatprep.mubr.bf16.mxu1 %v6044_v22  ;;  %v6714_v22 = vld [vmem:[%s6633_s29 + $0x50] ss:$8 sps:$4 sm:$0xff]  }
  0xd7   : > { %5615 = vmatmul.mubr.bf16.gmra.mrb[28].mxu1 %v6045_v23  ;;  %v6717_v23 = vld [vmem:[%s6633_s29 + $0x64] ss:$8 sps:$4 sm:$0xff]  }
  0xd8   : > { %869 = vmatprep.mubr.bf16.mxu1 %v6670_v24 }
 0x172   : > { %v5588_v25 = vpop.f32.mrb[0].mxu1 }
 0x173   : > { %v497_v26 = vpop.f32.mrb[1].mxu1 }
 0x174   : > { %v5589_v27 = vpop.f32.mrb[2].mxu1 }
 0x175   : > { %v625_v28 = vpack.c.bf16 %v5589_v27, %v5588_v25  ;;  %v500_v29 = vpop.f32.mrb[3].mxu1  ;;  %v6722_v25 = vld [vmem:[%s6633_s29 + $0x60] ss:$8 sps:$4 sm:$0xff]   ;;  %v6730_v27 = vld [vmem:[%s6633_s29 + $0x70] ss:$8 sps:$4 sm:$0xff]  }
 0x176   : > { %v624_v30 = vpack.c.bf16 %v500_v29, %v497_v26  ;;  %v6725_v26 = vld [vmem:[%s6633_s29 + $0x74] ss:$8 sps:$4 sm:$0xff]   ;;  %v6738_v29 = vld [vmem:[%s6633_s29 + $0x80] ss:$8 sps:$4 sm:$0xff]  }
 0x17a   : > { %v5592_v31 = vpop.f32.mrb[4].mxu1 }
 0x17b   : > { %v513_v32 = vpop.f32.mrb[5].mxu1 }
 0x17c   : > { %v5593_v33 = vpop.f32.mrb[6].mxu1 }
 0x17d   : > { %v627_v34 = vpack.c.bf16 %v5593_v33, %v5592_v31  ;;  %v516_v35 = vpop.f32.mrb[7].mxu1  ;;  %v6746_v31 = vld [vmem:[%s6633_s29 + $0x90] ss:$8 sps:$4 sm:$0xff]   ;;  %v6754_v33 = vld [vmem:[%s6633_s29 + $0xa0] ss:$8 sps:$4 sm:$0xff]  }
 0x17e   : > { %v626_v36 = vpack.c.bf16 %v516_v35, %v513_v32  ;;  %v6749_v32 = vld [vmem:[%s6633_s29 + $0xa4] ss:$8 sps:$4 sm:$0xff]   ;;  %v6097_v35 = vld [vmem:[#allocation7 + $0x58] sm:$0xff]  }
 0x17f   : > { %5624 = vmatprep.subr.bf16.mxu0 %v6097_v35 }
 0x180   : > { %5625 = vmatpush3.bf16.msra.mxu0 %v6097_v35 }
 0x182   : > { %v5596_v37 = vpop.f32.mrb[8].mxu1 }
 0x183   : > { %v529_v38 = vpop.f32.mrb[9].mxu1 }
 0x184   : > { %v5597_v39 = vpop.f32.mrb[10].mxu1 }
 0x185   : > { %v629_v40 = vpack.c.bf16 %v5597_v39, %v5596_v37  ;;  %v532_v41 = vpop.f32.mrb[11].mxu1  ;;  %v6765_v37 = vld [vmem:[%s6633_s29 + $0xc4] ss:$8 sps:$4 sm:$0xff]  }
 0x186   : > { %v628_v42 = vpack.c.bf16 %v532_v41, %v529_v38  ;;  %v6098_v38 = vld [vmem:[#allocation7 + $0x60] sm:$0xff]   ;;  %v6099_v39 = vld [vmem:[#allocation7 + $0x68] sm:$0xff]   ;;  %v6773_v41 = vld [vmem:[%s6633_s29 + $0xd4] ss:$8 sps:$4 sm:$0xff]  }
 0x187   : > { %5626 = vmatprep.subr.bf16.mxu0 %v6098_v38 }
 0x188   : > { %5627 = vmatpush3.bf16.msra.mxu0 %v6098_v38 }
 0x189   : > { %5628 = vmatprep.subr.bf16.mxu0 %v6099_v39 }
 0x18a   : > { %v5600_v43 = vpop.f32.mrb[12].mxu1 }
 0x18b   : > { %v545_v44 = vpop.f32.mrb[13].mxu1 }
 0x18c   : > { %v5601_v45 = vpop.f32.mrb[14].mxu1  ;;  %5629 = vmatpush3.bf16.msra.mxu0 %v6099_v39 }
 0x18d   : > { %v631_v46 = vpack.c.bf16 %v5601_v45, %v5600_v43  ;;  %v548_v47 = vpop.f32.mrb[15].mxu1  ;;  %v6101_v43 = vld [vmem:[#allocation7 + $0x78] sm:$0xff]   ;;  %v6781_v45 = vld [vmem:[%s6633_s29 + $0xe4] ss:$8 sps:$4 sm:$0xff]  }
 0x18e   : > { %v630_v48 = vpack.c.bf16 %v548_v47, %v545_v44  ;;  %v6778_v44 = vld [vmem:[%s6633_s29 + $0xd0] ss:$8 sps:$4 sm:$0xff]   ;;  %v6789_v47 = vld [vmem:[%s6633_s29 + $0xf4] ss:$8 sps:$4 sm:$0xff]  }
 0x192   : > { %v5604_v49 = vpop.f32.mrb[16].mxu1 }
 0x193   : > { %v561_v50 = vpop.f32.mrb[17].mxu1 }
 0x194   : > { %v5605_v51 = vpop.f32.mrb[18].mxu1 }
 0x195   : > { %v633_v52 = vpack.c.bf16 %v5605_v51, %v5604_v49  ;;  %v564_v53 = vpop.f32.mrb[19].mxu1  ;;  %v6800_v51 = vld [vmem:[%s7551_s3] ss:$0 sm:$0xff] }
 0x196   : > { %v632_v54 = vpack.c.bf16 %v564_v53, %v561_v50 }
 0x198   : > { %4618 = vmatprep.subr.bf16.mxu1 %v632_v54 }
 0x199   : > { %4619 = vmatpush3.bf16.msra.mxu1 %v624_v30  ;;  %v6741_v30 = vld [vmem:[%s6633_s29 + $0x94] ss:$8 sps:$4 sm:$0xff]  }
 0x19a   : > { %v5608_v55 = vpop.f32.mrb[20].mxu1  ;;  %4620 = vmatprep.subr.bf16.mxu1 %v633_v52 }
 0x19b   : > { %v577_v56 = vpop.f32.mrb[21].mxu1 }
 0x19c   : > { %v5609_v57 = vpop.f32.mrb[22].mxu1 }
 0x19d   : > { %v635_v58 = vpack.c.bf16 %v5609_v57, %v5608_v55  ;;  %v580_v59 = vpop.f32.mrb[23].mxu1  ;;  %4621 = vmatpush3.bf16.msra.mxu1 %v625_v28  ;;  %v6733_v28 = vld [vmem:[%s6633_s29 + $0x84] ss:$8 sps:$4 sm:$0xff]  }
 0x19e   : > { %v634_v60 = vpack.c.bf16 %v580_v59, %v577_v56 }
 0x1a0   : > { %4622 = vmatprep.subr.bf16.mxu1 %v634_v60 }
 0x1a1   : > { %4623 = vmatpush3.bf16.msra.mxu1 %v626_v36  ;;  %v6762_v36 = vld [vmem:[%s6633_s29 + $0xb0] ss:$8 sps:$4 sm:$0xff]  }
 0x1a2   : > { %v5612_v61 = vpop.f32.mrb[24].mxu1  ;;  %4624 = vmatprep.subr.bf16.mxu1 %v635_v58 }
 0x1a3   : > { %v593_v62 = vpop.f32.mrb[25].mxu1 }
 0x1a4   : > { %v5613_v63 = vpop.f32.mrb[26].mxu1 }
 0x1a5   : > { %v637_v0 = vpack.c.bf16 %v5613_v63, %v5612_v61  ;;  %v596_v1 = vpop.f32.mrb[27].mxu1  ;;  %4625 = vmatpush3.bf16.msra.mxu1 %v627_v34  ;;  %v6757_v34 = vld [vmem:[%s6633_s29 + $0xb4] ss:$8 sps:$4 sm:$0xff]  }
 0x1a6   : > { %v636_v2 = vpack.c.bf16 %v596_v1, %v593_v62 }
 0x1a8   : > { %4626 = vmatprep.subr.bf16.mxu1 %v636_v2 }
 0x1a9   : > { %4627 = vmatpush3.bf16.msra.mxu1 %v628_v42  ;;  %v6100_v42 = vld [vmem:[#allocation7 + $0x70] sm:$0xff]  }
 0x1aa   : > { %v5616_v3 = vpop.f32.mrb[28].mxu1  ;;  %4628 = vmatprep.subr.bf16.mxu1 %v637_v0  ;;  %5630 = vmatprep.subr.bf16.mxu0 %v6100_v42 }
 0x1ab   : > { %v609_v4 = vpop.f32.mrb[29].mxu1  ;;  %5631 = vmatpush3.bf16.msra.mxu0 %v6100_v42 }
 0x1ac   : > { %v5617_v5 = vpop.f32.mrb[30].mxu1  ;;  %5632 = vmatprep.subr.bf16.mxu0 %v6101_v43 }
 0x1ad   : > { %v639_v6 = vpack.c.bf16 %v5617_v5, %v5616_v3  ;;  %v612_v7 = vpop.f32.mrb[31].mxu1  ;;  %4629 = vmatpush3.bf16.msra.mxu1 %v629_v40  ;;  %v6770_v40 = vld [vmem:[%s6633_s29 + $0xc0] ss:$8 sps:$4 sm:$0xff]  }
 0x1ae   : > { %v638_v8 = vpack.c.bf16 %v612_v7, %v609_v4 }
 0x1af   : > { %5633 = vmatpush3.bf16.msra.mxu0 %v6101_v43 }
 0x1b0   : > { %4630 = vmatprep.subr.bf16.mxu1 %v638_v8 }
 0x1b1   : > { %4631 = vmatpush3.bf16.msra.mxu1 %v630_v48  ;;  %v6794_v48 = vld [vmem:[%s6633_s29 + $0xf0] ss:$8 sps:$4 sm:$0xff]  }
 0x1b2   : > { %4632 = vmatprep.subr.bf16.mxu1 %v639_v6 }
 0x1b5   : > { %4633 = vmatpush3.bf16.msra.mxu1 %v631_v46  ;;  %v6786_v46 = vld [vmem:[%s6633_s29 + $0xe0] ss:$8 sps:$4 sm:$0xff]  }
 0x1b8   : > { %870 = vmatmul.mubr.bf16.vlgmr.msra.gmra.mrb[32].mxu1 %v6674_v11 }
 0x1b9   : > { %877 = vmatprep.mubr.bf16.mxu1 %v6677_v13 }
 0x1c0   : > { %878 = vmatmul.mubr.bf16.gmra.mrb[36].mxu1 %v6682_v14 }
 0x1c1   : > { %885 = vmatprep.mubr.bf16.mxu1 %v6685_v15 }
 0x1c8   : > { %886 = vmatmul.mubr.bf16.gmra.mrb[40].mxu1 %v6690_v16 }
 0x1c9   : > { %893 = vmatprep.mubr.bf16.mxu1 %v6693_v17 }
 0x1d0   : > { %894 = vmatmul.mubr.bf16.gmra.mrb[44].mxu1 %v6698_v18 }
 0x1d1   : > { %901 = vmatprep.mubr.bf16.mxu1 %v6701_v19 }
 0x1d8   : > { %902 = vmatmul.mubr.bf16.gmra.mrb[48].mxu1 %v6706_v20 }
 0x1d9   : > { %909 = vmatprep.mubr.bf16.mxu1 %v6709_v21 }
 0x1e0   : > { %910 = vmatmul.mubr.bf16.gmra.mrb[52].mxu1 %v6714_v22 }
 0x1e1   : > { %917 = vmatprep.mubr.bf16.mxu1 %v6717_v23 }
 0x1e8   : > { %918 = vmatmul.mubr.bf16.gmra.mrb[56].mxu1 %v6722_v25 }
 0x1e9   : > { %925 = vmatprep.mubr.bf16.mxu1 %v6725_v26 }
 0x1f0   : > { %926 = vmatmul.mubr.bf16.gmra.mrb[60].mxu1 %v6730_v27 }
 0x1f1   : > { %933 = vmatprep.mubr.bf16.mxu1 %v6733_v28 }
 0x1f8   : > { %934 = vmatmul.mubr.bf16.gmra.mrb[64].mxu1 %v6738_v29 }
 0x1f9   : > { %941 = vmatprep.mubr.bf16.mxu1 %v6741_v30 }
 0x200   : > { %942 = vmatmul.mubr.bf16.gmra.mrb[68].mxu1 %v6746_v31 }
 0x201   : > { %949 = vmatprep.mubr.bf16.mxu1 %v6749_v32 }
 0x208   : > { %950 = vmatmul.mubr.bf16.gmra.mrb[72].mxu1 %v6754_v33 }
 0x209   : > { %957 = vmatprep.mubr.bf16.mxu1 %v6757_v34 }
 0x210   : > { %958 = vmatmul.mubr.bf16.gmra.mrb[76].mxu1 %v6762_v36 }
 0x211   : > { %965 = vmatprep.mubr.bf16.mxu1 %v6765_v37 }
 0x218   : > { %966 = vmatmul.mubr.bf16.gmra.mrb[80].mxu1 %v6770_v40 }
 0x219   : > { %973 = vmatprep.mubr.bf16.mxu1 %v6773_v41 }
 0x220   : > { %974 = vmatmul.mubr.bf16.gmra.mrb[84].mxu1 %v6778_v44 }
 0x221   : > { %981 = vmatprep.mubr.bf16.mxu1 %v6781_v45 }
 0x228   : > { %982 = vmatmul.mubr.bf16.gmra.mrb[88].mxu1 %v6786_v46 }
 0x229   : > { %989 = vmatprep.mubr.bf16.mxu1 %v6789_v47 }
 0x230   : > { %990 = vmatmul.mubr.bf16.gmra.mrb[92].mxu1 %v6794_v48 }
 0x28b   : > { %v4634_v49 = vpop.f32.mrb[32].mxu1 }
 0x28c   : > { %v4635_v50 = vpop.f32.mrb[33].mxu1 }
 0x28d   : > { %v4636_v52 = vadd.f32 %v4635_v50, %v4634_v49  ;;  %v4637_v53 = vpop.f32.mrb[34].mxu1 }
 0x28e   : > { %v4638_v54 = vpop.f32.mrb[35].mxu1 }
 0x28f   : > { %v4639_v55 = vadd.f32 %v4638_v54, %v4637_v53  ;;  %v872_v56 = vadd.f32 %v4636_v52, %v6800_v51 }
 0x291   : > { %v875_v57 = vadd.f32 %v4639_v55, %v6800_v51  ;;  %v998_v59 = vmax.f32 %v872_v56, 0.0 }
 0x293   : > { %v4640_v58 = vpop.f32.mrb[36].mxu1  ;;  %v999_v60 = vmax.f32 %v875_v57, 0.0 }
 0x294   : > { %v4641_v61 = vpop.f32.mrb[37].mxu1 }
 0x295   : > { %v4642_v62 = vadd.f32 %v4641_v61, %v4640_v58  ;;  %v4643_v63 = vpop.f32.mrb[38].mxu1  ;;  %v1030_v0 = vpack.c.bf16 %v999_v60, %v998_v59 }
 0x296   : > { %v4644_v1 = vpop.f32.mrb[39].mxu1 }
 0x297   : > { %v880_v2 = vadd.f32 %v4642_v62, %v6800_v51  ;;  %v4645_v3 = vadd.f32 %v4644_v1, %v4643_v63  ;;  %5634 = vmatprep.mubr.bf16.mxu0 %v1030_v0 }
 0x299   : > { %v883_v4 = vadd.f32 %v4645_v3, %v6800_v51  ;;  %v1000_v6 = vmax.f32 %v880_v2, 0.0 }
 0x29b   : > { %v4646_v5 = vpop.f32.mrb[40].mxu1  ;;  %v1001_v7 = vmax.f32 %v883_v4, 0.0 }
 0x29c   : > { %v4647_v8 = vpop.f32.mrb[41].mxu1 }
 0x29d   : > { %v4648_v9 = vadd.f32 %v4647_v8, %v4646_v5  ;;  %v4649_v10 = vpop.f32.mrb[42].mxu1  ;;  %v1031_v12 = vpack.c.bf16 %v1001_v7, %v1000_v6 }
 0x29e   : > { %v4650_v35 = vpop.f32.mrb[43].mxu1 }
 0x29f   : > { %v888_v38 = vadd.f32 %v4648_v9, %v6800_v51  ;;  %v4651_v39 = vadd.f32 %v4650_v35, %v4649_v10  ;;  %5635 = vmatmul.mubr.bf16.vlgmr.msra.gmra.mrb[0].mxu0 %v1031_v12 }
 0x2a1   : > { %v891_v42 = vadd.f32 %v4651_v39, %v6800_v51  ;;  %v1002_v49 = vmax.f32 %v888_v38, 0.0 }
 0x2a3   : > { %v4652_v43 = vpop.f32.mrb[44].mxu1  ;;  %v1003_v50 = vmax.f32 %v891_v42, 0.0 }
 0x2a4   : > { %v4653_v52 = vpop.f32.mrb[45].mxu1 }
 0x2a5   : > { %v4654_v53 = vadd.f32 %v4653_v52, %v4652_v43  ;;  %v4655_v54 = vpop.f32.mrb[46].mxu1  ;;  %v1032_v55 = vpack.c.bf16 %v1003_v50, %v1002_v49 }
 0x2a6   : > { %v4656_v56 = vpop.f32.mrb[47].mxu1 }
 0x2a7   : > { %v896_v57 = vadd.f32 %v4654_v53, %v6800_v51  ;;  %v4657_v58 = vadd.f32 %v4656_v56, %v4655_v54  ;;  %5638 = vmatprep.mubr.bf16.mxu0 %v1032_v55 }
 0x2a9   : > { %v899_v59 = vadd.f32 %v4657_v58, %v6800_v51  ;;  %v1004_v61 = vmax.f32 %v896_v57, 0.0 }
 0x2ab   : > { %v4658_v60 = vpop.f32.mrb[48].mxu1  ;;  %v1005_v62 = vmax.f32 %v899_v59, 0.0 }
 0x2ac   : > { %v4659_v63 = vpop.f32.mrb[49].mxu1 }
 0x2ad   : > { %v4660_v0 = vadd.f32 %v4659_v63, %v4658_v60  ;;  %v4661_v1 = vpop.f32.mrb[50].mxu1  ;;  %v1033_v2 = vpack.c.bf16 %v1005_v62, %v1004_v61 }
 0x2ae   : > { %v4662_v3 = vpop.f32.mrb[51].mxu1 }
 0x2af   : > { %v904_v4 = vadd.f32 %v4660_v0, %v6800_v51  ;;  %v4663_v5 = vadd.f32 %v4662_v3, %v4661_v1  ;;  %5639 = vmatmul.mubr.bf16.gmra.mrb[4].mxu0 %v1033_v2 }
 0x2b1   : > { %v907_v6 = vadd.f32 %v4663_v5, %v6800_v51  ;;  %v1006_v8 = vmax.f32 %v904_v4, 0.0 }
 0x2b3   : > { %v4664_v7 = vpop.f32.mrb[52].mxu1  ;;  %v1007_v9 = vmax.f32 %v907_v6, 0.0 }
 0x2b4   : > { %v4665_v10 = vpop.f32.mrb[53].mxu1 }
 0x2b5   : > { %v4666_v12 = vadd.f32 %v4665_v10, %v4664_v7  ;;  %v4667_v35 = vpop.f32.mrb[54].mxu1  ;;  %v1034_v38 = vpack.c.bf16 %v1007_v9, %v1006_v8 }
 0x2b6   : > { %v4668_v39 = vpop.f32.mrb[55].mxu1 }
 0x2b7   : > { %v912_v42 = vadd.f32 %v4666_v12, %v6800_v51  ;;  %v4669_v43 = vadd.f32 %v4668_v39, %v4667_v35  ;;  %5642 = vmatprep.mubr.bf16.mxu0 %v1034_v38 }
 0x2b9   : > { %v915_v49 = vadd.f32 %v4669_v43, %v6800_v51  ;;  %v1008_v52 = vmax.f32 %v912_v42, 0.0 }
 0x2bb   : > { %v4670_v50 = vpop.f32.mrb[56].mxu1  ;;  %v1009_v53 = vmax.f32 %v915_v49, 0.0 }
 0x2bc   : > { %v4671_v54 = vpop.f32.mrb[57].mxu1 }
 0x2bd   : > { %v4672_v55 = vadd.f32 %v4671_v54, %v4670_v50  ;;  %v4673_v56 = vpop.f32.mrb[58].mxu1  ;;  %v1035_v57 = vpack.c.bf16 %v1009_v53, %v1008_v52 }
 0x2be   : > { %v4674_v58 = vpop.f32.mrb[59].mxu1 }
 0x2bf   : > { %v920_v59 = vadd.f32 %v4672_v55, %v6800_v51  ;;  %v4675_v60 = vadd.f32 %v4674_v58, %v4673_v56  ;;  %5643 = vmatmul.mubr.bf16.gmra.mrb[8].mxu0 %v1035_v57 }
 0x2c1   : > { %v923_v61 = vadd.f32 %v4675_v60, %v6800_v51  ;;  %v1010_v63 = vmax.f32 %v920_v59, 0.0 }
 0x2c3   : > { %v4676_v62 = vpop.f32.mrb[60].mxu1  ;;  %v1011_v0 = vmax.f32 %v923_v61, 0.0 }
 0x2c4   : > { %v4677_v1 = vpop.f32.mrb[61].mxu1 }
 0x2c5   : > { %v4678_v2 = vadd.f32 %v4677_v1, %v4676_v62  ;;  %v4679_v3 = vpop.f32.mrb[62].mxu1  ;;  %v1036_v4 = vpack.c.bf16 %v1011_v0, %v1010_v63 }
 0x2c6   : > { %v4680_v5 = vpop.f32.mrb[63].mxu1 }
 0x2c7   : > { %v928_v6 = vadd.f32 %v4678_v2, %v6800_v51  ;;  %v4681_v7 = vadd.f32 %v4680_v5, %v4679_v3  ;;  %5646 = vmatprep.mubr.bf16.mxu0 %v1036_v4 }
 0x2c9   : > { %v931_v8 = vadd.f32 %v4681_v7, %v6800_v51  ;;  %v1012_v10 = vmax.f32 %v928_v6, 0.0 }
 0x2cb   : > { %v4682_v9 = vpop.f32.mrb[64].mxu1  ;;  %v1013_v12 = vmax.f32 %v931_v8, 0.0 }
 0x2cc   : > { %v4683_v35 = vpop.f32.mrb[65].mxu1 }
 0x2cd   : > { %v4684_v38 = vadd.f32 %v4683_v35, %v4682_v9  ;;  %v4685_v39 = vpop.f32.mrb[66].mxu1  ;;  %v1037_v42 = vpack.c.bf16 %v1013_v12, %v1012_v10 }
 0x2ce   : > { %v4686_v43 = vpop.f32.mrb[67].mxu1 }
 0x2cf   : > { %v936_v49 = vadd.f32 %v4684_v38, %v6800_v51  ;;  %v4687_v50 = vadd.f32 %v4686_v43, %v4685_v39  ;;  %5647 = vmatmul.mubr.bf16.gmra.mrb[12].mxu0 %v1037_v42 }
 0x2d1   : > { %v939_v52 = vadd.f32 %v4687_v50, %v6800_v51  ;;  %v1014_v54 = vmax.f32 %v936_v49, 0.0 }
 0x2d3   : > { %v4688_v53 = vpop.f32.mrb[68].mxu1  ;;  %v1015_v55 = vmax.f32 %v939_v52, 0.0 }
 0x2d4   : > { %v4689_v56 = vpop.f32.mrb[69].mxu1 }
 0x2d5   : > { %v4690_v57 = vadd.f32 %v4689_v56, %v4688_v53  ;;  %v4691_v58 = vpop.f32.mrb[70].mxu1  ;;  %v1038_v59 = vpack.c.bf16 %v1015_v55, %v1014_v54 }
 0x2d6   : > { %v4692_v60 = vpop.f32.mrb[71].mxu1 }
 0x2d7   : > { %v944_v61 = vadd.f32 %v4690_v57, %v6800_v51  ;;  %v4693_v62 = vadd.f32 %v4692_v60, %v4691_v58  ;;  %5650 = vmatprep.mubr.bf16.mxu0 %v1038_v59 }
 0x2d9   : > { %v947_v63 = vadd.f32 %v4693_v62, %v6800_v51  ;;  %v1016_v1 = vmax.f32 %v944_v61, 0.0 }
 0x2db   : > { %v4694_v0 = vpop.f32.mrb[72].mxu1  ;;  %v1017_v2 = vmax.f32 %v947_v63, 0.0 }
 0x2dc   : > { %v4695_v3 = vpop.f32.mrb[73].mxu1 }
 0x2dd   : > { %v4696_v4 = vadd.f32 %v4695_v3, %v4694_v0  ;;  %v4697_v5 = vpop.f32.mrb[74].mxu1  ;;  %v1039_v6 = vpack.c.bf16 %v1017_v2, %v1016_v1 }
 0x2de   : > { %v4698_v7 = vpop.f32.mrb[75].mxu1 }
 0x2df   : > { %v952_v8 = vadd.f32 %v4696_v4, %v6800_v51  ;;  %v4699_v9 = vadd.f32 %v4698_v7, %v4697_v5  ;;  %5651 = vmatmul.mubr.bf16.gmra.mrb[16].mxu0 %v1039_v6 }
 0x2e1   : > { %v955_v10 = vadd.f32 %v4699_v9, %v6800_v51  ;;  %v1018_v35 = vmax.f32 %v952_v8, 0.0 }
 0x2e3   : > { %v4700_v12 = vpop.f32.mrb[76].mxu1  ;;  %v1019_v38 = vmax.f32 %v955_v10, 0.0 }
 0x2e4   : > { %v4701_v39 = vpop.f32.mrb[77].mxu1 }
 0x2e5   : > { %v4702_v42 = vadd.f32 %v4701_v39, %v4700_v12  ;;  %v4703_v43 = vpop.f32.mrb[78].mxu1  ;;  %v1040_v49 = vpack.c.bf16 %v1019_v38, %v1018_v35 }
 0x2e6   : > { %v4704_v50 = vpop.f32.mrb[79].mxu1 }
 0x2e7   : > { %v960_v52 = vadd.f32 %v4702_v42, %v6800_v51  ;;  %v4705_v53 = vadd.f32 %v4704_v50, %v4703_v43  ;;  %5654 = vmatprep.mubr.bf16.mxu0 %v1040_v49 }
 0x2e9   : > { %v963_v54 = vadd.f32 %v4705_v53, %v6800_v51  ;;  %v1020_v56 = vmax.f32 %v960_v52, 0.0 }
 0x2eb   : > { %v4706_v55 = vpop.f32.mrb[80].mxu1  ;;  %v1021_v57 = vmax.f32 %v963_v54, 0.0 }
 0x2ec   : > { %v4707_v58 = vpop.f32.mrb[81].mxu1 }
 0x2ed   : > { %v4708_v59 = vadd.f32 %v4707_v58, %v4706_v55  ;;  %v4709_v60 = vpop.f32.mrb[82].mxu1  ;;  %v1041_v61 = vpack.c.bf16 %v1021_v57, %v1020_v56 }
 0x2ee   : > { %v4710_v62 = vpop.f32.mrb[83].mxu1 }
 0x2ef   : > { %v968_v63 = vadd.f32 %v4708_v59, %v6800_v51  ;;  %v4711_v0 = vadd.f32 %v4710_v62, %v4709_v60  ;;  %5655 = vmatmul.mubr.bf16.gmra.mrb[20].mxu0 %v1041_v61 }
 0x2f1   : > { %v971_v1 = vadd.f32 %v4711_v0, %v6800_v51  ;;  %v1022_v3 = vmax.f32 %v968_v63, 0.0 }
 0x2f3   : > { %v4712_v2 = vpop.f32.mrb[84].mxu1  ;;  %v1023_v4 = vmax.f32 %v971_v1, 0.0 }
 0x2f4   : > { %v4713_v5 = vpop.f32.mrb[85].mxu1 }
 0x2f5   : > { %v4714_v6 = vadd.f32 %v4713_v5, %v4712_v2  ;;  %v4715_v7 = vpop.f32.mrb[86].mxu1  ;;  %v1042_v8 = vpack.c.bf16 %v1023_v4, %v1022_v3 }
 0x2f6   : > { %v4716_v9 = vpop.f32.mrb[87].mxu1 }
 0x2f7   : > { %v976_v10 = vadd.f32 %v4714_v6, %v6800_v51  ;;  %v4717_v12 = vadd.f32 %v4716_v9, %v4715_v7  ;;  %5658 = vmatprep.mubr.bf16.mxu0 %v1042_v8 }
 0x2f9   : > { %v979_v35 = vadd.f32 %v4717_v12, %v6800_v51  ;;  %v1024_v39 = vmax.f32 %v976_v10, 0.0 }
 0x2fb   : > { %v4718_v38 = vpop.f32.mrb[88].mxu1  ;;  %v1025_v42 = vmax.f32 %v979_v35, 0.0 }
 0x2fc   : > { %v4719_v43 = vpop.f32.mrb[89].mxu1 }
 0x2fd   : > { %v4720_v49 = vadd.f32 %v4719_v43, %v4718_v38  ;;  %v4721_v50 = vpop.f32.mrb[90].mxu1  ;;  %v1043_v52 = vpack.c.bf16 %v1025_v42, %v1024_v39 }
 0x2fe   : > { %v4722_v53 = vpop.f32.mrb[91].mxu1 }
 0x2ff   : > { %v984_v54 = vadd.f32 %v4720_v49, %v6800_v51  ;;  %v4723_v55 = vadd.f32 %v4722_v53, %v4721_v50  ;;  %5659 = vmatmul.mubr.bf16.gmra.mrb[24].mxu0 %v1043_v52 }
 0x301   : > { %v987_v56 = vadd.f32 %v4723_v55, %v6800_v51  ;;  %v1026_v58 = vmax.f32 %v984_v54, 0.0 }
 0x303   : > { %v4724_v57 = vpop.f32.mrb[92].mxu1  ;;  %v1027_v59 = vmax.f32 %v987_v56, 0.0 }
 0x304   : > { %v4725_v60 = vpop.f32.mrb[93].mxu1 }
 0x305   : > { %v4726_v61 = vadd.f32 %v4725_v60, %v4724_v57  ;;  %v4727_v62 = vpop.f32.mrb[94].mxu1  ;;  %v1044_v63 = vpack.c.bf16 %v1027_v59, %v1026_v58 }
 0x306   : > { %v4728_v0 = vpop.f32.mrb[95].mxu1 }
 0x307   : > { %v992_v1 = vadd.f32 %v4726_v61, %v6800_v51  ;;  %v4729_v2 = vadd.f32 %v4728_v0, %v4727_v62  ;;  %5662 = vmatprep.mubr.bf16.mxu0 %v1044_v63 }
 0x309   : > { %v995_v3 = vadd.f32 %v4729_v2, %v6800_v51  ;;  %v1028_v4 = vmax.f32 %v992_v1, 0.0 }
 0x30b   : > { %v1029_v5 = vmax.f32 %v995_v3, 0.0 }
 0x30d   : > { %v1045_v6 = vpack.c.bf16 %v1029_v5, %v1028_v4 }
 0x30f   : > { %5663 = vmatmul.mubr.bf16.gmra.mrb[28].mxu0 %v1045_v6 }
 0x310   : > { %1325 = vmatprep.mubr.bf16.mxu0 %v6670_v24 }
 0x372   : > { %v5636_v7 = vpop.f32.mrb[0].mxu0 }
 0x373   : > { %v1145_v8 = vpop.f32.mrb[1].mxu0 }
 0x374   : > { %v5637_v9 = vpop.f32.mrb[2].mxu0 }
 0x375   : > { %v1273_v10 = vpack.c.bf16 %v5637_v9, %v5636_v7  ;;  %v1148_v12 = vpop.f32.mrb[3].mxu0 }
 0x376   : > { %v1272_v35 = vpack.c.bf16 %v1148_v12, %v1145_v8 }
 0x382   : > { %v5640_v38 = vpop.f32.mrb[4].mxu0 }
 0x383   : > { %v1161_v39 = vpop.f32.mrb[5].mxu0 }
 0x384   : > { %v5641_v42 = vpop.f32.mrb[6].mxu0 }
 0x385   : > { %v1275_v43 = vpack.c.bf16 %v5641_v42, %v5640_v38  ;;  %v1164_v49 = vpop.f32.mrb[7].mxu0 }
 0x386   : > { %v1274_v50 = vpack.c.bf16 %v1164_v49, %v1161_v39 }
 0x392   : > { %v5644_v52 = vpop.f32.mrb[8].mxu0 }
 0x393   : > { %v1177_v51 = vpop.f32.mrb[9].mxu0 }
 0x394   : > { %v5645_v53 = vpop.f32.mrb[10].mxu0 }
 0x395   : > { %v1277_v54 = vpack.c.bf16 %v5645_v53, %v5644_v52  ;;  %v1180_v55 = vpop.f32.mrb[11].mxu0 }
 0x396   : > { %v1276_v56 = vpack.c.bf16 %v1180_v55, %v1177_v51 }
 0x3a2   : > { %v5648_v57 = vpop.f32.mrb[12].mxu0 }
 0x3a3   : > { %v1193_v24 = vpop.f32.mrb[13].mxu0 }
 0x3a4   : > { %v5649_v58 = vpop.f32.mrb[14].mxu0 }
 0x3a5   : > { %v1279_v59 = vpack.c.bf16 %v5649_v58, %v5648_v57  ;;  %v1196_v60 = vpop.f32.mrb[15].mxu0 }
 0x3a6   : > { %v1278_v61 = vpack.c.bf16 %v1196_v60, %v1193_v24  ;;  %v6103_v24 = vld [vmem:[#allocation7 + $0x88] sm:$0xff]  }
 0x3b2   : > { %v5652_v62 = vpop.f32.mrb[16].mxu0 }
 0x3b3   : > { %v1209_v63 = vpop.f32.mrb[17].mxu0 }
 0x3b4   : > { %v5653_v0 = vpop.f32.mrb[18].mxu0 }
 0x3b5   : > { %v1281_v1 = vpack.c.bf16 %v5653_v0, %v5652_v62  ;;  %v1212_v2 = vpop.f32.mrb[19].mxu0 }
 0x3b6   : > { %v1280_v3 = vpack.c.bf16 %v1212_v2, %v1209_v63 }
 0x3b8   : > { %4754 = vmatprep.subr.bf16.mxu0 %v1280_v3 }
 0x3b9   : > { %4755 = vmatpush3.bf16.msra.mxu0 %v1272_v35 }
 0x3ba   : > { %4756 = vmatprep.subr.bf16.mxu0 %v1281_v1 }
 0x3bd   : > { %4757 = vmatpush3.bf16.msra.mxu0 %v1273_v10 }
 0x3c2   : > { %v5656_v4 = vpop.f32.mrb[20].mxu0 }
 0x3c3   : > { %v1225_v5 = vpop.f32.mrb[21].mxu0 }
 0x3c4   : > { %v5657_v6 = vpop.f32.mrb[22].mxu0 }
 0x3c5   : > { %v1283_v7 = vpack.c.bf16 %v5657_v6, %v5656_v4  ;;  %v1228_v8 = vpop.f32.mrb[23].mxu0 }
 0x3c6   : > { %v1282_v9 = vpack.c.bf16 %v1228_v8, %v1225_v5 }
 0x3c8   : > { %4758 = vmatprep.subr.bf16.mxu0 %v1282_v9 }
 0x3c9   : > { %4759 = vmatpush3.bf16.msra.mxu0 %v1274_v50  ;;  %v6102_v50 = vld [vmem:[#allocation7 + $0x80] sm:$0xff]  }
 0x3ca   : > { %4760 = vmatprep.subr.bf16.mxu0 %v1283_v7  ;;  %5666 = vmatprep.subr.bf16.mxu1 %v6102_v50 }
 0x3cb   : > { %5667 = vmatpush3.bf16.msra.mxu1 %v6102_v50 }
 0x3cc   : > { %5668 = vmatprep.subr.bf16.mxu1 %v6103_v24 }
 0x3cd   : > { %4761 = vmatpush3.bf16.msra.mxu0 %v1275_v43  ;;  %v6104_v43 = vld [vmem:[#allocation7 + $0x90] sm:$0xff]  }
 0x3cf   : > { %5669 = vmatpush3.bf16.msra.mxu1 %v6103_v24 }
 0x3d0   : > { %5670 = vmatprep.subr.bf16.mxu1 %v6104_v43 }
 0x3d2   : > { %v5660_v12 = vpop.f32.mrb[24].mxu0 }
 0x3d3   : > { %v1241_v38 = vpop.f32.mrb[25].mxu0  ;;  %5671 = vmatpush3.bf16.msra.mxu1 %v6104_v43 }
 0x3d4   : > { %v5661_v39 = vpop.f32.mrb[26].mxu0 }
 0x3d5   : > { %v1285_v42 = vpack.c.bf16 %v5661_v39, %v5660_v12  ;;  %v1244_v49 = vpop.f32.mrb[27].mxu0 }
 0x3d6   : > { %v1284_v52 = vpack.c.bf16 %v1244_v49, %v1241_v38 }
 0x3d8   : > { %4762 = vmatprep.subr.bf16.mxu0 %v1284_v52 }
 0x3d9   : > { %4763 = vmatpush3.bf16.msra.mxu0 %v1276_v56 }
 0x3da   : > { %4764 = vmatprep.subr.bf16.mxu0 %v1285_v42 }
 0x3dd   : > { %4765 = vmatpush3.bf16.msra.mxu0 %v1277_v54 }
 0x3e2   : > { %v5664_v10 = vpop.f32.mrb[28].mxu0 }
 0x3e3   : > { %v1257_v35 = vpop.f32.mrb[29].mxu0 }
 0x3e4   : > { %v5665_v51 = vpop.f32.mrb[30].mxu0 }
 0x3e5   : > { %v1287_v53 = vpack.c.bf16 %v5665_v51, %v5664_v10  ;;  %v1260_v55 = vpop.f32.mrb[31].mxu0 }
 0x3e6   : > { %v1286_v57 = vpack.c.bf16 %v1260_v55, %v1257_v35 }
 0x3e8   : > { %4766 = vmatprep.subr.bf16.mxu0 %v1286_v57 }
 0x3e9   : > { %4767 = vmatpush3.bf16.msra.mxu0 %v1278_v61 }
 0x3ea   : > { %4768 = vmatprep.subr.bf16.mxu0 %v1287_v53 }
 0x3ed   : > { %4769 = vmatpush3.bf16.msra.mxu0 %v1279_v59 }
 0x3f0   : > { %1326 = vmatmul.mubr.bf16.vlgmr.msra.gmra.mrb[32].mxu0 %v6674_v11  ;;  %v6105_v11 = vld [vmem:[#allocation7 + $0x98] sm:$0xff]  }
 0x3f1   : > { %1333 = vmatprep.mubr.bf16.mxu0 %v6677_v13  ;;  %5672 = vmatprep.subr.bf16.mxu1 %v6105_v11  ;;  %v6106_v13 = vld [vmem:[#allocation7 + $0xa0] sm:$0xff]  }
 0x3f2   : > { %5673 = vmatpush3.bf16.msra.mxu1 %v6105_v11 }
 0x3f3   : > { %5674 = vmatprep.subr.bf16.mxu1 %v6106_v13 }
 0x3f6   : > { %5675 = vmatpush3.bf16.msra.mxu1 %v6106_v13 }
 0x3f8   : > { %1334 = vmatmul.mubr.bf16.gmra.mrb[36].mxu0 %v6682_v14  ;;  %v6107_v14 = vld [vmem:[#allocation7 + $0xa8] sm:$0xff]  }
 0x3f9   : > { %1341 = vmatprep.mubr.bf16.mxu0 %v6685_v15  ;;  %5676 = vmatprep.subr.bf16.mxu1 %v6107_v14  ;;  %v6108_v15 = vld [vmem:[#allocation7 + $0xb0] sm:$0xff]  }
 0x3fa   : > { %5677 = vmatpush3.bf16.msra.mxu1 %v6107_v14 }
 0x3fb   : > { %5678 = vmatprep.subr.bf16.mxu1 %v6108_v15 }
 0x3fe   : > { %5679 = vmatpush3.bf16.msra.mxu1 %v6108_v15 }
 0x400   : > { %1342 = vmatmul.mubr.bf16.gmra.mrb[40].mxu0 %v6690_v16  ;;  %v6109_v16 = vld [vmem:[#allocation7 + $0xb8] sm:$0xff]  }
 0x401   : > { %1349 = vmatprep.mubr.bf16.mxu0 %v6693_v17  ;;  %5680 = vmatprep.subr.bf16.mxu1 %v6109_v16 }
 0x402   : > { %5681 = vmatpush3.bf16.msra.mxu1 %v6109_v16 }
 0x408   : > { %1350 = vmatmul.mubr.bf16.gmra.mrb[44].mxu0 %v6698_v18  ;;  %v6869_v18 = vld [vmem:[%s7551_s3 + $0x1] ss:$0 sm:$0xff] }
 0x409   : > { %1357 = vmatprep.mubr.bf16.mxu0 %v6701_v19 }
 0x410   : > { %1358 = vmatmul.mubr.bf16.gmra.mrb[48].mxu0 %v6706_v20 }
 0x411   : > { %1365 = vmatprep.mubr.bf16.mxu0 %v6709_v21 }
 0x418   : > { %1366 = vmatmul.mubr.bf16.gmra.mrb[52].mxu0 %v6714_v22 }
 0x419   : > { %1373 = vmatprep.mubr.bf16.mxu0 %v6717_v23 }
 0x420   : > { %1374 = vmatmul.mubr.bf16.gmra.mrb[56].mxu0 %v6722_v25 }
 0x421   : > { %1381 = vmatprep.mubr.bf16.mxu0 %v6725_v26 }
 0x428   : > { %1382 = vmatmul.mubr.bf16.gmra.mrb[60].mxu0 %v6730_v27 }
 0x429   : > { %1389 = vmatprep.mubr.bf16.mxu0 %v6733_v28 }
 0x430   : > { %1390 = vmatmul.mubr.bf16.gmra.mrb[64].mxu0 %v6738_v29 }
 0x431   : > { %1397 = vmatprep.mubr.bf16.mxu0 %v6741_v30 }
 0x438   : > { %1398 = vmatmul.mubr.bf16.gmra.mrb[68].mxu0 %v6746_v31 }
 0x439   : > { %1405 = vmatprep.mubr.bf16.mxu0 %v6749_v32 }
 0x440   : > { %1406 = vmatmul.mubr.bf16.gmra.mrb[72].mxu0 %v6754_v33 }
 0x441   : > { %1413 = vmatprep.mubr.bf16.mxu0 %v6757_v34 }
 0x448   : > { %1414 = vmatmul.mubr.bf16.gmra.mrb[76].mxu0 %v6762_v36 }
 0x449   : > { %1421 = vmatprep.mubr.bf16.mxu0 %v6765_v37 }
 0x450   : > { %1422 = vmatmul.mubr.bf16.gmra.mrb[80].mxu0 %v6770_v40 }
 0x451   : > { %1429 = vmatprep.mubr.bf16.mxu0 %v6773_v41 }
 0x458   : > { %1430 = vmatmul.mubr.bf16.gmra.mrb[84].mxu0 %v6778_v44 }
 0x459   : > { %1437 = vmatprep.mubr.bf16.mxu0 %v6781_v45 }
 0x460   : > { %1438 = vmatmul.mubr.bf16.gmra.mrb[88].mxu0 %v6786_v46 }
 0x461   : > { %1445 = vmatprep.mubr.bf16.mxu0 %v6789_v47 }
 0x468   : > { %1446 = vmatmul.mubr.bf16.gmra.mrb[92].mxu0 %v6794_v48 }
 0x4c3   : > { %v4770_v17 = vpop.f32.mrb[32].mxu0 }
 0x4c4   : > { %v4771_v19 = vpop.f32.mrb[33].mxu0 }
 0x4c5   : > { %v4772_v20 = vadd.f32 %v4771_v19, %v4770_v17  ;;  %v4773_v21 = vpop.f32.mrb[34].mxu0 }
 0x4c6   : > { %v4774_v22 = vpop.f32.mrb[35].mxu0 }
 0x4c7   : > { %v1328_v23 = vadd.f32 %v4772_v20, %v6869_v18  ;;  %v4775_v25 = vadd.f32 %v4774_v22, %v4773_v21 }
 0x4c9   : > { %v1331_v26 = vadd.f32 %v4775_v25, %v6869_v18  ;;  %v1454_v28 = vmax.f32 %v1328_v23, 0.0 }
 0x4cb   : > { %v4776_v27 = vpop.f32.mrb[36].mxu0  ;;  %v1455_v29 = vmax.f32 %v1331_v26, 0.0 }
 0x4cc   : > { %v4777_v30 = vpop.f32.mrb[37].mxu0 }
 0x4cd   : > { %v4778_v31 = vadd.f32 %v4777_v30, %v4776_v27  ;;  %v4779_v32 = vpop.f32.mrb[38].mxu0  ;;  %v1486_v33 = vpack.c.bf16 %v1455_v29, %v1454_v28 }
 0x4ce   : > { %v4780_v34 = vpop.f32.mrb[39].mxu0 }
 0x4cf   : > { %v1336_v36 = vadd.f32 %v4778_v31, %v6869_v18  ;;  %v4781_v37 = vadd.f32 %v4780_v34, %v4779_v32  ;;  %5682 = vmatprep.mubr.bf16.mxu1 %v1486_v33 }
 0x4d1   : > { %v1339_v40 = vadd.f32 %v4781_v37, %v6869_v18  ;;  %v1456_v41 = vmax.f32 %v1336_v36, 0.0 }
 0x4d3   : > { %v1457_v44 = vmax.f32 %v1339_v40, 0.0  ;;  %v4782_v45 = vpop.f32.mrb[40].mxu0 }
 0x4d4   : > { %v4783_v46 = vpop.f32.mrb[41].mxu0 }
 0x4d5   : > { %v1487_v47 = vpack.c.bf16 %v1457_v44, %v1456_v41  ;;  %v4784_v48 = vadd.f32 %v4783_v46, %v4782_v45  ;;  %v4785_v54 = vpop.f32.mrb[42].mxu0 }
 0x4d6   : > { %v4786_v56 = vpop.f32.mrb[43].mxu0 }
 0x4d7   : > { %v1344_v58 = vadd.f32 %v4784_v48, %v6869_v18  ;;  %v4787_v59 = vadd.f32 %v4786_v56, %v4785_v54  ;;  %5683 = vmatmul.mubr.bf16.vlgmr.msra.gmra.mrb[96].mxu1 %v1487_v47 }
 0x4d9   : > { %v1347_v60 = vadd.f32 %v4787_v59, %v6869_v18  ;;  %v1458_v62 = vmax.f32 %v1344_v58, 0.0 }
 0x4db   : > { %v4788_v61 = vpop.f32.mrb[44].mxu0  ;;  %v1459_v63 = vmax.f32 %v1347_v60, 0.0 }
 0x4dc   : > { %v4789_v0 = vpop.f32.mrb[45].mxu0 }
 0x4dd   : > { %v4790_v1 = vadd.f32 %v4789_v0, %v4788_v61  ;;  %v4791_v2 = vpop.f32.mrb[46].mxu0  ;;  %v1488_v3 = vpack.c.bf16 %v1459_v63, %v1458_v62 }
 0x4de   : > { %v4792_v4 = vpop.f32.mrb[47].mxu0 }
 0x4df   : > { %v1352_v5 = vadd.f32 %v4790_v1, %v6869_v18  ;;  %v4793_v6 = vadd.f32 %v4792_v4, %v4791_v2  ;;  %5686 = vmatprep.mubr.bf16.mxu1 %v1488_v3 }
 0x4e1   : > { %v1355_v7 = vadd.f32 %v4793_v6, %v6869_v18  ;;  %v1460_v9 = vmax.f32 %v1352_v5, 0.0 }
 0x4e3   : > { %v4794_v8 = vpop.f32.mrb[48].mxu0  ;;  %v1461_v12 = vmax.f32 %v1355_v7, 0.0 }
 0x4e4   : > { %v4795_v38 = vpop.f32.mrb[49].mxu0 }
 0x4e5   : > { %v4796_v39 = vadd.f32 %v4795_v38, %v4794_v8  ;;  %v4797_v42 = vpop.f32.mrb[50].mxu0  ;;  %v1489_v49 = vpack.c.bf16 %v1461_v12, %v1460_v9 }
 0x4e6   : > { %v4798_v52 = vpop.f32.mrb[51].mxu0 }
 0x4e7   : > { %v1360_v10 = vadd.f32 %v4796_v39, %v6869_v18  ;;  %v4799_v35 = vadd.f32 %v4798_v52, %v4797_v42  ;;  %5687 = vmatmul.mubr.bf16.gmra.mrb[100].mxu1 %v1489_v49 }
 0x4e9   : > { %v1363_v51 = vadd.f32 %v4799_v35, %v6869_v18  ;;  %v1462_v55 = vmax.f32 %v1360_v10, 0.0 }
 0x4eb   : > { %v4800_v53 = vpop.f32.mrb[52].mxu0  ;;  %v1463_v57 = vmax.f32 %v1363_v51, 0.0 }
 0x4ec   : > { %v4801_v50 = vpop.f32.mrb[53].mxu0 }
 0x4ed   : > { %v4802_v24 = vadd.f32 %v4801_v50, %v4800_v53  ;;  %v4803_v43 = vpop.f32.mrb[54].mxu0  ;;  %v1490_v11 = vpack.c.bf16 %v1463_v57, %v1462_v55 }
 0x4ee   : > { %v4804_v13 = vpop.f32.mrb[55].mxu0 }
 0x4ef   : > { %v1368_v14 = vadd.f32 %v4802_v24, %v6869_v18  ;;  %v4805_v15 = vadd.f32 %v4804_v13, %v4803_v43  ;;  %5690 = vmatprep.mubr.bf16.mxu1 %v1490_v11 }
 0x4f1   : > { %v1371_v16 = vadd.f32 %v4805_v15, %v6869_v18  ;;  %v1464_v19 = vmax.f32 %v1368_v14, 0.0 }
 0x4f3   : > { %v4806_v17 = vpop.f32.mrb[56].mxu0  ;;  %v1465_v20 = vmax.f32 %v1371_v16, 0.0 }
 0x4f4   : > { %v4807_v21 = vpop.f32.mrb[57].mxu0 }
 0x4f5   : > { %v4808_v22 = vadd.f32 %v4807_v21, %v4806_v17  ;;  %v4809_v23 = vpop.f32.mrb[58].mxu0  ;;  %v1491_v25 = vpack.c.bf16 %v1465_v20, %v1464_v19 }
 0x4f6   : > { %v4810_v26 = vpop.f32.mrb[59].mxu0 }
 0x4f7   : > { %v1376_v27 = vadd.f32 %v4808_v22, %v6869_v18  ;;  %v4811_v28 = vadd.f32 %v4810_v26, %v4809_v23  ;;  %5691 = vmatmul.mubr.bf16.gmra.mrb[104].mxu1 %v1491_v25 }
 0x4f9   : > { %v1379_v29 = vadd.f32 %v4811_v28, %v6869_v18  ;;  %v1466_v31 = vmax.f32 %v1376_v27, 0.0 }
 0x4fb   : > { %v4812_v30 = vpop.f32.mrb[60].mxu0  ;;  %v1467_v32 = vmax.f32 %v1379_v29, 0.0 }
 0x4fc   : > { %v4813_v33 = vpop.f32.mrb[61].mxu0 }
 0x4fd   : > { %v4814_v34 = vadd.f32 %v4813_v33, %v4812_v30  ;;  %v4815_v36 = vpop.f32.mrb[62].mxu0  ;;  %v1492_v37 = vpack.c.bf16 %v1467_v32, %v1466_v31 }
 0x4fe   : > { %v4816_v40 = vpop.f32.mrb[63].mxu0 }
 0x4ff   : > { %v1384_v41 = vadd.f32 %v4814_v34, %v6869_v18  ;;  %v4817_v44 = vadd.f32 %v4816_v40, %v4815_v36  ;;  %5694 = vmatprep.mubr.bf16.mxu1 %v1492_v37 }
 0x501   : > { %v1387_v45 = vadd.f32 %v4817_v44, %v6869_v18  ;;  %v1468_v47 = vmax.f32 %v1384_v41, 0.0 }
 0x503   : > { %v4818_v46 = vpop.f32.mrb[64].mxu0  ;;  %v1469_v48 = vmax.f32 %v1387_v45, 0.0 }
 0x504   : > { %v4819_v54 = vpop.f32.mrb[65].mxu0 }
 0x505   : > { %v4820_v56 = vadd.f32 %v4819_v54, %v4818_v46  ;;  %v4821_v58 = vpop.f32.mrb[66].mxu0  ;;  %v1493_v59 = vpack.c.bf16 %v1469_v48, %v1468_v47 }
 0x506   : > { %v4822_v60 = vpop.f32.mrb[67].mxu0 }
 0x507   : > { %v1392_v61 = vadd.f32 %v4820_v56, %v6869_v18  ;;  %v4823_v62 = vadd.f32 %v4822_v60, %v4821_v58  ;;  %5695 = vmatmul.mubr.bf16.gmra.mrb[108].mxu1 %v1493_v59 }
 0x509   : > { %v1395_v63 = vadd.f32 %v4823_v62, %v6869_v18  ;;  %v1470_v1 = vmax.f32 %v1392_v61, 0.0 }
 0x50b   : > { %v4824_v0 = vpop.f32.mrb[68].mxu0  ;;  %v1471_v2 = vmax.f32 %v1395_v63, 0.0 }
 0x50c   : > { %v4825_v3 = vpop.f32.mrb[69].mxu0 }
 0x50d   : > { %v4826_v4 = vadd.f32 %v4825_v3, %v4824_v0  ;;  %v4827_v5 = vpop.f32.mrb[70].mxu0  ;;  %v1494_v6 = vpack.c.bf16 %v1471_v2, %v1470_v1 }
 0x50e   : > { %v4828_v7 = vpop.f32.mrb[71].mxu0 }
 0x50f   : > { %v1400_v8 = vadd.f32 %v4826_v4, %v6869_v18  ;;  %v4829_v9 = vadd.f32 %v4828_v7, %v4827_v5  ;;  %5698 = vmatprep.mubr.bf16.mxu1 %v1494_v6 }
 0x511   : > { %v1403_v12 = vadd.f32 %v4829_v9, %v6869_v18  ;;  %v1472_v39 = vmax.f32 %v1400_v8, 0.0 }
 0x513   : > { %v4830_v38 = vpop.f32.mrb[72].mxu0  ;;  %v1473_v42 = vmax.f32 %v1403_v12, 0.0 }
 0x514   : > { %v4831_v49 = vpop.f32.mrb[73].mxu0 }
 0x515   : > { %v4832_v52 = vadd.f32 %v4831_v49, %v4830_v38  ;;  %v4833_v10 = vpop.f32.mrb[74].mxu0  ;;  %v1495_v35 = vpack.c.bf16 %v1473_v42, %v1472_v39 }
 0x516   : > { %v4834_v51 = vpop.f32.mrb[75].mxu0 }
 0x517   : > { %v1408_v53 = vadd.f32 %v4832_v52, %v6869_v18  ;;  %v4835_v55 = vadd.f32 %v4834_v51, %v4833_v10  ;;  %5699 = vmatmul.mubr.bf16.gmra.mrb[112].mxu1 %v1495_v35  ;;  %v6904_v35 = vld [vmem:[%s6633_s29 + $0x4] ss:$8 sps:$4 sm:$0xff]  }
 0x519   : > { %v1411_v57 = vadd.f32 %v4835_v55, %v6869_v18  ;;  %v1474_v24 = vmax.f32 %v1408_v53, 0.0 }
 0x51b   : > { %v4836_v50 = vpop.f32.mrb[76].mxu0  ;;  %v1475_v43 = vmax.f32 %v1411_v57, 0.0 }
 0x51c   : > { %v4837_v11 = vpop.f32.mrb[77].mxu0 }
 0x51d   : > { %v4838_v13 = vadd.f32 %v4837_v11, %v4836_v50  ;;  %v4839_v14 = vpop.f32.mrb[78].mxu0  ;;  %v1496_v15 = vpack.c.bf16 %v1475_v43, %v1474_v24 }
 0x51e   : > { %v4840_v16 = vpop.f32.mrb[79].mxu0 }
 0x51f   : > { %v1416_v17 = vadd.f32 %v4838_v13, %v6869_v18  ;;  %v4841_v19 = vadd.f32 %v4840_v16, %v4839_v14  ;;  %5702 = vmatprep.mubr.bf16.mxu1 %v1496_v15 }
 0x521   : > { %v1419_v20 = vadd.f32 %v4841_v19, %v6869_v18  ;;  %v1476_v22 = vmax.f32 %v1416_v17, 0.0 }
 0x523   : > { %v4842_v21 = vpop.f32.mrb[80].mxu0  ;;  %v1477_v23 = vmax.f32 %v1419_v20, 0.0 }
 0x524   : > { %v4843_v25 = vpop.f32.mrb[81].mxu0 }
 0x525   : > { %v4844_v26 = vadd.f32 %v4843_v25, %v4842_v21  ;;  %v4845_v27 = vpop.f32.mrb[82].mxu0  ;;  %v1497_v28 = vpack.c.bf16 %v1477_v23, %v1476_v22 }
 0x526   : > { %v4846_v29 = vpop.f32.mrb[83].mxu0 }
 0x527   : > { %v1424_v30 = vadd.f32 %v4844_v26, %v6869_v18  ;;  %v4847_v31 = vadd.f32 %v4846_v29, %v4845_v27  ;;  %5703 = vmatmul.mubr.bf16.gmra.mrb[116].mxu1 %v1497_v28 }
 0x529   : > { %v1427_v32 = vadd.f32 %v4847_v31, %v6869_v18  ;;  %v1478_v34 = vmax.f32 %v1424_v30, 0.0 }
 0x52b   : > { %v4848_v33 = vpop.f32.mrb[84].mxu0  ;;  %v1479_v36 = vmax.f32 %v1427_v32, 0.0 }
 0x52c   : > { %v4849_v37 = vpop.f32.mrb[85].mxu0 }
 0x52d   : > { %v4850_v40 = vadd.f32 %v4849_v37, %v4848_v33  ;;  %v4851_v41 = vpop.f32.mrb[86].mxu0  ;;  %v1498_v44 = vpack.c.bf16 %v1479_v36, %v1478_v34 }
 0x52e   : > { %v4852_v45 = vpop.f32.mrb[87].mxu0 }
 0x52f   : > { %v1432_v46 = vadd.f32 %v4850_v40, %v6869_v18  ;;  %v4853_v47 = vadd.f32 %v4852_v45, %v4851_v41  ;;  %5706 = vmatprep.mubr.bf16.mxu1 %v1498_v44 }
 0x531   : > { %v1435_v48 = vadd.f32 %v4853_v47, %v6869_v18  ;;  %v1480_v56 = vmax.f32 %v1432_v46, 0.0 }
 0x533   : > { %v4854_v54 = vpop.f32.mrb[88].mxu0  ;;  %v1481_v58 = vmax.f32 %v1435_v48, 0.0 }
 0x534   : > { %v4855_v59 = vpop.f32.mrb[89].mxu0 }
 0x535   : > { %v4856_v60 = vadd.f32 %v4855_v59, %v4854_v54  ;;  %v4857_v61 = vpop.f32.mrb[90].mxu0  ;;  %v1499_v62 = vpack.c.bf16 %v1481_v58, %v1480_v56 }
 0x536   : > { %v4858_v63 = vpop.f32.mrb[91].mxu0 }
 0x537   : > { %v1440_v0 = vadd.f32 %v4856_v60, %v6869_v18  ;;  %v4859_v1 = vadd.f32 %v4858_v63, %v4857_v61  ;;  %5707 = vmatmul.mubr.bf16.gmra.mrb[120].mxu1 %v1499_v62 }
 0x539   : > { %v1443_v2 = vadd.f32 %v4859_v1, %v6869_v18  ;;  %v1482_v4 = vmax.f32 %v1440_v0, 0.0 }
 0x53b   : > { %v4860_v3 = vpop.f32.mrb[92].mxu0  ;;  %v1483_v5 = vmax.f32 %v1443_v2, 0.0  ;;  %v6110_v2 = vld [vmem:[#allocation7 + $0xc0] sm:$0xff]  }
 0x53c   : > { %v4861_v6 = vpop.f32.mrb[93].mxu0  ;;  %5714 = vmatprep.subr.bf16.mxu0 %v6110_v2 }
 0x53d   : > { %v4862_v7 = vadd.f32 %v4861_v6, %v4860_v3  ;;  %v4863_v8 = vpop.f32.mrb[94].mxu0  ;;  %v1500_v9 = vpack.c.bf16 %v1483_v5, %v1482_v4  ;;  %v6111_v3 = vld [vmem:[#allocation7 + $0xc8] sm:$0xff]   ;;  %5715 = vmatpush3.bf16.msra.mxu0 %v6110_v2  ;;  %v6112_v4 = vld [vmem:[#allocation7 + $0xd0] sm:$0xff]  }
 0x53e   : > { %v4864_v12 = vpop.f32.mrb[95].mxu0  ;;  %5716 = vmatprep.subr.bf16.mxu0 %v6111_v3  ;;  %v6908_v5 = vld [vmem:[%s6633_s29] ss:$8 sps:$4 sm:$0xff]   ;;  %v6912_v6 = vld [vmem:[%s6633_s29 + $0x14] ss:$8 sps:$4 sm:$0xff]  }
 0x53f   : > { %v1448_v38 = vadd.f32 %v4862_v7, %v6869_v18  ;;  %v4865_v39 = vadd.f32 %v4864_v12, %v4863_v8  ;;  %5710 = vmatprep.mubr.bf16.mxu1 %v1500_v9  ;;  %v6916_v7 = vld [vmem:[%s6633_s29 + $0x10] ss:$8 sps:$4 sm:$0xff]   ;;  %v6920_v8 = vld [vmem:[%s6633_s29 + $0x24] ss:$8 sps:$4 sm:$0xff]   ;;  %v6924_v9 = vld [vmem:[%s6633_s29 + $0x20] ss:$8 sps:$4 sm:$0xff]  }
 0x540   : > { %v6928_v12 = vld [vmem:[%s6633_s29 + $0x34] ss:$8 sps:$4 sm:$0xff]  }
 0x541   : > { %v1451_v42 = vadd.f32 %v4865_v39, %v6869_v18  ;;  %v1484_v49 = vmax.f32 %v1448_v38, 0.0  ;;  %5717 = vmatpush3.bf16.msra.mxu0 %v6111_v3  ;;  %v6932_v38 = vld [vmem:[%s6633_s29 + $0x30] ss:$8 sps:$4 sm:$0xff]   ;;  %v6936_v39 = vld [vmem:[%s6633_s29 + $0x44] ss:$8 sps:$4 sm:$0xff]  }
 0x542   : > { %5718 = vmatprep.subr.bf16.mxu0 %v6112_v4 }
 0x543   : > { %v1485_v52 = vmax.f32 %v1451_v42, 0.0  ;;  %v6940_v42 = vld [vmem:[%s6633_s29 + $0x40] ss:$8 sps:$4 sm:$0xff]  }
 0x545   : > { %v1501_v10 = vpack.c.bf16 %v1485_v52, %v1484_v49  ;;  %5719 = vmatpush3.bf16.msra.mxu0 %v6112_v4  ;;  %v6944_v49 = vld [vmem:[%s6633_s29 + $0x54] ss:$8 sps:$4 sm:$0xff]   ;;  %v6948_v52 = vld [vmem:[%s6633_s29 + $0x50] ss:$8 sps:$4 sm:$0xff]  }
 0x547   : > { %5711 = vmatmul.mubr.bf16.gmra.mrb[124].mxu1 %v1501_v10  ;;  %v6952_v10 = vld [vmem:[%s6633_s29 + $0x64] ss:$8 sps:$4 sm:$0xff]  }
 0x548   : > { %1781 = vmatprep.mubr.bf16.mxu1 %v6904_v35 }
 0x5aa   : > { %v5684_v51 = vpop.f32.mrb[96].mxu1 }
 0x5ab   : > { %v1601_v53 = vpop.f32.mrb[97].mxu1 }
 0x5ac   : > { %v5685_v55 = vpop.f32.mrb[98].mxu1 }
 0x5ad   : > { %v1729_v57 = vpack.c.bf16 %v5685_v55, %v5684_v51  ;;  %v1604_v50 = vpop.f32.mrb[99].mxu1  ;;  %v6956_v51 = vld [vmem:[%s6633_s29 + $0x60] ss:$8 sps:$4 sm:$0xff]   ;;  %v6964_v55 = vld [vmem:[%s6633_s29 + $0x70] ss:$8 sps:$4 sm:$0xff]  }
 0x5ae   : > { %v1728_v24 = vpack.c.bf16 %v1604_v50, %v1601_v53  ;;  %v6960_v53 = vld [vmem:[%s6633_s29 + $0x74] ss:$8 sps:$4 sm:$0xff]   ;;  %v6972_v50 = vld [vmem:[%s6633_s29 + $0x80] ss:$8 sps:$4 sm:$0xff]  }
 0x5ba   : > { %v5688_v43 = vpop.f32.mrb[100].mxu1 }
 0x5bb   : > { %v1617_v11 = vpop.f32.mrb[101].mxu1 }
 0x5bc   : > { %v5689_v13 = vpop.f32.mrb[102].mxu1 }
 0x5bd   : > { %v1731_v14 = vpack.c.bf16 %v5689_v13, %v5688_v43  ;;  %v1620_v15 = vpop.f32.mrb[103].mxu1  ;;  %v6980_v43 = vld [vmem:[%s6633_s29 + $0x90] ss:$8 sps:$4 sm:$0xff]   ;;  %v6988_v13 = vld [vmem:[%s6633_s29 + $0xa0] ss:$8 sps:$4 sm:$0xff]  }
 0x5be   : > { %v1730_v18 = vpack.c.bf16 %v1620_v15, %v1617_v11  ;;  %v6984_v11 = vld [vmem:[%s6633_s29 + $0xa4] ss:$8 sps:$4 sm:$0xff]   ;;  %v6113_v15 = vld [vmem:[#allocation7 + $0xd8] sm:$0xff]  }
 0x5bf   : > { %5720 = vmatprep.subr.bf16.mxu0 %v6113_v15 }
 0x5c0   : > { %5721 = vmatpush3.bf16.msra.mxu0 %v6113_v15  ;;  %v6119_v15 = vld [vmem:[#allocation7 + $0x108] sm:$0xff]  }
 0x5ca   : > { %v5692_v16 = vpop.f32.mrb[104].mxu1 }
 0x5cb   : > { %v1633_v17 = vpop.f32.mrb[105].mxu1 }
 0x5cc   : > { %v5693_v19 = vpop.f32.mrb[106].mxu1 }
 0x5cd   : > { %v1733_v20 = vpack.c.bf16 %v5693_v19, %v5692_v16  ;;  %v1636_v21 = vpop.f32.mrb[107].mxu1  ;;  %v6996_v16 = vld [vmem:[%s6633_s29 + $0xb0] ss:$8 sps:$4 sm:$0xff]   ;;  %v6115_v19 = vld [vmem:[#allocation7 + $0xe8] sm:$0xff]  }
 0x5ce   : > { %v1732_v22 = vpack.c.bf16 %v1636_v21, %v1633_v17  ;;  %v7000_v17 = vld [vmem:[%s6633_s29 + $0xc4] ss:$8 sps:$4 sm:$0xff]   ;;  %v7004_v21 = vld [vmem:[%s6633_s29 + $0xc0] ss:$8 sps:$4 sm:$0xff]  }
 0x5da   : > { %v5696_v23 = vpop.f32.mrb[108].mxu1 }
 0x5db   : > { %v1649_v25 = vpop.f32.mrb[109].mxu1 }
 0x5dc   : > { %v5697_v26 = vpop.f32.mrb[110].mxu1 }
 0x5dd   : > { %v1735_v27 = vpack.c.bf16 %v5697_v26, %v5696_v23  ;;  %v1652_v28 = vpop.f32.mrb[111].mxu1  ;;  %v6117_v23 = vld [vmem:[#allocation7 + $0xf8] sm:$0xff]   ;;  %v7016_v26 = vld [vmem:[%s6633_s29 + $0xe4] ss:$8 sps:$4 sm:$0xff]  }
 0x5de   : > { %v1734_v29 = vpack.c.bf16 %v1652_v28, %v1649_v25  ;;  %v7012_v25 = vld [vmem:[%s6633_s29 + $0xd0] ss:$8 sps:$4 sm:$0xff]   ;;  %v7024_v28 = vld [vmem:[%s6633_s29 + $0xf4] ss:$8 sps:$4 sm:$0xff]  }
 0x5ea   : > { %v5700_v30 = vpop.f32.mrb[112].mxu1 }
 0x5eb   : > { %v1665_v31 = vpop.f32.mrb[113].mxu1 }
 0x5ec   : > { %v5701_v32 = vpop.f32.mrb[114].mxu1 }
 0x5ed   : > { %v1737_v33 = vpack.c.bf16 %v5701_v32, %v5700_v30  ;;  %v1668_v34 = vpop.f32.mrb[115].mxu1 }
 0x5ee   : > { %v1736_v36 = vpack.c.bf16 %v1668_v34, %v1665_v31  ;;  %v7035_v31 = vld [vmem:[%s7551_s3 + $0x2] ss:$0 sm:$0xff] }
 0x5f0   : > { %4890 = vmatprep.subr.bf16.mxu1 %v1736_v36 }
 0x5f1   : > { %4891 = vmatpush3.bf16.msra.mxu1 %v1728_v24  ;;  %v6976_v24 = vld [vmem:[%s6633_s29 + $0x94] ss:$8 sps:$4 sm:$0xff]  }
 0x5f2   : > { %4892 = vmatprep.subr.bf16.mxu1 %v1737_v33 }
 0x5f5   : > { %4893 = vmatpush3.bf16.msra.mxu1 %v1729_v57  ;;  %v6968_v57 = vld [vmem:[%s6633_s29 + $0x84] ss:$8 sps:$4 sm:$0xff]  }
 0x5fa   : > { %v5704_v37 = vpop.f32.mrb[116].mxu1 }
 0x5fb   : > { %v1681_v40 = vpop.f32.mrb[117].mxu1 }
 0x5fc   : > { %v5705_v41 = vpop.f32.mrb[118].mxu1 }
 0x5fd   : > { %v1739_v44 = vpack.c.bf16 %v5705_v41, %v5704_v37  ;;  %v1684_v45 = vpop.f32.mrb[119].mxu1  ;;  %v6118_v41 = vld [vmem:[#allocation7 + $0x100] sm:$0xff]  }
 0x5fe   : > { %v1738_v46 = vpack.c.bf16 %v1684_v45, %v1681_v40 }
 0x600   : > { %4894 = vmatprep.subr.bf16.mxu1 %v1738_v46 }
 0x601   : > { %4895 = vmatpush3.bf16.msra.mxu1 %v1730_v18  ;;  %v6114_v18 = vld [vmem:[#allocation7 + $0xe0] sm:$0xff]  }
 0x602   : > { %4896 = vmatprep.subr.bf16.mxu1 %v1739_v44  ;;  %5722 = vmatprep.subr.bf16.mxu0 %v6114_v18 }
 0x603   : > { %5723 = vmatpush3.bf16.msra.mxu0 %v6114_v18 }
 0x604   : > { %5724 = vmatprep.subr.bf16.mxu0 %v6115_v19 }
 0x605   : > { %4897 = vmatpush3.bf16.msra.mxu1 %v1731_v14  ;;  %v6992_v14 = vld [vmem:[%s6633_s29 + $0xb4] ss:$8 sps:$4 sm:$0xff]  }
 0x607   : > { %5725 = vmatpush3.bf16.msra.mxu0 %v6115_v19 }
 0x60a   : > { %v5708_v47 = vpop.f32.mrb[120].mxu1 }
 0x60b   : > { %v1697_v48 = vpop.f32.mrb[121].mxu1 }
 0x60c   : > { %v5709_v54 = vpop.f32.mrb[122].mxu1 }
 0x60d   : > { %v1741_v56 = vpack.c.bf16 %v5709_v54, %v5708_v47  ;;  %v1700_v58 = vpop.f32.mrb[123].mxu1 }
 0x60e   : > { %v1740_v59 = vpack.c.bf16 %v1700_v58, %v1697_v48 }
 0x610   : > { %4898 = vmatprep.subr.bf16.mxu1 %v1740_v59 }
 0x611   : > { %4899 = vmatpush3.bf16.msra.mxu1 %v1732_v22  ;;  %v7008_v22 = vld [vmem:[%s6633_s29 + $0xd4] ss:$8 sps:$4 sm:$0xff]  }
 0x612   : > { %4900 = vmatprep.subr.bf16.mxu1 %v1741_v56 }
 0x615   : > { %4901 = vmatpush3.bf16.msra.mxu1 %v1733_v20  ;;  %v6116_v20 = vld [vmem:[#allocation7 + $0xf0] sm:$0xff]  }
 0x616   : > { %5726 = vmatprep.subr.bf16.mxu0 %v6116_v20 }
 0x617   : > { %5727 = vmatpush3.bf16.msra.mxu0 %v6116_v20 }
 0x618   : > { %5728 = vmatprep.subr.bf16.mxu0 %v6117_v23 }
 0x61a   : > { %v5712_v60 = vpop.f32.mrb[124].mxu1 }
 0x61b   : > { %v1713_v61 = vpop.f32.mrb[125].mxu1  ;;  %5729 = vmatpush3.bf16.msra.mxu0 %v6117_v23 }
 0x61c   : > { %v5713_v62 = vpop.f32.mrb[126].mxu1  ;;  %5762 = vmatprep.subr.bf16.mxu0 %v6118_v41 }
 0x61d   : > { %v1743_v63 = vpack.c.bf16 %v5713_v62, %v5712_v60  ;;  %v1716_v0 = vpop.f32.mrb[127].mxu1 }
 0x61e   : > { %v1742_v1 = vpack.c.bf16 %v1716_v0, %v1713_v61 }
 0x620   : > { %4902 = vmatprep.subr.bf16.mxu1 %v1742_v1 }
 0x621   : > { %4903 = vmatpush3.bf16.msra.mxu1 %v1734_v29  ;;  %v7028_v29 = vld [vmem:[%s6633_s29 + $0xf0] ss:$8 sps:$4 sm:$0xff]  }
 0x622   : > { %4904 = vmatprep.subr.bf16.mxu1 %v1743_v63 }
 0x625   : > { %4905 = vmatpush3.bf16.msra.mxu1 %v1735_v27  ;;  %v7020_v27 = vld [vmem:[%s6633_s29 + $0xe0] ss:$8 sps:$4 sm:$0xff]  }
 0x628   : > { %1782 = vmatmul.mubr.bf16.vlgmr.msra.gmra.mrb[128].mxu1 %v6908_v5 }
 0x629   : > { %1789 = vmatprep.mubr.bf16.mxu1 %v6912_v6 }
 0x630   : > { %1790 = vmatmul.mubr.bf16.gmra.mrb[132].mxu1 %v6916_v7 }
 0x631   : > { %1797 = vmatprep.mubr.bf16.mxu1 %v6920_v8 }
 0x638   : > { %1798 = vmatmul.mubr.bf16.gmra.mrb[136].mxu1 %v6924_v9 }
 0x639   : > { %1805 = vmatprep.mubr.bf16.mxu1 %v6928_v12 }
 0x640   : > { %1806 = vmatmul.mubr.bf16.gmra.mrb[140].mxu1 %v6932_v38 }
 0x641   : > { %1813 = vmatprep.mubr.bf16.mxu1 %v6936_v39 }
 0x648   : > { %1814 = vmatmul.mubr.bf16.gmra.mrb[144].mxu1 %v6940_v42 }
 0x649   : > { %1821 = vmatprep.mubr.bf16.mxu1 %v6944_v49 }
 0x650   : > { %1822 = vmatmul.mubr.bf16.gmra.mrb[148].mxu1 %v6948_v52 }
 0x651   : > { %1829 = vmatprep.mubr.bf16.mxu1 %v6952_v10 }
 0x658   : > { %1830 = vmatmul.mubr.bf16.gmra.mrb[152].mxu1 %v6956_v51 }
 0x659   : > { %1837 = vmatprep.mubr.bf16.mxu1 %v6960_v53 }
 0x660   : > { %1838 = vmatmul.mubr.bf16.gmra.mrb[156].mxu1 %v6964_v55 }
 0x661   : > { %1845 = vmatprep.mubr.bf16.mxu1 %v6968_v57 }
 0x668   : > { %1846 = vmatmul.mubr.bf16.gmra.mrb[160].mxu1 %v6972_v50 }
 0x669   : > { %1853 = vmatprep.mubr.bf16.mxu1 %v6976_v24 }
 0x670   : > { %1854 = vmatmul.mubr.bf16.gmra.mrb[164].mxu1 %v6980_v43 }
 0x671   : > { %1861 = vmatprep.mubr.bf16.mxu1 %v6984_v11 }
 0x678   : > { %1862 = vmatmul.mubr.bf16.gmra.mrb[168].mxu1 %v6988_v13 }
 0x679   : > { %1869 = vmatprep.mubr.bf16.mxu1 %v6992_v14 }
 0x680   : > { %1870 = vmatmul.mubr.bf16.gmra.mrb[172].mxu1 %v6996_v16 }
 0x681   : > { %1877 = vmatprep.mubr.bf16.mxu1 %v7000_v17 }
 0x688   : > { %1878 = vmatmul.mubr.bf16.gmra.mrb[176].mxu1 %v7004_v21 }
 0x689   : > { %1885 = vmatprep.mubr.bf16.mxu1 %v7008_v22 }
 0x690   : > { %1886 = vmatmul.mubr.bf16.gmra.mrb[180].mxu1 %v7012_v25 }
 0x691   : > { %1893 = vmatprep.mubr.bf16.mxu1 %v7016_v26 }
 0x698   : > { %1894 = vmatmul.mubr.bf16.gmra.mrb[184].mxu1 %v7020_v27 }
 0x699   : > { %1901 = vmatprep.mubr.bf16.mxu1 %v7024_v28 }
 0x6a0   : > { %1902 = vmatmul.mubr.bf16.gmra.mrb[188].mxu1 %v7028_v29 }
 0x6a1   : > { %2484 = vmatprep.mubr.bf16.mxu1 %v6904_v35 }
 0x6fb   : > { %v4906_v30 = vpop.f32.mrb[128].mxu1 }
 0x6fc   : > { %v4907_v32 = vpop.f32.mrb[129].mxu1 }
 0x6fd   : > { %v4908_v33 = vadd.f32 %v4907_v32, %v4906_v30  ;;  %v4909_v34 = vpop.f32.mrb[130].mxu1  ;;  %v6120_v30 = vld [vmem:[#allocation7 + $0x110] sm:$0xff]  }
 0x6fe   : > { %v4910_v36 = vpop.f32.mrb[131].mxu1 }
 0x6ff   : > { %v1784_v37 = vadd.f32 %v4908_v33, %v7035_v31  ;;  %v4911_v40 = vadd.f32 %v4910_v36, %v4909_v34 }
 0x701   : > { %v1787_v44 = vadd.f32 %v4911_v40, %v7035_v31  ;;  %v1910_v45 = vmax.f32 %v1784_v37, 0.0 }
 0x703   : > { %v1911_v46 = vmax.f32 %v1787_v44, 0.0  ;;  %v4912_v35 = vpop.f32.mrb[132].mxu1 }
 0x704   : > { %v4913_v47 = vpop.f32.mrb[133].mxu1 }
 0x705   : > { %v4914_v48 = vadd.f32 %v4913_v47, %v4912_v35  ;;  %v4915_v54 = vpop.f32.mrb[134].mxu1  ;;  %v1942_v56 = vpack.c.bf16 %v1911_v46, %v1910_v45  ;;  %v6121_v45 = vld [vmem:[#allocation7 + $0x118] sm:$0xff]  }
 0x706   : > { %v4916_v58 = vpop.f32.mrb[135].mxu1 }
 0x707   : > { %v1792_v59 = vadd.f32 %v4914_v48, %v7035_v31  ;;  %v4917_v60 = vadd.f32 %v4916_v58, %v4915_v54  ;;  %5730 = vmatprep.mubr.bf16.mxu0 %v1942_v56  ;;  %v6122_v48 = vld [vmem:[#allocation7 + $0x120] sm:$0xff]  }
 0x709   : > { %v1795_v61 = vadd.f32 %v4917_v60, %v7035_v31  ;;  %v1912_v62 = vmax.f32 %v1792_v59, 0.0 }
 0x70b   : > { %v1913_v63 = vmax.f32 %v1795_v61, 0.0  ;;  %v4918_v0 = vpop.f32.mrb[136].mxu1 }
 0x70c   : > { %v4919_v1 = vpop.f32.mrb[137].mxu1 }
 0x70d   : > { %v1943_v2 = vpack.c.bf16 %v1913_v63, %v1912_v62  ;;  %v4920_v3 = vadd.f32 %v4919_v1, %v4918_v0  ;;  %v4921_v4 = vpop.f32.mrb[138].mxu1  ;;  %v6123_v63 = vld [vmem:[#allocation7 + $0x128] sm:$0xff]  }
 0x70e   : > { %v4922_v18 = vpop.f32.mrb[139].mxu1 }
 0x70f   : > { %v1800_v19 = vadd.f32 %v4920_v3, %v7035_v31  ;;  %v4923_v20 = vadd.f32 %v4922_v18, %v4921_v4  ;;  %5731 = vmatmul.mubr.bf16.vlgmr.msra.gmra.mrb[96].mxu0 %v1943_v2 }
 0x710   : > { %5763 = vmatpush3.bf16.msra.mxu0 %v6118_v41 }
 0x711   : > { %v1803_v23 = vadd.f32 %v4923_v20, %v7035_v31  ;;  %5764 = vmatprep.subr.bf16.mxu0 %v6119_v15  ;;  %v1914_v32 = vmax.f32 %v1800_v19, 0.0 }
 0x713   : > { %v1915_v33 = vmax.f32 %v1803_v23, 0.0  ;;  %v4924_v34 = vpop.f32.mrb[140].mxu1 }
 0x714   : > { %v4925_v36 = vpop.f32.mrb[141].mxu1  ;;  %5765 = vmatpush3.bf16.msra.mxu0 %v6119_v15 }
 0x715   : > { %v4926_v37 = vadd.f32 %v4925_v36, %v4924_v34  ;;  %v4927_v40 = vpop.f32.mrb[142].mxu1  ;;  %v1944_v44 = vpack.c.bf16 %v1915_v33, %v1914_v32  ;;  %5766 = vmatprep.subr.bf16.mxu0 %v6120_v30 }
 0x716   : > { %v4928_v46 = vpop.f32.mrb[143].mxu1 }
 0x717   : > { %v1808_v35 = vadd.f32 %v4926_v37, %v7035_v31  ;;  %v4929_v47 = vadd.f32 %v4928_v46, %v4927_v40  ;;  %5734 = vmatprep.mubr.bf16.mxu0 %v1944_v44 }
 0x718   : > { %5767 = vmatpush3.bf16.msra.mxu0 %v6120_v30 }
 0x719   : > { %v1811_v41 = vadd.f32 %v4929_v47, %v7035_v31  ;;  %5768 = vmatprep.subr.bf16.mxu0 %v6121_v45  ;;  %v1916_v54 = vmax.f32 %v1808_v35, 0.0 }
 0x71b   : > { %v1917_v56 = vmax.f32 %v1811_v41, 0.0  ;;  %v4930_v58 = vpop.f32.mrb[144].mxu1 }
 0x71c   : > { %v4931_v59 = vpop.f32.mrb[145].mxu1  ;;  %5769 = vmatpush3.bf16.msra.mxu0 %v6121_v45 }
 0x71d   : > { %v4932_v60 = vadd.f32 %v4931_v59, %v4930_v58  ;;  %v4933_v61 = vpop.f32.mrb[146].mxu1  ;;  %v1945_v62 = vpack.c.bf16 %v1917_v56, %v1916_v54  ;;  %5770 = vmatprep.subr.bf16.mxu0 %v6122_v48 }
 0x71e   : > { %v4934_v0 = vpop.f32.mrb[147].mxu1 }
 0x71f   : > { %v1816_v1 = vadd.f32 %v4932_v60, %v7035_v31  ;;  %v4935_v2 = vadd.f32 %v4934_v0, %v4933_v61  ;;  %5735 = vmatmul.mubr.bf16.gmra.mrb[100].mxu0 %v1945_v62 }
 0x720   : > { %5771 = vmatpush3.bf16.msra.mxu0 %v6122_v48 }
 0x721   : > { %v1819_v3 = vadd.f32 %v4935_v2, %v7035_v31  ;;  %5772 = vmatprep.subr.bf16.mxu0 %v6123_v63  ;;  %v1918_v4 = vmax.f32 %v1816_v1, 0.0 }
 0x723   : > { %v1919_v15 = vmax.f32 %v1819_v3, 0.0  ;;  %v4936_v18 = vpop.f32.mrb[148].mxu1 }
 0x724   : > { %v4937_v19 = vpop.f32.mrb[149].mxu1  ;;  %5773 = vmatpush3.bf16.msra.mxu0 %v6123_v63 }
 0x725   : > { %v4938_v20 = vadd.f32 %v4937_v19, %v4936_v18  ;;  %v4939_v23 = vpop.f32.mrb[150].mxu1  ;;  %v1946_v30 = vpack.c.bf16 %v1919_v15, %v1918_v4 }
 0x726   : > { %v4940_v32 = vpop.f32.mrb[151].mxu1 }
 0x727   : > { %v1824_v33 = vadd.f32 %v4938_v20, %v7035_v31  ;;  %v4941_v34 = vadd.f32 %v4940_v32, %v4939_v23  ;;  %5738 = vmatprep.mubr.bf16.mxu0 %v1946_v30 }
 0x729   : > { %v1827_v36 = vadd.f32 %v4941_v34, %v7035_v31  ;;  %v1920_v37 = vmax.f32 %v1824_v33, 0.0 }
 0x72b   : > { %v1921_v40 = vmax.f32 %v1827_v36, 0.0  ;;  %v4942_v44 = vpop.f32.mrb[152].mxu1 }
 0x72c   : > { %v4943_v45 = vpop.f32.mrb[153].mxu1 }
 0x72d   : > { %v4944_v46 = vadd.f32 %v4943_v45, %v4942_v44  ;;  %v4945_v35 = vpop.f32.mrb[154].mxu1  ;;  %v1947_v47 = vpack.c.bf16 %v1921_v40, %v1920_v37 }
 0x72e   : > { %v4946_v41 = vpop.f32.mrb[155].mxu1 }
 0x72f   : > { %v1832_v48 = vadd.f32 %v4944_v46, %v7035_v31  ;;  %v4947_v54 = vadd.f32 %v4946_v41, %v4945_v35  ;;  %5739 = vmatmul.mubr.bf16.gmra.mrb[104].mxu0 %v1947_v47 }
 0x731   : > { %v1835_v56 = vadd.f32 %v4947_v54, %v7035_v31  ;;  %v1922_v58 = vmax.f32 %v1832_v48, 0.0 }
 0x733   : > { %v1923_v59 = vmax.f32 %v1835_v56, 0.0  ;;  %v4948_v60 = vpop.f32.mrb[156].mxu1 }
 0x734   : > { %v4949_v61 = vpop.f32.mrb[157].mxu1 }
 0x735   : > { %v4950_v62 = vadd.f32 %v4949_v61, %v4948_v60  ;;  %v4951_v63 = vpop.f32.mrb[158].mxu1  ;;  %v1948_v0 = vpack.c.bf16 %v1923_v59, %v1922_v58 }
 0x736   : > { %v4952_v1 = vpop.f32.mrb[159].mxu1 }
 0x737   : > { %v1840_v2 = vadd.f32 %v4950_v62, %v7035_v31  ;;  %v4953_v3 = vadd.f32 %v4952_v1, %v4951_v63  ;;  %5742 = vmatprep.mubr.bf16.mxu0 %v1948_v0 }
 0x739   : > { %v1843_v4 = vadd.f32 %v4953_v3, %v7035_v31  ;;  %v1924_v15 = vmax.f32 %v1840_v2, 0.0 }
 0x73b   : > { %v1925_v18 = vmax.f32 %v1843_v4, 0.0  ;;  %v4954_v19 = vpop.f32.mrb[160].mxu1 }
 0x73c   : > { %v4955_v20 = vpop.f32.mrb[161].mxu1 }
 0x73d   : > { %v4956_v23 = vadd.f32 %v4955_v20, %v4954_v19  ;;  %v4957_v30 = vpop.f32.mrb[162].mxu1  ;;  %v1949_v32 = vpack.c.bf16 %v1925_v18, %v1924_v15 }
 0x73e   : > { %v4958_v33 = vpop.f32.mrb[163].mxu1 }
 0x73f   : > { %v1848_v34 = vadd.f32 %v4956_v23, %v7035_v31  ;;  %v4959_v36 = vadd.f32 %v4958_v33, %v4957_v30  ;;  %5743 = vmatmul.mubr.bf16.gmra.mrb[108].mxu0 %v1949_v32 }
 0x741   : > { %v1851_v37 = vadd.f32 %v4959_v36, %v7035_v31  ;;  %v1926_v40 = vmax.f32 %v1848_v34, 0.0 }
 0x743   : > { %v1927_v44 = vmax.f32 %v1851_v37, 0.0  ;;  %v4960_v45 = vpop.f32.mrb[164].mxu1 }
 0x744   : > { %v4961_v46 = vpop.f32.mrb[165].mxu1 }
 0x745   : > { %v4962_v35 = vadd.f32 %v4961_v46, %v4960_v45  ;;  %v4963_v47 = vpop.f32.mrb[166].mxu1  ;;  %v1950_v41 = vpack.c.bf16 %v1927_v44, %v1926_v40 }
 0x746   : > { %v4964_v48 = vpop.f32.mrb[167].mxu1 }
 0x747   : > { %v1856_v54 = vadd.f32 %v4962_v35, %v7035_v31  ;;  %v4965_v56 = vadd.f32 %v4964_v48, %v4963_v47  ;;  %5746 = vmatprep.mubr.bf16.mxu0 %v1950_v41 }
 0x749   : > { %v1859_v58 = vadd.f32 %v4965_v56, %v7035_v31  ;;  %v1928_v59 = vmax.f32 %v1856_v54, 0.0 }
 0x74b   : > { %v1929_v60 = vmax.f32 %v1859_v58, 0.0  ;;  %v4966_v61 = vpop.f32.mrb[168].mxu1 }
 0x74c   : > { %v4967_v62 = vpop.f32.mrb[169].mxu1 }
 0x74d   : > { %v1951_v63 = vpack.c.bf16 %v1929_v60, %v1928_v59  ;;  %v4968_v0 = vadd.f32 %v4967_v62, %v4966_v61  ;;  %v4969_v1 = vpop.f32.mrb[170].mxu1  ;;  %v6124_v60 = vld [vmem:[#allocation7 + $0x130] sm:$0xff]  }
 0x74e   : > { %v4970_v2 = vpop.f32.mrb[171].mxu1  ;;  %5774 = vmatprep.subr.bf16.mxu0 %v6124_v60 }
 0x74f   : > { %5747 = vmatmul.mubr.bf16.gmra.mrb[112].mxu0 %v1951_v63  ;;  %v1864_v3 = vadd.f32 %v4968_v0, %v7035_v31  ;;  %v4971_v4 = vadd.f32 %v4970_v2, %v4969_v1 }
 0x750   : > { %5775 = vmatpush3.bf16.msra.mxu0 %v6124_v60 }
 0x751   : > { %v1867_v15 = vadd.f32 %v4971_v4, %v7035_v31  ;;  %v1930_v18 = vmax.f32 %v1864_v3, 0.0  ;;  %v6125_v4 = vld [vmem:[#allocation7 + $0x138] sm:$0xff]  }
 0x752   : > { %5776 = vmatprep.subr.bf16.mxu0 %v6125_v4 }
 0x753   : > { %v1931_v19 = vmax.f32 %v1867_v15, 0.0  ;;  %v4972_v20 = vpop.f32.mrb[172].mxu1 }
 0x754   : > { %v4973_v23 = vpop.f32.mrb[173].mxu1  ;;  %5777 = vmatpush3.bf16.msra.mxu0 %v6125_v4 }
 0x755   : > { %v4974_v30 = vadd.f32 %v4973_v23, %v4972_v20  ;;  %v4975_v32 = vpop.f32.mrb[174].mxu1  ;;  %v1952_v33 = vpack.c.bf16 %v1931_v19, %v1930_v18 }
 0x756   : > { %v4976_v34 = vpop.f32.mrb[175].mxu1 }
 0x757   : > { %v1872_v36 = vadd.f32 %v4974_v30, %v7035_v31  ;;  %v4977_v37 = vadd.f32 %v4976_v34, %v4975_v32  ;;  %5750 = vmatprep.mubr.bf16.mxu0 %v1952_v33 }
 0x759   : > { %v1875_v40 = vadd.f32 %v4977_v37, %v7035_v31  ;;  %v1932_v44 = vmax.f32 %v1872_v36, 0.0 }
 0x75b   : > { %v1933_v45 = vmax.f32 %v1875_v40, 0.0  ;;  %v4978_v46 = vpop.f32.mrb[176].mxu1 }
 0x75c   : > { %v4979_v35 = vpop.f32.mrb[177].mxu1 }
 0x75d   : > { %v1953_v47 = vpack.c.bf16 %v1933_v45, %v1932_v44  ;;  %v4980_v41 = vadd.f32 %v4979_v35, %v4978_v46  ;;  %v4981_v48 = vpop.f32.mrb[178].mxu1 }
 0x75e   : > { %v4982_v54 = vpop.f32.mrb[179].mxu1 }
 0x75f   : > { %5751 = vmatmul.mubr.bf16.gmra.mrb[116].mxu0 %v1953_v47  ;;  %v1880_v56 = vadd.f32 %v4980_v41, %v7035_v31  ;;  %v4983_v58 = vadd.f32 %v4982_v54, %v4981_v48 }
 0x761   : > { %v1883_v59 = vadd.f32 %v4983_v58, %v7035_v31  ;;  %v1934_v61 = vmax.f32 %v1880_v56, 0.0 }
 0x763   : > { %v1935_v62 = vmax.f32 %v1883_v59, 0.0  ;;  %v4984_v63 = vpop.f32.mrb[180].mxu1 }
 0x764   : > { %v4985_v0 = vpop.f32.mrb[181].mxu1 }
 0x765   : > { %v4986_v1 = vadd.f32 %v4985_v0, %v4984_v63  ;;  %v4987_v2 = vpop.f32.mrb[182].mxu1  ;;  %v1954_v3 = vpack.c.bf16 %v1935_v62, %v1934_v61 }
 0x766   : > { %v4988_v15 = vpop.f32.mrb[183].mxu1 }
 0x767   : > { %v1888_v18 = vadd.f32 %v4986_v1, %v7035_v31  ;;  %v4989_v19 = vadd.f32 %v4988_v15, %v4987_v2  ;;  %5754 = vmatprep.mubr.bf16.mxu0 %v1954_v3  ;;  %v7072_v3 = vld [vmem:[%s7551_s3 + $0x3] ss:$0 sm:$0xff] }
 0x769   : > { %v1891_v20 = vadd.f32 %v4989_v19, %v7035_v31  ;;  %v1936_v23 = vmax.f32 %v1888_v18, 0.0 }
 0x76b   : > { %v1937_v30 = vmax.f32 %v1891_v20, 0.0  ;;  %v4990_v32 = vpop.f32.mrb[184].mxu1 }
 0x76c   : > { %v4991_v33 = vpop.f32.mrb[185].mxu1 }
 0x76d   : > { %v1955_v34 = vpack.c.bf16 %v1937_v30, %v1936_v23  ;;  %v4992_v36 = vadd.f32 %v4991_v33, %v4990_v32  ;;  %v4993_v37 = vpop.f32.mrb[186].mxu1 }
 0x76e   : > { %v4994_v40 = vpop.f32.mrb[187].mxu1 }
 0x76f   : > { %5755 = vmatmul.mubr.bf16.gmra.mrb[120].mxu0 %v1955_v34  ;;  %v1896_v44 = vadd.f32 %v4992_v36, %v7035_v31  ;;  %v4995_v45 = vadd.f32 %v4994_v40, %v4993_v37 }
 0x771   : > { %v1899_v46 = vadd.f32 %v4995_v45, %v7035_v31  ;;  %v1938_v35 = vmax.f32 %v1896_v44, 0.0 }
 0x773   : > { %v1939_v47 = vmax.f32 %v1899_v46, 0.0  ;;  %v4996_v41 = vpop.f32.mrb[188].mxu1 }
 0x774   : > { %v4997_v48 = vpop.f32.mrb[189].mxu1 }
 0x775   : > { %v4998_v54 = vadd.f32 %v4997_v48, %v4996_v41  ;;  %v4999_v56 = vpop.f32.mrb[190].mxu1  ;;  %v1956_v58 = vpack.c.bf16 %v1939_v47, %v1938_v35 }
 0x776   : > { %v5000_v59 = vpop.f32.mrb[191].mxu1 }
 0x777   : > { %v1904_v60 = vadd.f32 %v4998_v54, %v7035_v31  ;;  %v5001_v61 = vadd.f32 %v5000_v59, %v4999_v56  ;;  %5758 = vmatprep.mubr.bf16.mxu0 %v1956_v58 }
 0x779   : > { %v1907_v62 = vadd.f32 %v5001_v61, %v7035_v31  ;;  %v1940_v63 = vmax.f32 %v1904_v60, 0.0 }
 0x77b   : > { %v1941_v0 = vmax.f32 %v1907_v62, 0.0 }
 0x77d   : > { %v1957_v1 = vpack.c.bf16 %v1941_v0, %v1940_v63 }
 0x77f   : > { %5759 = vmatmul.mubr.bf16.gmra.mrb[124].mxu0 %v1957_v1 }
 0x7e2   : > { %v5732_v2 = vpop.f32.mrb[96].mxu0 }
 0x7e3   : > { %v2062_v4 = vpop.f32.mrb[97].mxu0  ;;  %v2071_v18 = vadd.f32 %v5732_v2, %v7072_v3 }
 0x7e4   : > { %v5733_v15 = vpop.f32.mrb[98].mxu0  ;;  %v2063_v23 = vadd.f32 %v7072_v3, %v2062_v4 }
 0x7e5   : > { %v2074_v19 = vadd.f32 %v5733_v15, %v7072_v3  ;;  %v2065_v20 = vpop.f32.mrb[99].mxu0 }
 0x7e6   : > { %v2066_v31 = vadd.f32 %v7072_v3, %v2065_v20 }
 0x7e7   : > { %v2190_v30 = vpack.c.bf16 %v2074_v19, %v2071_v18 }
 0x7e8   : > { %v2189_v32 = vpack.c.bf16 %v2066_v31, %v2063_v23 }
 0x7ea   : > { %5778 = vmatprep.mubr.bf16.mxu0 %v2189_v32 }
 0x7eb   : > { %5779 = vmatmul.mubr.bf16.vlgmr.msra.gmra.mrb[128].mxu0 %v2190_v30 }
 0x7f2   : > { %v5736_v33 = vpop.f32.mrb[100].mxu0 }
 0x7f3   : > { %v2078_v34 = vpop.f32.mrb[101].mxu0  ;;  %v2087_v37 = vadd.f32 %v5736_v33, %v7072_v3 }
 0x7f4   : > { %v5737_v36 = vpop.f32.mrb[102].mxu0  ;;  %v2079_v45 = vadd.f32 %v7072_v3, %v2078_v34 }
 0x7f5   : > { %v2090_v40 = vadd.f32 %v5737_v36, %v7072_v3  ;;  %v2081_v44 = vpop.f32.mrb[103].mxu0 }
 0x7f6   : > { %v2082_v46 = vadd.f32 %v7072_v3, %v2081_v44 }
 0x7f7   : > { %v2192_v35 = vpack.c.bf16 %v2090_v40, %v2087_v37 }
 0x7f8   : > { %v2191_v47 = vpack.c.bf16 %v2082_v46, %v2079_v45 }
 0x7fa   : > { %5782 = vmatprep.mubr.bf16.mxu0 %v2191_v47 }
 0x7fb   : > { %5783 = vmatmul.mubr.bf16.gmra.mrb[132].mxu0 %v2192_v35 }
 0x802   : > { %v5740_v41 = vpop.f32.mrb[104].mxu0 }
 0x803   : > { %v2094_v48 = vpop.f32.mrb[105].mxu0  ;;  %v2103_v56 = vadd.f32 %v5740_v41, %v7072_v3 }
 0x804   : > { %v5741_v54 = vpop.f32.mrb[106].mxu0  ;;  %v2095_v60 = vadd.f32 %v7072_v3, %v2094_v48 }
 0x805   : > { %v2106_v58 = vadd.f32 %v5741_v54, %v7072_v3  ;;  %v2097_v59 = vpop.f32.mrb[107].mxu0 }
 0x806   : > { %v2098_v61 = vadd.f32 %v7072_v3, %v2097_v59 }
 0x807   : > { %v2194_v62 = vpack.c.bf16 %v2106_v58, %v2103_v56 }
 0x808   : > { %v2193_v63 = vpack.c.bf16 %v2098_v61, %v2095_v60 }
 0x80a   : > { %5786 = vmatprep.mubr.bf16.mxu0 %v2193_v63 }
 0x80b   : > { %5787 = vmatmul.mubr.bf16.gmra.mrb[136].mxu0 %v2194_v62 }
 0x812   : > { %v5744_v0 = vpop.f32.mrb[108].mxu0 }
 0x813   : > { %v2110_v1 = vpop.f32.mrb[109].mxu0  ;;  %v2119_v4 = vadd.f32 %v5744_v0, %v7072_v3 }
 0x814   : > { %v5745_v2 = vpop.f32.mrb[110].mxu0  ;;  %v2111_v19 = vadd.f32 %v7072_v3, %v2110_v1 }
 0x815   : > { %v2122_v15 = vadd.f32 %v5745_v2, %v7072_v3  ;;  %v2113_v18 = vpop.f32.mrb[111].mxu0 }
 0x816   : > { %v2114_v20 = vadd.f32 %v7072_v3, %v2113_v18 }
 0x817   : > { %v2196_v23 = vpack.c.bf16 %v2122_v15, %v2119_v4 }
 0x818   : > { %v2195_v31 = vpack.c.bf16 %v2114_v20, %v2111_v19 }
 0x81a   : > { %5790 = vmatprep.mubr.bf16.mxu0 %v2195_v31 }
 0x81b   : > { %5791 = vmatmul.mubr.bf16.gmra.mrb[140].mxu0 %v2196_v23 }
 0x822   : > { %v5748_v30 = vpop.f32.mrb[112].mxu0 }
 0x823   : > { %v2126_v32 = vpop.f32.mrb[113].mxu0  ;;  %v2135_v34 = vadd.f32 %v5748_v30, %v7072_v3 }
 0x824   : > { %v5749_v33 = vpop.f32.mrb[114].mxu0  ;;  %v2127_v40 = vadd.f32 %v7072_v3, %v2126_v32 }
 0x825   : > { %v2138_v36 = vadd.f32 %v5749_v33, %v7072_v3  ;;  %v2129_v37 = vpop.f32.mrb[115].mxu0 }
 0x826   : > { %v2130_v44 = vadd.f32 %v7072_v3, %v2129_v37 }
 0x827   : > { %v2198_v45 = vpack.c.bf16 %v2138_v36, %v2135_v34 }
 0x828   : > { %v2197_v46 = vpack.c.bf16 %v2130_v44, %v2127_v40 }
 0x82a   : > { %5794 = vmatprep.mubr.bf16.mxu0 %v2197_v46 }
 0x82b   : > { %5795 = vmatmul.mubr.bf16.gmra.mrb[144].mxu0 %v2198_v45 }
 0x832   : > { %v5752_v35 = vpop.f32.mrb[116].mxu0 }
 0x833   : > { %v2142_v47 = vpop.f32.mrb[117].mxu0  ;;  %v2151_v48 = vadd.f32 %v5752_v35, %v7072_v3 }
 0x834   : > { %v5753_v41 = vpop.f32.mrb[118].mxu0  ;;  %v2143_v58 = vadd.f32 %v7072_v3, %v2142_v47 }
 0x835   : > { %v2154_v54 = vadd.f32 %v5753_v41, %v7072_v3  ;;  %v2145_v56 = vpop.f32.mrb[119].mxu0 }
 0x836   : > { %v2146_v59 = vadd.f32 %v7072_v3, %v2145_v56 }
 0x837   : > { %v2200_v60 = vpack.c.bf16 %v2154_v54, %v2151_v48 }
 0x838   : > { %v2199_v61 = vpack.c.bf16 %v2146_v59, %v2143_v58 }
 0x83a   : > { %5798 = vmatprep.mubr.bf16.mxu0 %v2199_v61 }
 0x83b   : > { %5799 = vmatmul.mubr.bf16.gmra.mrb[148].mxu0 %v2200_v60 }
 0x842   : > { %v5756_v62 = vpop.f32.mrb[120].mxu0 }
 0x843   : > { %v2158_v63 = vpop.f32.mrb[121].mxu0  ;;  %v2167_v1 = vadd.f32 %v5756_v62, %v7072_v3 }
 0x844   : > { %v5757_v0 = vpop.f32.mrb[122].mxu0  ;;  %v2159_v15 = vadd.f32 %v7072_v3, %v2158_v63 }
 0x845   : > { %v2170_v2 = vadd.f32 %v5757_v0, %v7072_v3  ;;  %v2161_v4 = vpop.f32.mrb[123].mxu0 }
 0x846   : > { %v2162_v18 = vadd.f32 %v7072_v3, %v2161_v4 }
 0x847   : > { %v2202_v19 = vpack.c.bf16 %v2170_v2, %v2167_v1 }
 0x848   : > { %v2201_v20 = vpack.c.bf16 %v2162_v18, %v2159_v15 }
 0x84a   : > { %5802 = vmatprep.mubr.bf16.mxu0 %v2201_v20 }
 0x84b   : > { %5803 = vmatmul.mubr.bf16.gmra.mrb[152].mxu0 %v2202_v19 }
 0x852   : > { %v5760_v23 = vpop.f32.mrb[124].mxu0 }
 0x853   : > { %v2174_v31 = vpop.f32.mrb[125].mxu0  ;;  %v2183_v32 = vadd.f32 %v5760_v23, %v7072_v3 }
 0x854   : > { %v5761_v30 = vpop.f32.mrb[126].mxu0  ;;  %v2175_v36 = vadd.f32 %v7072_v3, %v2174_v31 }
 0x855   : > { %v2186_v33 = vadd.f32 %v5761_v30, %v7072_v3  ;;  %v2177_v34 = vpop.f32.mrb[127].mxu0 }
 0x856   : > { %v2178_v37 = vadd.f32 %v7072_v3, %v2177_v34 }
 0x857   : > { %v2204_v40 = vpack.c.bf16 %v2186_v33, %v2183_v32 }
 0x858   : > { %v2203_v44 = vpack.c.bf16 %v2178_v37, %v2175_v36 }
 0x85a   : > { %5806 = vmatprep.mubr.bf16.mxu0 %v2203_v44 }
 0x85b   : > { %5807 = vmatmul.mubr.bf16.gmra.mrb[156].mxu0 %v2204_v40 }
 0x8be   : > { %v5780_v45 = vpop.f32.mrb[128].mxu0 }
 0x8bf   : > { %v2304_v46 = vpop.f32.mrb[129].mxu0 }
 0x8c0   : > { %v5781_v35 = vpop.f32.mrb[130].mxu0 }
 0x8c1   : > { %v2432_v47 = vpack.c.bf16 %v5781_v35, %v5780_v45  ;;  %v2307_v41 = vpop.f32.mrb[131].mxu0 }
 0x8c2   : > { %v2431_v48 = vpack.c.bf16 %v2307_v41, %v2304_v46 }
 0x8ce   : > { %v5784_v54 = vpop.f32.mrb[132].mxu0 }
 0x8cf   : > { %v2320_v56 = vpop.f32.mrb[133].mxu0 }
 0x8d0   : > { %v5785_v58 = vpop.f32.mrb[134].mxu0 }
 0x8d1   : > { %v2434_v59 = vpack.c.bf16 %v5785_v58, %v5784_v54  ;;  %v2323_v60 = vpop.f32.mrb[135].mxu0 }
 0x8d2   : > { %v2433_v61 = vpack.c.bf16 %v2323_v60, %v2320_v56 }
 0x8de   : > { %v5788_v62 = vpop.f32.mrb[136].mxu0 }
 0x8df   : > { %v2336_v63 = vpop.f32.mrb[137].mxu0 }
 0x8e0   : > { %v5789_v0 = vpop.f32.mrb[138].mxu0 }
 0x8e1   : > { %v2436_v3 = vpack.c.bf16 %v5789_v0, %v5788_v62  ;;  %v2339_v1 = vpop.f32.mrb[139].mxu0 }
 0x8e2   : > { %v2435_v2 = vpack.c.bf16 %v2339_v1, %v2336_v63 }
 0x8ee   : > { %v5792_v4 = vpop.f32.mrb[140].mxu0 }
 0x8ef   : > { %v2352_v15 = vpop.f32.mrb[141].mxu0 }
 0x8f0   : > { %v5793_v18 = vpop.f32.mrb[142].mxu0 }
 0x8f1   : > { %v2438_v19 = vpack.c.bf16 %v5793_v18, %v5792_v4  ;;  %v2355_v20 = vpop.f32.mrb[143].mxu0 }
 0x8f2   : > { %v2437_v23 = vpack.c.bf16 %v2355_v20, %v2352_v15  ;;  %v6127_v15 = vld [vmem:[#allocation7 + $0x148] sm:$0xff]  }
 0x8fe   : > { %v5796_v31 = vpop.f32.mrb[144].mxu0 }
 0x8ff   : > { %v2368_v30 = vpop.f32.mrb[145].mxu0 }
 0x900   : > { %v5797_v32 = vpop.f32.mrb[146].mxu0 }
 0x901   : > { %v2440_v33 = vpack.c.bf16 %v5797_v32, %v5796_v31  ;;  %v2371_v34 = vpop.f32.mrb[147].mxu0 }
 0x902   : > { %v2439_v36 = vpack.c.bf16 %v2371_v34, %v2368_v30 }
 0x904   : > { %5050 = vmatprep.subr.bf16.mxu1 %v2439_v36 }
 0x905   : > { %5051 = vmatpush3.bf16.msra.mxu1 %v2431_v48 }
 0x906   : > { %5052 = vmatprep.subr.bf16.mxu1 %v2440_v33 }
 0x909   : > { %5053 = vmatpush3.bf16.msra.mxu1 %v2432_v47 }
 0x90e   : > { %v5800_v37 = vpop.f32.mrb[148].mxu0 }
 0x90f   : > { %v2384_v40 = vpop.f32.mrb[149].mxu0 }
 0x910   : > { %v5801_v44 = vpop.f32.mrb[150].mxu0 }
 0x911   : > { %v2442_v45 = vpack.c.bf16 %v5801_v44, %v5800_v37  ;;  %v2387_v46 = vpop.f32.mrb[151].mxu0 }
 0x912   : > { %v2441_v35 = vpack.c.bf16 %v2387_v46, %v2384_v40 }
 0x914   : > { %5054 = vmatprep.subr.bf16.mxu1 %v2441_v35 }
 0x915   : > { %5055 = vmatpush3.bf16.msra.mxu1 %v2433_v61  ;;  %v6126_v61 = vld [vmem:[#allocation7 + $0x140] sm:$0xff]  }
 0x916   : > { %5056 = vmatprep.subr.bf16.mxu1 %v2442_v45  ;;  %5810 = vmatprep.subr.bf16.mxu0 %v6126_v61 }
 0x917   : > { %5811 = vmatpush3.bf16.msra.mxu0 %v6126_v61 }
 0x918   : > { %5812 = vmatprep.subr.bf16.mxu0 %v6127_v15 }
 0x919   : > { %5057 = vmatpush3.bf16.msra.mxu1 %v2434_v59  ;;  %v6128_v59 = vld [vmem:[#allocation7 + $0x150] sm:$0xff]  }
 0x91b   : > { %5813 = vmatpush3.bf16.msra.mxu0 %v6127_v15 }
 0x91c   : > { %5814 = vmatprep.subr.bf16.mxu0 %v6128_v59 }
 0x91e   : > { %v5804_v41 = vpop.f32.mrb[152].mxu0 }
 0x91f   : > { %v2400_v54 = vpop.f32.mrb[153].mxu0  ;;  %5815 = vmatpush3.bf16.msra.mxu0 %v6128_v59 }
 0x920   : > { %v5805_v56 = vpop.f32.mrb[154].mxu0 }
 0x921   : > { %v2444_v58 = vpack.c.bf16 %v5805_v56, %v5804_v41  ;;  %v2403_v60 = vpop.f32.mrb[155].mxu0 }
 0x922   : > { %v2443_v62 = vpack.c.bf16 %v2403_v60, %v2400_v54 }
 0x924   : > { %5058 = vmatprep.subr.bf16.mxu1 %v2443_v62 }
 0x925   : > { %5059 = vmatpush3.bf16.msra.mxu1 %v2435_v2 }
 0x926   : > { %5060 = vmatprep.subr.bf16.mxu1 %v2444_v58 }
 0x929   : > { %5061 = vmatpush3.bf16.msra.mxu1 %v2436_v3  ;;  %v6129_v3 = vld [vmem:[#allocation7 + $0x158] sm:$0xff]  }
 0x92a   : > { %5816 = vmatprep.subr.bf16.mxu0 %v6129_v3 }
 0x92b   : > { %5817 = vmatpush3.bf16.msra.mxu0 %v6129_v3 }
 0x92e   : > { %v5808_v47 = vpop.f32.mrb[156].mxu0 }
 0x92f   : > { %v2416_v48 = vpop.f32.mrb[157].mxu0 }
 0x930   : > { %v5809_v63 = vpop.f32.mrb[158].mxu0 }
 0x931   : > { %v2446_v0 = vpack.c.bf16 %v5809_v63, %v5808_v47  ;;  %v2419_v1 = vpop.f32.mrb[159].mxu0 }
 0x932   : > { %v2445_v4 = vpack.c.bf16 %v2419_v1, %v2416_v48 }
 0x934   : > { %5062 = vmatprep.subr.bf16.mxu1 %v2445_v4 }
 0x935   : > { %5063 = vmatpush3.bf16.msra.mxu1 %v2437_v23 }
 0x936   : > { %5064 = vmatprep.subr.bf16.mxu1 %v2446_v0 }
 0x939   : > { %5065 = vmatpush3.bf16.msra.mxu1 %v2438_v19 }
 0x93c   : > { %2485 = vmatmul.mubr.bf16.vlgmr.msra.gmra.mrb[192].mxu1 %v6908_v5  ;;  %v6130_v5 = vld [vmem:[#allocation7 + $0x160] sm:$0xff]  }
 0x93d   : > { %2492 = vmatprep.mubr.bf16.mxu1 %v6912_v6  ;;  %5818 = vmatprep.subr.bf16.mxu0 %v6130_v5  ;;  %v6131_v6 = vld [vmem:[#allocation7 + $0x168] sm:$0xff]  }
 0x93e   : > { %5819 = vmatpush3.bf16.msra.mxu0 %v6130_v5 }
 0x93f   : > { %5820 = vmatprep.subr.bf16.mxu0 %v6131_v6 }
 0x942   : > { %5821 = vmatpush3.bf16.msra.mxu0 %v6131_v6 }
 0x944   : > { %2493 = vmatmul.mubr.bf16.gmra.mrb[196].mxu1 %v6916_v7  ;;  %v6132_v7 = vld [vmem:[#allocation7 + $0x170] sm:$0xff]  }
 0x945   : > { %2500 = vmatprep.mubr.bf16.mxu1 %v6920_v8  ;;  %5822 = vmatprep.subr.bf16.mxu0 %v6132_v7  ;;  %v6133_v8 = vld [vmem:[#allocation7 + $0x178] sm:$0xff]  }
 0x946   : > { %5823 = vmatpush3.bf16.msra.mxu0 %v6132_v7 }
 0x947   : > { %5824 = vmatprep.subr.bf16.mxu0 %v6133_v8 }
 0x94a   : > { %5825 = vmatpush3.bf16.msra.mxu0 %v6133_v8 }
 0x94c   : > { %2501 = vmatmul.mubr.bf16.gmra.mrb[200].mxu1 %v6924_v9 }
 0x94d   : > { %2508 = vmatprep.mubr.bf16.mxu1 %v6928_v12  ;;  %v7140_v12 = vld [vmem:[%s7551_s3 + $0x4] ss:$0 sm:$0xff] }
 0x954   : > { %2509 = vmatmul.mubr.bf16.gmra.mrb[204].mxu1 %v6932_v38 }
 0x955   : > { %2516 = vmatprep.mubr.bf16.mxu1 %v6936_v39 }
 0x95c   : > { %2517 = vmatmul.mubr.bf16.gmra.mrb[208].mxu1 %v6940_v42 }
 0x95d   : > { %2524 = vmatprep.mubr.bf16.mxu1 %v6944_v49 }
 0x964   : > { %2525 = vmatmul.mubr.bf16.gmra.mrb[212].mxu1 %v6948_v52 }
 0x965   : > { %2532 = vmatprep.mubr.bf16.mxu1 %v6952_v10 }
 0x96c   : > { %2533 = vmatmul.mubr.bf16.gmra.mrb[216].mxu1 %v6956_v51 }
 0x96d   : > { %2540 = vmatprep.mubr.bf16.mxu1 %v6960_v53 }
 0x974   : > { %2541 = vmatmul.mubr.bf16.gmra.mrb[220].mxu1 %v6964_v55 }
 0x975   : > { %2548 = vmatprep.mubr.bf16.mxu1 %v6968_v57 }
 0x97c   : > { %2549 = vmatmul.mubr.bf16.gmra.mrb[224].mxu1 %v6972_v50 }
 0x97d   : > { %2556 = vmatprep.mubr.bf16.mxu1 %v6976_v24 }
 0x984   : > { %2557 = vmatmul.mubr.bf16.gmra.mrb[228].mxu1 %v6980_v43 }
 0x985   : > { %2564 = vmatprep.mubr.bf16.mxu1 %v6984_v11 }
 0x98c   : > { %2565 = vmatmul.mubr.bf16.gmra.mrb[232].mxu1 %v6988_v13 }
 0x98d   : > { %2572 = vmatprep.mubr.bf16.mxu1 %v6992_v14 }
 0x994   : > { %2573 = vmatmul.mubr.bf16.gmra.mrb[236].mxu1 %v6996_v16 }
 0x995   : > { %2580 = vmatprep.mubr.bf16.mxu1 %v7000_v17 }
 0x99c   : > { %2581 = vmatmul.mubr.bf16.gmra.mrb[240].mxu1 %v7004_v21 }
 0x99d   : > { %2588 = vmatprep.mubr.bf16.mxu1 %v7008_v22 }
 0x9a4   : > { %2589 = vmatmul.mubr.bf16.gmra.mrb[244].mxu1 %v7012_v25 }
 0x9a5   : > { %2596 = vmatprep.mubr.bf16.mxu1 %v7016_v26 }
 0x9ac   : > { %2597 = vmatmul.mubr.bf16.gmra.mrb[248].mxu1 %v7020_v27 }
 0x9ad   : > { %2604 = vmatprep.mubr.bf16.mxu1 %v7024_v28 }
 0x9b4   : > { %2605 = vmatmul.mubr.bf16.gmra.mrb[252].mxu1 %v7028_v29 }
 0xa0f   : > { %v5066_v9 = vpop.f32.mrb[192].mxu1 }
 0xa10   : > { %v5067_v38 = vpop.f32.mrb[193].mxu1 }
 0xa11   : > { %v5068_v39 = vadd.f32 %v5067_v38, %v5066_v9  ;;  %v5069_v42 = vpop.f32.mrb[194].mxu1 }
 0xa12   : > { %v5070_v49 = vpop.f32.mrb[195].mxu1 }
 0xa13   : > { %v2487_v52 = vadd.f32 %v5068_v39, %v7140_v12  ;;  %v5071_v10 = vadd.f32 %v5070_v49, %v5069_v42 }
 0xa15   : > { %v2490_v51 = vadd.f32 %v5071_v10, %v7140_v12  ;;  %v2613_v53 = vmax.f32 %v2487_v52, 0.0 }
 0xa17   : > { %v2614_v55 = vmax.f32 %v2490_v51, 0.0  ;;  %v5072_v57 = vpop.f32.mrb[196].mxu1 }
 0xa18   : > { %v5073_v50 = vpop.f32.mrb[197].mxu1 }
 0xa19   : > { %v5074_v24 = vadd.f32 %v5073_v50, %v5072_v57  ;;  %v5075_v43 = vpop.f32.mrb[198].mxu1  ;;  %v2645_v11 = vpack.c.bf16 %v2614_v55, %v2613_v53 }
 0xa1a   : > { %v5076_v13 = vpop.f32.mrb[199].mxu1 }
 0xa1b   : > { %v2495_v14 = vadd.f32 %v5074_v24, %v7140_v12  ;;  %v5077_v16 = vadd.f32 %v5076_v13, %v5075_v43  ;;  %5826 = vmatprep.mubr.bf16.mxu0 %v2645_v11 }
 0xa1d   : > { %v2498_v17 = vadd.f32 %v5077_v16, %v7140_v12  ;;  %v2615_v21 = vmax.f32 %v2495_v14, 0.0 }
 0xa1f   : > { %v2616_v22 = vmax.f32 %v2498_v17, 0.0  ;;  %v5078_v25 = vpop.f32.mrb[200].mxu1 }
 0xa20   : > { %v5079_v26 = vpop.f32.mrb[201].mxu1 }
 0xa21   : > { %v2646_v27 = vpack.c.bf16 %v2616_v22, %v2615_v21  ;;  %v5080_v28 = vadd.f32 %v5079_v26, %v5078_v25  ;;  %v5081_v29 = vpop.f32.mrb[202].mxu1 }
 0xa22   : > { %v5082_v2 = vpop.f32.mrb[203].mxu1 }
 0xa23   : > { %v2503_v18 = vadd.f32 %v5080_v28, %v7140_v12  ;;  %v5083_v19 = vadd.f32 %v5082_v2, %v5081_v29  ;;  %5827 = vmatmul.mubr.bf16.vlgmr.msra.gmra.mrb[160].mxu0 %v2646_v27 }
 0xa25   : > { %v2506_v20 = vadd.f32 %v5083_v19, %v7140_v12  ;;  %v2617_v23 = vmax.f32 %v2503_v18, 0.0 }
 0xa27   : > { %v2618_v31 = vmax.f32 %v2506_v20, 0.0  ;;  %v5084_v30 = vpop.f32.mrb[204].mxu1 }
 0xa28   : > { %v5085_v32 = vpop.f32.mrb[205].mxu1 }
 0xa29   : > { %v5086_v33 = vadd.f32 %v5085_v32, %v5084_v30  ;;  %v5087_v34 = vpop.f32.mrb[206].mxu1  ;;  %v2647_v36 = vpack.c.bf16 %v2618_v31, %v2617_v23 }
 0xa2a   : > { %v5088_v37 = vpop.f32.mrb[207].mxu1 }
 0xa2b   : > { %v2511_v40 = vadd.f32 %v5086_v33, %v7140_v12  ;;  %v5089_v44 = vadd.f32 %v5088_v37, %v5087_v34  ;;  %5830 = vmatprep.mubr.bf16.mxu0 %v2647_v36 }
 0xa2d   : > { %v2514_v45 = vadd.f32 %v5089_v44, %v7140_v12  ;;  %v2619_v46 = vmax.f32 %v2511_v40, 0.0 }
 0xa2f   : > { %v2620_v35 = vmax.f32 %v2514_v45, 0.0  ;;  %v5090_v41 = vpop.f32.mrb[208].mxu1 }
 0xa30   : > { %v5091_v54 = vpop.f32.mrb[209].mxu1 }
 0xa31   : > { %v5092_v56 = vadd.f32 %v5091_v54, %v5090_v41  ;;  %v5093_v58 = vpop.f32.mrb[210].mxu1  ;;  %v2648_v60 = vpack.c.bf16 %v2620_v35, %v2619_v46 }
 0xa32   : > { %v5094_v62 = vpop.f32.mrb[211].mxu1 }
 0xa33   : > { %v2519_v47 = vadd.f32 %v5092_v56, %v7140_v12  ;;  %v5095_v48 = vadd.f32 %v5094_v62, %v5093_v58  ;;  %5831 = vmatmul.mubr.bf16.gmra.mrb[164].mxu0 %v2648_v60 }
 0xa35   : > { %v2522_v63 = vadd.f32 %v5095_v48, %v7140_v12  ;;  %v2621_v0 = vmax.f32 %v2519_v47, 0.0 }
 0xa37   : > { %v2622_v1 = vmax.f32 %v2522_v63, 0.0  ;;  %v5096_v4 = vpop.f32.mrb[212].mxu1 }
 0xa38   : > { %v5097_v61 = vpop.f32.mrb[213].mxu1 }
 0xa39   : > { %v5098_v15 = vadd.f32 %v5097_v61, %v5096_v4  ;;  %v5099_v59 = vpop.f32.mrb[214].mxu1  ;;  %v2649_v3 = vpack.c.bf16 %v2622_v1, %v2621_v0 }
 0xa3a   : > { %v5100_v5 = vpop.f32.mrb[215].mxu1 }
 0xa3b   : > { %v2527_v6 = vadd.f32 %v5098_v15, %v7140_v12  ;;  %v5101_v7 = vadd.f32 %v5100_v5, %v5099_v59  ;;  %5834 = vmatprep.mubr.bf16.mxu0 %v2649_v3 }
 0xa3d   : > { %v2530_v8 = vadd.f32 %v5101_v7, %v7140_v12  ;;  %v2623_v9 = vmax.f32 %v2527_v6, 0.0 }
 0xa3f   : > { %v2624_v38 = vmax.f32 %v2530_v8, 0.0  ;;  %v5102_v39 = vpop.f32.mrb[216].mxu1 }
 0xa40   : > { %v5103_v42 = vpop.f32.mrb[217].mxu1 }
 0xa41   : > { %v5104_v49 = vadd.f32 %v5103_v42, %v5102_v39  ;;  %v5105_v52 = vpop.f32.mrb[218].mxu1  ;;  %v2650_v10 = vpack.c.bf16 %v2624_v38, %v2623_v9 }
 0xa42   : > { %v5106_v51 = vpop.f32.mrb[219].mxu1 }
 0xa43   : > { %v2535_v53 = vadd.f32 %v5104_v49, %v7140_v12  ;;  %v5107_v55 = vadd.f32 %v5106_v51, %v5105_v52  ;;  %5835 = vmatmul.mubr.bf16.gmra.mrb[168].mxu0 %v2650_v10 }
 0xa45   : > { %v2538_v57 = vadd.f32 %v5107_v55, %v7140_v12  ;;  %v2625_v50 = vmax.f32 %v2535_v53, 0.0 }
 0xa47   : > { %v2626_v24 = vmax.f32 %v2538_v57, 0.0  ;;  %v5108_v43 = vpop.f32.mrb[220].mxu1 }
 0xa48   : > { %v5109_v11 = vpop.f32.mrb[221].mxu1 }
 0xa49   : > { %v5110_v13 = vadd.f32 %v5109_v11, %v5108_v43  ;;  %v5111_v14 = vpop.f32.mrb[222].mxu1  ;;  %v2651_v16 = vpack.c.bf16 %v2626_v24, %v2625_v50 }
 0xa4a   : > { %v5112_v17 = vpop.f32.mrb[223].mxu1 }
 0xa4b   : > { %v2543_v21 = vadd.f32 %v5110_v13, %v7140_v12  ;;  %v5113_v22 = vadd.f32 %v5112_v17, %v5111_v14  ;;  %5838 = vmatprep.mubr.bf16.mxu0 %v2651_v16 }
 0xa4d   : > { %v2546_v25 = vadd.f32 %v5113_v22, %v7140_v12  ;;  %v2627_v26 = vmax.f32 %v2543_v21, 0.0 }
 0xa4f   : > { %v2628_v27 = vmax.f32 %v2546_v25, 0.0  ;;  %v5114_v28 = vpop.f32.mrb[224].mxu1 }
 0xa50   : > { %v5115_v29 = vpop.f32.mrb[225].mxu1 }
 0xa51   : > { %v5116_v2 = vadd.f32 %v5115_v29, %v5114_v28  ;;  %v5117_v18 = vpop.f32.mrb[226].mxu1  ;;  %v2652_v19 = vpack.c.bf16 %v2628_v27, %v2627_v26 }
 0xa52   : > { %v5118_v20 = vpop.f32.mrb[227].mxu1 }
 0xa53   : > { %v2551_v23 = vadd.f32 %v5116_v2, %v7140_v12  ;;  %v5119_v31 = vadd.f32 %v5118_v20, %v5117_v18  ;;  %5839 = vmatmul.mubr.bf16.gmra.mrb[172].mxu0 %v2652_v19 }
 0xa55   : > { %v2554_v30 = vadd.f32 %v5119_v31, %v7140_v12  ;;  %v2629_v32 = vmax.f32 %v2551_v23, 0.0 }
 0xa57   : > { %v2630_v33 = vmax.f32 %v2554_v30, 0.0  ;;  %v5120_v34 = vpop.f32.mrb[228].mxu1 }
 0xa58   : > { %v5121_v36 = vpop.f32.mrb[229].mxu1 }
 0xa59   : > { %v5122_v37 = vadd.f32 %v5121_v36, %v5120_v34  ;;  %v5123_v40 = vpop.f32.mrb[230].mxu1  ;;  %v2653_v44 = vpack.c.bf16 %v2630_v33, %v2629_v32 }
 0xa5a   : > { %v5124_v45 = vpop.f32.mrb[231].mxu1 }
 0xa5b   : > { %v2559_v46 = vadd.f32 %v5122_v37, %v7140_v12  ;;  %v5125_v35 = vadd.f32 %v5124_v45, %v5123_v40  ;;  %5842 = vmatprep.mubr.bf16.mxu0 %v2653_v44 }
 0xa5d   : > { %v2562_v41 = vadd.f32 %v5125_v35, %v7140_v12  ;;  %v2631_v54 = vmax.f32 %v2559_v46, 0.0 }
 0xa5f   : > { %v2632_v56 = vmax.f32 %v2562_v41, 0.0  ;;  %v5126_v58 = vpop.f32.mrb[232].mxu1 }
 0xa60   : > { %v5127_v60 = vpop.f32.mrb[233].mxu1 }
 0xa61   : > { %v2654_v62 = vpack.c.bf16 %v2632_v56, %v2631_v54  ;;  %v5128_v47 = vadd.f32 %v5127_v60, %v5126_v58  ;;  %v5129_v48 = vpop.f32.mrb[234].mxu1 }
 0xa62   : > { %v5130_v63 = vpop.f32.mrb[235].mxu1 }
 0xa63   : > { %5843 = vmatmul.mubr.bf16.gmra.mrb[176].mxu0 %v2654_v62  ;;  %v2567_v0 = vadd.f32 %v5128_v47, %v7140_v12  ;;  %v5131_v1 = vadd.f32 %v5130_v63, %v5129_v48  ;;  %v7175_v48 = vld [vmem:[%s6633_s29 + $0x4] ss:$8 sps:$4 sm:$0xff]  }
 0xa65   : > { %v2570_v4 = vadd.f32 %v5131_v1, %v7140_v12  ;;  %v2633_v61 = vmax.f32 %v2567_v0, 0.0 }
 0xa67   : > { %v2634_v15 = vmax.f32 %v2570_v4, 0.0  ;;  %v5132_v59 = vpop.f32.mrb[236].mxu1 }
 0xa68   : > { %v5133_v3 = vpop.f32.mrb[237].mxu1 }
 0xa69   : > { %v5134_v5 = vadd.f32 %v5133_v3, %v5132_v59  ;;  %v5135_v6 = vpop.f32.mrb[238].mxu1  ;;  %v2655_v7 = vpack.c.bf16 %v2634_v15, %v2633_v61 }
 0xa6a   : > { %v5136_v8 = vpop.f32.mrb[239].mxu1 }
 0xa6b   : > { %v2575_v9 = vadd.f32 %v5134_v5, %v7140_v12  ;;  %v5137_v38 = vadd.f32 %v5136_v8, %v5135_v6  ;;  %5846 = vmatprep.mubr.bf16.mxu0 %v2655_v7 }
 0xa6d   : > { %v2578_v39 = vadd.f32 %v5137_v38, %v7140_v12  ;;  %v2635_v42 = vmax.f32 %v2575_v9, 0.0 }
 0xa6f   : > { %v2636_v49 = vmax.f32 %v2578_v39, 0.0  ;;  %v5138_v52 = vpop.f32.mrb[240].mxu1 }
 0xa70   : > { %v5139_v10 = vpop.f32.mrb[241].mxu1 }
 0xa71   : > { %v2656_v51 = vpack.c.bf16 %v2636_v49, %v2635_v42  ;;  %v5140_v53 = vadd.f32 %v5139_v10, %v5138_v52  ;;  %v5141_v55 = vpop.f32.mrb[242].mxu1 }
 0xa72   : > { %v5142_v57 = vpop.f32.mrb[243].mxu1 }
 0xa73   : > { %5847 = vmatmul.mubr.bf16.gmra.mrb[180].mxu0 %v2656_v51  ;;  %v2583_v50 = vadd.f32 %v5140_v53, %v7140_v12  ;;  %v5143_v24 = vadd.f32 %v5142_v57, %v5141_v55 }
 0xa75   : > { %v2586_v43 = vadd.f32 %v5143_v24, %v7140_v12  ;;  %v2637_v11 = vmax.f32 %v2583_v50, 0.0 }
 0xa77   : > { %v2638_v13 = vmax.f32 %v2586_v43, 0.0  ;;  %v5144_v14 = vpop.f32.mrb[244].mxu1 }
 0xa78   : > { %v5145_v16 = vpop.f32.mrb[245].mxu1 }
 0xa79   : > { %v5146_v17 = vadd.f32 %v5145_v16, %v5144_v14  ;;  %v5147_v21 = vpop.f32.mrb[246].mxu1  ;;  %v2657_v22 = vpack.c.bf16 %v2638_v13, %v2637_v11 }
 0xa7a   : > { %v5148_v25 = vpop.f32.mrb[247].mxu1 }
 0xa7b   : > { %v2591_v26 = vadd.f32 %v5146_v17, %v7140_v12  ;;  %v5149_v27 = vadd.f32 %v5148_v25, %v5147_v21  ;;  %5850 = vmatprep.mubr.bf16.mxu0 %v2657_v22 }
 0xa7d   : > { %v2594_v28 = vadd.f32 %v5149_v27, %v7140_v12  ;;  %v2639_v29 = vmax.f32 %v2591_v26, 0.0 }
 0xa7f   : > { %v2640_v2 = vmax.f32 %v2594_v28, 0.0  ;;  %v5150_v18 = vpop.f32.mrb[248].mxu1 }
 0xa80   : > { %v5151_v19 = vpop.f32.mrb[249].mxu1 }
 0xa81   : > { %v2658_v20 = vpack.c.bf16 %v2640_v2, %v2639_v29  ;;  %v5152_v23 = vadd.f32 %v5151_v19, %v5150_v18  ;;  %v5153_v31 = vpop.f32.mrb[250].mxu1 }
 0xa82   : > { %v5154_v30 = vpop.f32.mrb[251].mxu1 }
 0xa83   : > { %5851 = vmatmul.mubr.bf16.gmra.mrb[184].mxu0 %v2658_v20  ;;  %v2599_v32 = vadd.f32 %v5152_v23, %v7140_v12  ;;  %v5155_v33 = vadd.f32 %v5154_v30, %v5153_v31 }
 0xa85   : > { %v2602_v34 = vadd.f32 %v5155_v33, %v7140_v12  ;;  %v2641_v36 = vmax.f32 %v2599_v32, 0.0 }
 0xa87   : > { %v2642_v37 = vmax.f32 %v2602_v34, 0.0  ;;  %v5156_v40 = vpop.f32.mrb[252].mxu1  ;;  %v6134_v34 = vld [vmem:[#allocation7 + $0x180] sm:$0xff]  }
 0xa88   : > { %v5157_v44 = vpop.f32.mrb[253].mxu1  ;;  %5858 = vmatprep.subr.bf16.mxu1 %v6134_v34 }
 0xa89   : > { %v5158_v45 = vadd.f32 %v5157_v44, %v5156_v40  ;;  %v5159_v46 = vpop.f32.mrb[254].mxu1  ;;  %v2659_v35 = vpack.c.bf16 %v2642_v37, %v2641_v36  ;;  %v6135_v36 = vld [vmem:[#allocation7 + $0x188] sm:$0xff]   ;;  %5859 = vmatpush3.bf16.msra.mxu1 %v6134_v34  ;;  %v6136_v37 = vld [vmem:[#allocation7 + $0x190] sm:$0xff]   ;;  %v6137_v44 = vld [vmem:[#allocation7 + $0x198] sm:$0xff]  }
 0xa8a   : > { %v5160_v41 = vpop.f32.mrb[255].mxu1  ;;  %5860 = vmatprep.subr.bf16.mxu1 %v6135_v36  ;;  %v7179_v40 = vld [vmem:[%s6633_s29] ss:$8 sps:$4 sm:$0xff]  }
 0xa8b   : > { %v2607_v54 = vadd.f32 %v5158_v45, %v7140_v12  ;;  %v5161_v56 = vadd.f32 %v5160_v41, %v5159_v46  ;;  %5854 = vmatprep.mubr.bf16.mxu0 %v2659_v35  ;;  %v7183_v45 = vld [vmem:[%s6633_s29 + $0x14] ss:$8 sps:$4 sm:$0xff]   ;;  %v7187_v46 = vld [vmem:[%s6633_s29 + $0x10] ss:$8 sps:$4 sm:$0xff]   ;;  %v7191_v35 = vld [vmem:[%s6633_s29 + $0x24] ss:$8 sps:$4 sm:$0xff]  }
 0xa8c   : > { %v7195_v41 = vld [vmem:[%s6633_s29 + $0x20] ss:$8 sps:$4 sm:$0xff]  }
 0xa8d   : > { %v2610_v58 = vadd.f32 %v5161_v56, %v7140_v12  ;;  %v2643_v60 = vmax.f32 %v2607_v54, 0.0  ;;  %5861 = vmatpush3.bf16.msra.mxu1 %v6135_v36  ;;  %v7199_v54 = vld [vmem:[%s6633_s29 + $0x34] ss:$8 sps:$4 sm:$0xff]   ;;  %v7203_v56 = vld [vmem:[%s6633_s29 + $0x30] ss:$8 sps:$4 sm:$0xff]  }
 0xa8e   : > { %5862 = vmatprep.subr.bf16.mxu1 %v6136_v37 }
 0xa8f   : > { %v2644_v62 = vmax.f32 %v2610_v58, 0.0  ;;  %v7207_v58 = vld [vmem:[%s6633_s29 + $0x44] ss:$8 sps:$4 sm:$0xff]  }
 0xa91   : > { %v2660_v47 = vpack.c.bf16 %v2644_v62, %v2643_v60  ;;  %5863 = vmatpush3.bf16.msra.mxu1 %v6136_v37  ;;  %v7211_v60 = vld [vmem:[%s6633_s29 + $0x40] ss:$8 sps:$4 sm:$0xff]   ;;  %v7215_v62 = vld [vmem:[%s6633_s29 + $0x54] ss:$8 sps:$4 sm:$0xff]  }
 0xa92   : > { %5864 = vmatprep.subr.bf16.mxu1 %v6137_v44 }
 0xa93   : > { %5855 = vmatmul.mubr.bf16.gmra.mrb[188].mxu0 %v2660_v47  ;;  %v7219_v47 = vld [vmem:[%s6633_s29 + $0x50] ss:$8 sps:$4 sm:$0xff]  }
 0xa94   : > { %2940 = vmatprep.mubr.bf16.mxu0 %v7175_v48 }
 0xa95   : > { %5865 = vmatpush3.bf16.msra.mxu1 %v6137_v44 }
 0xaf6   : > { %v5828_v63 = vpop.f32.mrb[160].mxu0 }
 0xaf7   : > { %v2760_v0 = vpop.f32.mrb[161].mxu0 }
 0xaf8   : > { %v5829_v1 = vpop.f32.mrb[162].mxu0 }
 0xaf9   : > { %v2888_v4 = vpack.c.bf16 %v5829_v1, %v5828_v63  ;;  %v2763_v61 = vpop.f32.mrb[163].mxu0  ;;  %v7223_v63 = vld [vmem:[%s6633_s29 + $0x64] ss:$8 sps:$4 sm:$0xff]   ;;  %v7231_v1 = vld [vmem:[%s6633_s29 + $0x74] ss:$8 sps:$4 sm:$0xff]  }
 0xafa   : > { %v2887_v15 = vpack.c.bf16 %v2763_v61, %v2760_v0  ;;  %v7227_v0 = vld [vmem:[%s6633_s29 + $0x60] ss:$8 sps:$4 sm:$0xff]   ;;  %v7239_v61 = vld [vmem:[%s6633_s29 + $0x84] ss:$8 sps:$4 sm:$0xff]  }
 0xb06   : > { %v5832_v59 = vpop.f32.mrb[164].mxu0 }
 0xb07   : > { %v2776_v3 = vpop.f32.mrb[165].mxu0 }
 0xb08   : > { %v5833_v5 = vpop.f32.mrb[166].mxu0 }
 0xb09   : > { %v2890_v6 = vpack.c.bf16 %v5833_v5, %v5832_v59  ;;  %v2779_v7 = vpop.f32.mrb[167].mxu0  ;;  %v7247_v59 = vld [vmem:[%s6633_s29 + $0x94] ss:$8 sps:$4 sm:$0xff]   ;;  %v7255_v5 = vld [vmem:[%s6633_s29 + $0xa4] ss:$8 sps:$4 sm:$0xff]  }
 0xb0a   : > { %v2889_v12 = vpack.c.bf16 %v2779_v7, %v2776_v3  ;;  %v7251_v3 = vld [vmem:[%s6633_s29 + $0x90] ss:$8 sps:$4 sm:$0xff]   ;;  %v7263_v7 = vld [vmem:[%s6633_s29 + $0xb4] ss:$8 sps:$4 sm:$0xff]  }
 0xb16   : > { %v5836_v8 = vpop.f32.mrb[168].mxu0 }
 0xb17   : > { %v2792_v9 = vpop.f32.mrb[169].mxu0 }
 0xb18   : > { %v5837_v38 = vpop.f32.mrb[170].mxu0 }
 0xb19   : > { %v2892_v39 = vpack.c.bf16 %v5837_v38, %v5836_v8  ;;  %v2795_v42 = vpop.f32.mrb[171].mxu0  ;;  %v7267_v8 = vld [vmem:[%s6633_s29 + $0xb0] ss:$8 sps:$4 sm:$0xff]   ;;  %v6139_v38 = vld [vmem:[#allocation7 + $0x1a8] sm:$0xff]  }
 0xb1a   : > { %v2891_v49 = vpack.c.bf16 %v2795_v42, %v2792_v9  ;;  %v7271_v9 = vld [vmem:[%s6633_s29 + $0xc4] ss:$8 sps:$4 sm:$0xff]   ;;  %v7275_v42 = vld [vmem:[%s6633_s29 + $0xc0] ss:$8 sps:$4 sm:$0xff]  }
 0xb26   : > { %v5840_v52 = vpop.f32.mrb[172].mxu0 }
 0xb27   : > { %v2808_v10 = vpop.f32.mrb[173].mxu0 }
 0xb28   : > { %v5841_v51 = vpop.f32.mrb[174].mxu0 }
 0xb29   : > { %v2894_v53 = vpack.c.bf16 %v5841_v51, %v5840_v52  ;;  %v2811_v55 = vpop.f32.mrb[175].mxu0  ;;  %v6141_v52 = vld [vmem:[#allocation7 + $0x1b8] sm:$0xff]   ;;  %v7287_v51 = vld [vmem:[%s6633_s29 + $0xe4] ss:$8 sps:$4 sm:$0xff]  }
 0xb2a   : > { %v2893_v57 = vpack.c.bf16 %v2811_v55, %v2808_v10  ;;  %v7283_v10 = vld [vmem:[%s6633_s29 + $0xd0] ss:$8 sps:$4 sm:$0xff]   ;;  %v7295_v55 = vld [vmem:[%s6633_s29 + $0xf4] ss:$8 sps:$4 sm:$0xff]  }
 0xb36   : > { %v5844_v50 = vpop.f32.mrb[176].mxu0 }
 0xb37   : > { %v2824_v24 = vpop.f32.mrb[177].mxu0 }
 0xb38   : > { %v5845_v43 = vpop.f32.mrb[178].mxu0 }
 0xb39   : > { %v2896_v11 = vpack.c.bf16 %v5845_v43, %v5844_v50  ;;  %v2827_v13 = vpop.f32.mrb[179].mxu0 }
 0xb3a   : > { %v2895_v14 = vpack.c.bf16 %v2827_v13, %v2824_v24  ;;  %v7305_v24 = vld [vmem:[%s7551_s3 + $0x5] ss:$0 sm:$0xff] }
 0xb3c   : > { %5186 = vmatprep.subr.bf16.mxu0 %v2895_v14 }
 0xb3d   : > { %5187 = vmatpush3.bf16.msra.mxu0 %v2887_v15  ;;  %v7243_v15 = vld [vmem:[%s6633_s29 + $0x80] ss:$8 sps:$4 sm:$0xff]  }
 0xb3e   : > { %5188 = vmatprep.subr.bf16.mxu0 %v2896_v11 }
 0xb41   : > { %5189 = vmatpush3.bf16.msra.mxu0 %v2888_v4  ;;  %v7235_v4 = vld [vmem:[%s6633_s29 + $0x70] ss:$8 sps:$4 sm:$0xff]  }
 0xb46   : > { %v5848_v16 = vpop.f32.mrb[180].mxu0 }
 0xb47   : > { %v2840_v17 = vpop.f32.mrb[181].mxu0 }
 0xb48   : > { %v5849_v21 = vpop.f32.mrb[182].mxu0 }
 0xb49   : > { %v2898_v22 = vpack.c.bf16 %v5849_v21, %v5848_v16  ;;  %v2843_v25 = vpop.f32.mrb[183].mxu0 }
 0xb4a   : > { %v2897_v26 = vpack.c.bf16 %v2843_v25, %v2840_v17 }
 0xb4c   : > { %5190 = vmatprep.subr.bf16.mxu0 %v2897_v26 }
 0xb4d   : > { %5191 = vmatpush3.bf16.msra.mxu0 %v2889_v12  ;;  %v6138_v12 = vld [vmem:[#allocation7 + $0x1a0] sm:$0xff]  }
 0xb4e   : > { %5192 = vmatprep.subr.bf16.mxu0 %v2898_v22  ;;  %5866 = vmatprep.subr.bf16.mxu1 %v6138_v12 }
 0xb4f   : > { %5867 = vmatpush3.bf16.msra.mxu1 %v6138_v12 }
 0xb50   : > { %5868 = vmatprep.subr.bf16.mxu1 %v6139_v38 }
 0xb51   : > { %5193 = vmatpush3.bf16.msra.mxu0 %v2890_v6  ;;  %v7259_v6 = vld [vmem:[%s6633_s29 + $0xa0] ss:$8 sps:$4 sm:$0xff]  }
 0xb53   : > { %5869 = vmatpush3.bf16.msra.mxu1 %v6139_v38 }
 0xb56   : > { %v5852_v27 = vpop.f32.mrb[184].mxu0 }
 0xb57   : > { %v2856_v28 = vpop.f32.mrb[185].mxu0 }
 0xb58   : > { %v5853_v29 = vpop.f32.mrb[186].mxu0 }
 0xb59   : > { %v2900_v2 = vpack.c.bf16 %v5853_v29, %v5852_v27  ;;  %v2859_v18 = vpop.f32.mrb[187].mxu0 }
 0xb5a   : > { %v2899_v19 = vpack.c.bf16 %v2859_v18, %v2856_v28 }
 0xb5c   : > { %5194 = vmatprep.subr.bf16.mxu0 %v2899_v19 }
 0xb5d   : > { %5195 = vmatpush3.bf16.msra.mxu0 %v2891_v49  ;;  %v7279_v49 = vld [vmem:[%s6633_s29 + $0xd4] ss:$8 sps:$4 sm:$0xff]  }
 0xb5e   : > { %5196 = vmatprep.subr.bf16.mxu0 %v2900_v2 }
 0xb61   : > { %5197 = vmatpush3.bf16.msra.mxu0 %v2892_v39  ;;  %v6140_v39 = vld [vmem:[#allocation7 + $0x1b0] sm:$0xff]  }
 0xb62   : > { %5870 = vmatprep.subr.bf16.mxu1 %v6140_v39 }
 0xb63   : > { %5871 = vmatpush3.bf16.msra.mxu1 %v6140_v39 }
 0xb64   : > { %5872 = vmatprep.subr.bf16.mxu1 %v6141_v52 }
 0xb66   : > { %v5856_v20 = vpop.f32.mrb[188].mxu0 }
 0xb67   : > { %v2872_v23 = vpop.f32.mrb[189].mxu0  ;;  %5873 = vmatpush3.bf16.msra.mxu1 %v6141_v52 }
 0xb68   : > { %v5857_v31 = vpop.f32.mrb[190].mxu0 }
 0xb69   : > { %v2902_v30 = vpack.c.bf16 %v5857_v31, %v5856_v20  ;;  %v2875_v32 = vpop.f32.mrb[191].mxu0 }
 0xb6a   : > { %v2901_v33 = vpack.c.bf16 %v2875_v32, %v2872_v23 }
 0xb6c   : > { %5198 = vmatprep.subr.bf16.mxu0 %v2901_v33 }
 0xb6d   : > { %5199 = vmatpush3.bf16.msra.mxu0 %v2893_v57  ;;  %v7299_v57 = vld [vmem:[%s6633_s29 + $0xf0] ss:$8 sps:$4 sm:$0xff]  }
 0xb6e   : > { %5200 = vmatprep.subr.bf16.mxu0 %v2902_v30 }
 0xb71   : > { %5201 = vmatpush3.bf16.msra.mxu0 %v2894_v53  ;;  %v7291_v53 = vld [vmem:[%s6633_s29 + $0xe0] ss:$8 sps:$4 sm:$0xff]  }
 0xb74   : > { %2941 = vmatmul.mubr.bf16.vlgmr.msra.gmra.mrb[192].mxu0 %v7179_v40 }
 0xb75   : > { %2948 = vmatprep.mubr.bf16.mxu0 %v7183_v45 }
 0xb7c   : > { %2949 = vmatmul.mubr.bf16.gmra.mrb[196].mxu0 %v7187_v46 }
 0xb7d   : > { %2956 = vmatprep.mubr.bf16.mxu0 %v7191_v35 }
 0xb84   : > { %2957 = vmatmul.mubr.bf16.gmra.mrb[200].mxu0 %v7195_v41 }
 0xb85   : > { %2964 = vmatprep.mubr.bf16.mxu0 %v7199_v54 }
 0xb8c   : > { %2965 = vmatmul.mubr.bf16.gmra.mrb[204].mxu0 %v7203_v56 }
 0xb8d   : > { %2972 = vmatprep.mubr.bf16.mxu0 %v7207_v58 }
 0xb94   : > { %2973 = vmatmul.mubr.bf16.gmra.mrb[208].mxu0 %v7211_v60 }
 0xb95   : > { %2980 = vmatprep.mubr.bf16.mxu0 %v7215_v62 }
 0xb9c   : > { %2981 = vmatmul.mubr.bf16.gmra.mrb[212].mxu0 %v7219_v47 }
 0xb9d   : > { %2988 = vmatprep.mubr.bf16.mxu0 %v7223_v63 }
 0xba4   : > { %2989 = vmatmul.mubr.bf16.gmra.mrb[216].mxu0 %v7227_v0 }
 0xba5   : > { %2996 = vmatprep.mubr.bf16.mxu0 %v7231_v1 }
 0xbac   : > { %2997 = vmatmul.mubr.bf16.gmra.mrb[220].mxu0 %v7235_v4 }
 0xbad   : > { %3004 = vmatprep.mubr.bf16.mxu0 %v7239_v61 }
 0xbb4   : > { %3005 = vmatmul.mubr.bf16.gmra.mrb[224].mxu0 %v7243_v15 }
 0xbb5   : > { %3012 = vmatprep.mubr.bf16.mxu0 %v7247_v59 }
 0xbbc   : > { %3013 = vmatmul.mubr.bf16.gmra.mrb[228].mxu0 %v7251_v3 }
 0xbbd   : > { %3020 = vmatprep.mubr.bf16.mxu0 %v7255_v5 }
 0xbc4   : > { %3021 = vmatmul.mubr.bf16.gmra.mrb[232].mxu0 %v7259_v6 }
 0xbc5   : > { %3028 = vmatprep.mubr.bf16.mxu0 %v7263_v7 }
 0xbcc   : > { %3029 = vmatmul.mubr.bf16.gmra.mrb[236].mxu0 %v7267_v8 }
 0xbcd   : > { %3036 = vmatprep.mubr.bf16.mxu0 %v7271_v9 }
 0xbd4   : > { %3037 = vmatmul.mubr.bf16.gmra.mrb[240].mxu0 %v7275_v42 }
 0xbd5   : > { %3044 = vmatprep.mubr.bf16.mxu0 %v7279_v49 }
 0xbdc   : > { %3045 = vmatmul.mubr.bf16.gmra.mrb[244].mxu0 %v7283_v10 }
 0xbdd   : > { %3052 = vmatprep.mubr.bf16.mxu0 %v7287_v51 }
 0xbe4   : > { %3053 = vmatmul.mubr.bf16.gmra.mrb[248].mxu0 %v7291_v53 }
 0xbe5   : > { %3060 = vmatprep.mubr.bf16.mxu0 %v7295_v55 }
 0xbec   : > { %3061 = vmatmul.mubr.bf16.gmra.mrb[252].mxu0 %v7299_v57 }
 0xc47   : > { %v5202_v50 = vpop.f32.mrb[192].mxu0 }
 0xc48   : > { %v5203_v43 = vpop.f32.mrb[193].mxu0 }
 0xc49   : > { %v5204_v11 = vadd.f32 %v5203_v43, %v5202_v50  ;;  %v5205_v13 = vpop.f32.mrb[194].mxu0 }
 0xc4a   : > { %v5206_v14 = vpop.f32.mrb[195].mxu0 }
 0xc4b   : > { %v2943_v16 = vadd.f32 %v5204_v11, %v7305_v24  ;;  %v5207_v17 = vadd.f32 %v5206_v14, %v5205_v13 }
 0xc4d   : > { %v2946_v21 = vadd.f32 %v5207_v17, %v7305_v24  ;;  %v3069_v22 = vmax.f32 %v2943_v16, 0.0 }
 0xc4f   : > { %v3070_v25 = vmax.f32 %v2946_v21, 0.0  ;;  %v5208_v26 = vpop.f32.mrb[196].mxu0 }
 0xc50   : > { %v5209_v27 = vpop.f32.mrb[197].mxu0 }
 0xc51   : > { %v5210_v28 = vadd.f32 %v5209_v27, %v5208_v26  ;;  %v5211_v29 = vpop.f32.mrb[198].mxu0  ;;  %v3101_v2 = vpack.c.bf16 %v3070_v25, %v3069_v22 }
 0xc52   : > { %v5212_v18 = vpop.f32.mrb[199].mxu0 }
 0xc53   : > { %v2951_v19 = vadd.f32 %v5210_v28, %v7305_v24  ;;  %v5213_v20 = vadd.f32 %v5212_v18, %v5211_v29  ;;  %5874 = vmatprep.mubr.bf16.mxu1 %v3101_v2 }
 0xc55   : > { %v2954_v23 = vadd.f32 %v5213_v20, %v7305_v24  ;;  %v3071_v31 = vmax.f32 %v2951_v19, 0.0 }
 0xc57   : > { %v3072_v30 = vmax.f32 %v2954_v23, 0.0  ;;  %v5214_v32 = vpop.f32.mrb[200].mxu0 }
 0xc58   : > { %v5215_v33 = vpop.f32.mrb[201].mxu0 }
 0xc59   : > { %v3102_v34 = vpack.c.bf16 %v3072_v30, %v3071_v31  ;;  %v5216_v36 = vadd.f32 %v5215_v33, %v5214_v32  ;;  %v5217_v37 = vpop.f32.mrb[202].mxu0 }
 0xc5a   : > { %v5218_v44 = vpop.f32.mrb[203].mxu0 }
 0xc5b   : > { %v2959_v12 = vadd.f32 %v5216_v36, %v7305_v24  ;;  %v5219_v38 = vadd.f32 %v5218_v44, %v5217_v37  ;;  %5875 = vmatmul.mubr.bf16.vlgmr.msra.gmra.mrb[0].mxu1 %v3102_v34 }
 0xc5d   : > { %v2962_v39 = vadd.f32 %v5219_v38, %v7305_v24  ;;  %v3073_v52 = vmax.f32 %v2959_v12, 0.0 }
 0xc5f   : > { %v3074_v50 = vmax.f32 %v2962_v39, 0.0  ;;  %v5220_v43 = vpop.f32.mrb[204].mxu0 }
 0xc60   : > { %v5221_v11 = vpop.f32.mrb[205].mxu0 }
 0xc61   : > { %v5222_v13 = vadd.f32 %v5221_v11, %v5220_v43  ;;  %v5223_v14 = vpop.f32.mrb[206].mxu0  ;;  %v3103_v16 = vpack.c.bf16 %v3074_v50, %v3073_v52 }
 0xc62   : > { %v5224_v17 = vpop.f32.mrb[207].mxu0 }
 0xc63   : > { %v2967_v21 = vadd.f32 %v5222_v13, %v7305_v24  ;;  %v5225_v22 = vadd.f32 %v5224_v17, %v5223_v14  ;;  %5878 = vmatprep.mubr.bf16.mxu1 %v3103_v16 }
 0xc65   : > { %v2970_v25 = vadd.f32 %v5225_v22, %v7305_v24  ;;  %v3075_v26 = vmax.f32 %v2967_v21, 0.0 }
 0xc67   : > { %v3076_v27 = vmax.f32 %v2970_v25, 0.0  ;;  %v5226_v28 = vpop.f32.mrb[208].mxu0 }
 0xc68   : > { %v5227_v29 = vpop.f32.mrb[209].mxu0 }
 0xc69   : > { %v3104_v2 = vpack.c.bf16 %v3076_v27, %v3075_v26  ;;  %v5228_v18 = vadd.f32 %v5227_v29, %v5226_v28  ;;  %v5229_v19 = vpop.f32.mrb[210].mxu0 }
 0xc6a   : > { %v5230_v20 = vpop.f32.mrb[211].mxu0 }
 0xc6b   : > { %v2975_v23 = vadd.f32 %v5228_v18, %v7305_v24  ;;  %v5231_v31 = vadd.f32 %v5230_v20, %v5229_v19  ;;  %5879 = vmatmul.mubr.bf16.gmra.mrb[4].mxu1 %v3104_v2 }
 0xc6d   : > { %v2978_v30 = vadd.f32 %v5231_v31, %v7305_v24  ;;  %v3077_v32 = vmax.f32 %v2975_v23, 0.0 }
 0xc6f   : > { %v3078_v33 = vmax.f32 %v2978_v30, 0.0  ;;  %v5232_v34 = vpop.f32.mrb[212].mxu0 }
 0xc70   : > { %v5233_v36 = vpop.f32.mrb[213].mxu0 }
 0xc71   : > { %v5234_v37 = vadd.f32 %v5233_v36, %v5232_v34  ;;  %v5235_v44 = vpop.f32.mrb[214].mxu0  ;;  %v3105_v12 = vpack.c.bf16 %v3078_v33, %v3077_v32 }
 0xc72   : > { %v5236_v38 = vpop.f32.mrb[215].mxu0 }
 0xc73   : > { %v2983_v39 = vadd.f32 %v5234_v37, %v7305_v24  ;;  %v5237_v52 = vadd.f32 %v5236_v38, %v5235_v44  ;;  %5882 = vmatprep.mubr.bf16.mxu1 %v3105_v12 }
 0xc75   : > { %v2986_v50 = vadd.f32 %v5237_v52, %v7305_v24  ;;  %v3079_v43 = vmax.f32 %v2983_v39, 0.0 }
 0xc77   : > { %v3080_v11 = vmax.f32 %v2986_v50, 0.0  ;;  %v5238_v13 = vpop.f32.mrb[216].mxu0 }
 0xc78   : > { %v5239_v14 = vpop.f32.mrb[217].mxu0 }
 0xc79   : > { %v3106_v16 = vpack.c.bf16 %v3080_v11, %v3079_v43  ;;  %v5240_v17 = vadd.f32 %v5239_v14, %v5238_v13  ;;  %v5241_v21 = vpop.f32.mrb[218].mxu0 }
 0xc7a   : > { %v5242_v22 = vpop.f32.mrb[219].mxu0 }
 0xc7b   : > { %v2991_v25 = vadd.f32 %v5240_v17, %v7305_v24  ;;  %v5243_v26 = vadd.f32 %v5242_v22, %v5241_v21  ;;  %5883 = vmatmul.mubr.bf16.gmra.mrb[8].mxu1 %v3106_v16 }
 0xc7d   : > { %v2994_v27 = vadd.f32 %v5243_v26, %v7305_v24  ;;  %v3081_v28 = vmax.f32 %v2991_v25, 0.0 }
 0xc7f   : > { %v3082_v29 = vmax.f32 %v2994_v27, 0.0  ;;  %v5244_v2 = vpop.f32.mrb[220].mxu0 }
 0xc80   : > { %v5245_v18 = vpop.f32.mrb[221].mxu0 }
 0xc81   : > { %v5246_v19 = vadd.f32 %v5245_v18, %v5244_v2  ;;  %v5247_v20 = vpop.f32.mrb[222].mxu0  ;;  %v3107_v23 = vpack.c.bf16 %v3082_v29, %v3081_v28 }
 0xc82   : > { %v5248_v31 = vpop.f32.mrb[223].mxu0 }
 0xc83   : > { %v2999_v30 = vadd.f32 %v5246_v19, %v7305_v24  ;;  %v5249_v32 = vadd.f32 %v5248_v31, %v5247_v20  ;;  %5886 = vmatprep.mubr.bf16.mxu1 %v3107_v23 }
 0xc85   : > { %v3002_v33 = vadd.f32 %v5249_v32, %v7305_v24  ;;  %v3083_v34 = vmax.f32 %v2999_v30, 0.0 }
 0xc87   : > { %v3084_v36 = vmax.f32 %v3002_v33, 0.0  ;;  %v5250_v37 = vpop.f32.mrb[224].mxu0 }
 0xc88   : > { %v5251_v44 = vpop.f32.mrb[225].mxu0 }
 0xc89   : > { %v3108_v12 = vpack.c.bf16 %v3084_v36, %v3083_v34  ;;  %v5252_v38 = vadd.f32 %v5251_v44, %v5250_v37  ;;  %v5253_v39 = vpop.f32.mrb[226].mxu0 }
 0xc8a   : > { %v5254_v52 = vpop.f32.mrb[227].mxu0 }
 0xc8b   : > { %v3007_v50 = vadd.f32 %v5252_v38, %v7305_v24  ;;  %v5255_v43 = vadd.f32 %v5254_v52, %v5253_v39  ;;  %5887 = vmatmul.mubr.bf16.gmra.mrb[12].mxu1 %v3108_v12 }
 0xc8d   : > { %v3010_v11 = vadd.f32 %v5255_v43, %v7305_v24  ;;  %v3085_v13 = vmax.f32 %v3007_v50, 0.0 }
 0xc8f   : > { %v3086_v14 = vmax.f32 %v3010_v11, 0.0  ;;  %v5256_v16 = vpop.f32.mrb[228].mxu0 }
 0xc90   : > { %v5257_v17 = vpop.f32.mrb[229].mxu0 }
 0xc91   : > { %v5258_v21 = vadd.f32 %v5257_v17, %v5256_v16  ;;  %v5259_v22 = vpop.f32.mrb[230].mxu0  ;;  %v3109_v25 = vpack.c.bf16 %v3086_v14, %v3085_v13 }
 0xc92   : > { %v5260_v26 = vpop.f32.mrb[231].mxu0 }
 0xc93   : > { %v3015_v27 = vadd.f32 %v5258_v21, %v7305_v24  ;;  %v5261_v28 = vadd.f32 %v5260_v26, %v5259_v22  ;;  %5890 = vmatprep.mubr.bf16.mxu1 %v3109_v25 }
 0xc95   : > { %v3018_v29 = vadd.f32 %v5261_v28, %v7305_v24  ;;  %v3087_v2 = vmax.f32 %v3015_v27, 0.0 }
 0xc97   : > { %v3088_v18 = vmax.f32 %v3018_v29, 0.0  ;;  %v5262_v19 = vpop.f32.mrb[232].mxu0 }
 0xc98   : > { %v5263_v20 = vpop.f32.mrb[233].mxu0 }
 0xc99   : > { %v3110_v23 = vpack.c.bf16 %v3088_v18, %v3087_v2  ;;  %v5264_v31 = vadd.f32 %v5263_v20, %v5262_v19  ;;  %v5265_v30 = vpop.f32.mrb[234].mxu0 }
 0xc9a   : > { %v5266_v32 = vpop.f32.mrb[235].mxu0 }
 0xc9b   : > { %5891 = vmatmul.mubr.bf16.gmra.mrb[16].mxu1 %v3110_v23  ;;  %v3023_v33 = vadd.f32 %v5264_v31, %v7305_v24  ;;  %v5267_v34 = vadd.f32 %v5266_v32, %v5265_v30 }
 0xc9d   : > { %v3026_v36 = vadd.f32 %v5267_v34, %v7305_v24  ;;  %v3089_v37 = vmax.f32 %v3023_v33, 0.0 }
 0xc9f   : > { %v3090_v44 = vmax.f32 %v3026_v36, 0.0  ;;  %v5268_v12 = vpop.f32.mrb[236].mxu0 }
 0xca0   : > { %v5269_v38 = vpop.f32.mrb[237].mxu0 }
 0xca1   : > { %v5270_v39 = vadd.f32 %v5269_v38, %v5268_v12  ;;  %v5271_v52 = vpop.f32.mrb[238].mxu0  ;;  %v3111_v50 = vpack.c.bf16 %v3090_v44, %v3089_v37 }
 0xca2   : > { %v5272_v43 = vpop.f32.mrb[239].mxu0 }
 0xca3   : > { %v3031_v11 = vadd.f32 %v5270_v39, %v7305_v24  ;;  %v5273_v13 = vadd.f32 %v5272_v43, %v5271_v52  ;;  %5894 = vmatprep.mubr.bf16.mxu1 %v3111_v50 }
 0xca5   : > { %v3034_v14 = vadd.f32 %v5273_v13, %v7305_v24  ;;  %v3091_v16 = vmax.f32 %v3031_v11, 0.0 }
 0xca7   : > { %v3092_v17 = vmax.f32 %v3034_v14, 0.0  ;;  %v5274_v21 = vpop.f32.mrb[240].mxu0 }
 0xca8   : > { %v5275_v22 = vpop.f32.mrb[241].mxu0 }
 0xca9   : > { %v3112_v25 = vpack.c.bf16 %v3092_v17, %v3091_v16  ;;  %v5276_v26 = vadd.f32 %v5275_v22, %v5274_v21  ;;  %v5277_v27 = vpop.f32.mrb[242].mxu0 }
 0xcaa   : > { %v5278_v28 = vpop.f32.mrb[243].mxu0 }
 0xcab   : > { %5895 = vmatmul.mubr.bf16.gmra.mrb[20].mxu1 %v3112_v25  ;;  %v3039_v29 = vadd.f32 %v5276_v26, %v7305_v24  ;;  %v5279_v2 = vadd.f32 %v5278_v28, %v5277_v27 }
 0xcad   : > { %v3042_v18 = vadd.f32 %v5279_v2, %v7305_v24  ;;  %v3093_v19 = vmax.f32 %v3039_v29, 0.0 }
 0xcaf   : > { %v3094_v20 = vmax.f32 %v3042_v18, 0.0  ;;  %v5280_v23 = vpop.f32.mrb[244].mxu0 }
 0xcb0   : > { %v5281_v31 = vpop.f32.mrb[245].mxu0 }
 0xcb1   : > { %v5282_v30 = vadd.f32 %v5281_v31, %v5280_v23  ;;  %v5283_v32 = vpop.f32.mrb[246].mxu0  ;;  %v3113_v33 = vpack.c.bf16 %v3094_v20, %v3093_v19 }
 0xcb2   : > { %v5284_v34 = vpop.f32.mrb[247].mxu0 }
 0xcb3   : > { %v3047_v36 = vadd.f32 %v5282_v30, %v7305_v24  ;;  %v5285_v37 = vadd.f32 %v5284_v34, %v5283_v32  ;;  %5898 = vmatprep.mubr.bf16.mxu1 %v3113_v33 }
 0xcb5   : > { %v3050_v44 = vadd.f32 %v5285_v37, %v7305_v24  ;;  %v3095_v12 = vmax.f32 %v3047_v36, 0.0 }
 0xcb7   : > { %v3096_v38 = vmax.f32 %v3050_v44, 0.0  ;;  %v5286_v39 = vpop.f32.mrb[248].mxu0 }
 0xcb8   : > { %v5287_v52 = vpop.f32.mrb[249].mxu0 }
 0xcb9   : > { %v3114_v50 = vpack.c.bf16 %v3096_v38, %v3095_v12  ;;  %v5288_v43 = vadd.f32 %v5287_v52, %v5286_v39  ;;  %v5289_v11 = vpop.f32.mrb[250].mxu0 }
 0xcba   : > { %v5290_v13 = vpop.f32.mrb[251].mxu0 }
 0xcbb   : > { %5899 = vmatmul.mubr.bf16.gmra.mrb[24].mxu1 %v3114_v50  ;;  %v3055_v14 = vadd.f32 %v5288_v43, %v7305_v24  ;;  %v5291_v16 = vadd.f32 %v5290_v13, %v5289_v11 }
 0xcbd   : > { %v3058_v17 = vadd.f32 %v5291_v16, %v7305_v24  ;;  %v3097_v21 = vmax.f32 %v3055_v14, 0.0 }
 0xcbf   : > { %v3098_v22 = vmax.f32 %v3058_v17, 0.0  ;;  %v5292_v25 = vpop.f32.mrb[252].mxu0 }
 0xcc0   : > { %v5293_v26 = vpop.f32.mrb[253].mxu0 }
 0xcc1   : > { %v5294_v27 = vadd.f32 %v5293_v26, %v5292_v25  ;;  %v5295_v28 = vpop.f32.mrb[254].mxu0  ;;  %v3115_v29 = vpack.c.bf16 %v3098_v22, %v3097_v21 }
 0xcc2   : > { %v5296_v2 = vpop.f32.mrb[255].mxu0 }
 0xcc3   : > { %v3063_v18 = vadd.f32 %v5294_v27, %v7305_v24  ;;  %v5297_v19 = vadd.f32 %v5296_v2, %v5295_v28  ;;  %5902 = vmatprep.mubr.bf16.mxu1 %v3115_v29 }
 0xcc5   : > { %v3066_v20 = vadd.f32 %v5297_v19, %v7305_v24  ;;  %v3099_v23 = vmax.f32 %v3063_v18, 0.0 }
 0xcc7   : > { %v3100_v31 = vmax.f32 %v3066_v20, 0.0 }
 0xcc9   : > { %v3116_v30 = vpack.c.bf16 %v3100_v31, %v3099_v23 }
 0xccb   : > { %5903 = vmatmul.mubr.bf16.gmra.mrb[28].mxu1 %v3116_v30 }
 0xccc   : > { %3396 = vmatprep.mubr.bf16.mxu1 %v7175_v48 }
 0xd2e   : > { %v5876_v32 = vpop.f32.mrb[0].mxu1 }
 0xd2f   : > { %v3216_v33 = vpop.f32.mrb[1].mxu1 }
 0xd30   : > { %v5877_v34 = vpop.f32.mrb[2].mxu1 }
 0xd31   : > { %v3344_v36 = vpack.c.bf16 %v5877_v34, %v5876_v32  ;;  %v3219_v37 = vpop.f32.mrb[3].mxu1 }
 0xd32   : > { %v3343_v44 = vpack.c.bf16 %v3219_v37, %v3216_v33 }
 0xd3e   : > { %v5880_v12 = vpop.f32.mrb[4].mxu1 }
 0xd3f   : > { %v3232_v38 = vpop.f32.mrb[5].mxu1 }
 0xd40   : > { %v5881_v39 = vpop.f32.mrb[6].mxu1 }
 0xd41   : > { %v3346_v52 = vpack.c.bf16 %v5881_v39, %v5880_v12  ;;  %v3235_v50 = vpop.f32.mrb[7].mxu1 }
 0xd42   : > { %v3345_v43 = vpack.c.bf16 %v3235_v50, %v3232_v38 }
 0xd4e   : > { %v5884_v11 = vpop.f32.mrb[8].mxu1 }
 0xd4f   : > { %v3248_v24 = vpop.f32.mrb[9].mxu1 }
 0xd50   : > { %v5885_v13 = vpop.f32.mrb[10].mxu1 }
 0xd51   : > { %v3348_v14 = vpack.c.bf16 %v5885_v13, %v5884_v11  ;;  %v3251_v16 = vpop.f32.mrb[11].mxu1 }
 0xd52   : > { %v3347_v17 = vpack.c.bf16 %v3251_v16, %v3248_v24 }
 0xd5e   : > { %v5888_v21 = vpop.f32.mrb[12].mxu1 }
 0xd5f   : > { %v3264_v48 = vpop.f32.mrb[13].mxu1 }
 0xd60   : > { %v5889_v22 = vpop.f32.mrb[14].mxu1 }
 0xd61   : > { %v3350_v25 = vpack.c.bf16 %v5889_v22, %v5888_v21  ;;  %v3267_v26 = vpop.f32.mrb[15].mxu1 }
 0xd62   : > { %v3349_v27 = vpack.c.bf16 %v3267_v26, %v3264_v48  ;;  %v6143_v48 = vld [vmem:[#allocation7 + $0x1c8] sm:$0xff]  }
 0xd6e   : > { %v5892_v28 = vpop.f32.mrb[16].mxu1 }
 0xd6f   : > { %v3280_v29 = vpop.f32.mrb[17].mxu1 }
 0xd70   : > { %v5893_v2 = vpop.f32.mrb[18].mxu1 }
 0xd71   : > { %v3352_v18 = vpack.c.bf16 %v5893_v2, %v5892_v28  ;;  %v3283_v19 = vpop.f32.mrb[19].mxu1 }
 0xd72   : > { %v3351_v20 = vpack.c.bf16 %v3283_v19, %v3280_v29 }
 0xd74   : > { %5322 = vmatprep.subr.bf16.mxu1 %v3351_v20 }
 0xd75   : > { %5323 = vmatpush3.bf16.msra.mxu1 %v3343_v44 }
 0xd76   : > { %5324 = vmatprep.subr.bf16.mxu1 %v3352_v18 }
 0xd79   : > { %5325 = vmatpush3.bf16.msra.mxu1 %v3344_v36 }
 0xd7e   : > { %v5896_v23 = vpop.f32.mrb[20].mxu1 }
 0xd7f   : > { %v3296_v31 = vpop.f32.mrb[21].mxu1 }
 0xd80   : > { %v5897_v30 = vpop.f32.mrb[22].mxu1 }
 0xd81   : > { %v3354_v32 = vpack.c.bf16 %v5897_v30, %v5896_v23  ;;  %v3299_v33 = vpop.f32.mrb[23].mxu1 }
 0xd82   : > { %v3353_v34 = vpack.c.bf16 %v3299_v33, %v3296_v31 }
 0xd84   : > { %5326 = vmatprep.subr.bf16.mxu1 %v3353_v34 }
 0xd85   : > { %5327 = vmatpush3.bf16.msra.mxu1 %v3345_v43  ;;  %v6142_v43 = vld [vmem:[#allocation7 + $0x1c0] sm:$0xff]  }
 0xd86   : > { %5328 = vmatprep.subr.bf16.mxu1 %v3354_v32  ;;  %5906 = vmatprep.subr.bf16.mxu0 %v6142_v43 }
 0xd87   : > { %5907 = vmatpush3.bf16.msra.mxu0 %v6142_v43 }
 0xd88   : > { %5908 = vmatprep.subr.bf16.mxu0 %v6143_v48 }
 0xd89   : > { %5329 = vmatpush3.bf16.msra.mxu1 %v3346_v52  ;;  %v6144_v52 = vld [vmem:[#allocation7 + $0x1d0] sm:$0xff]  }
 0xd8b   : > { %5909 = vmatpush3.bf16.msra.mxu0 %v6143_v48 }
 0xd8c   : > { %5910 = vmatprep.subr.bf16.mxu0 %v6144_v52 }
 0xd8e   : > { %v5900_v37 = vpop.f32.mrb[24].mxu1 }
 0xd8f   : > { %v3312_v12 = vpop.f32.mrb[25].mxu1  ;;  %5911 = vmatpush3.bf16.msra.mxu0 %v6144_v52 }
 0xd90   : > { %v5901_v38 = vpop.f32.mrb[26].mxu1 }
 0xd91   : > { %v3356_v39 = vpack.c.bf16 %v5901_v38, %v5900_v37  ;;  %v3315_v50 = vpop.f32.mrb[27].mxu1 }
 0xd92   : > { %v3355_v11 = vpack.c.bf16 %v3315_v50, %v3312_v12 }
 0xd94   : > { %5330 = vmatprep.subr.bf16.mxu1 %v3355_v11 }
 0xd95   : > { %5331 = vmatpush3.bf16.msra.mxu1 %v3347_v17 }
 0xd96   : > { %5332 = vmatprep.subr.bf16.mxu1 %v3356_v39 }
 0xd99   : > { %5333 = vmatpush3.bf16.msra.mxu1 %v3348_v14  ;;  %v6145_v14 = vld [vmem:[#allocation7 + $0x1d8] sm:$0xff]  }
 0xd9a   : > { %5912 = vmatprep.subr.bf16.mxu0 %v6145_v14 }
 0xd9b   : > { %5913 = vmatpush3.bf16.msra.mxu0 %v6145_v14 }
 0xd9e   : > { %v5904_v36 = vpop.f32.mrb[28].mxu1 }
 0xd9f   : > { %v3328_v44 = vpop.f32.mrb[29].mxu1 }
 0xda0   : > { %v5905_v24 = vpop.f32.mrb[30].mxu1 }
 0xda1   : > { %v3358_v13 = vpack.c.bf16 %v5905_v24, %v5904_v36  ;;  %v3331_v16 = vpop.f32.mrb[31].mxu1 }
 0xda2   : > { %v3357_v21 = vpack.c.bf16 %v3331_v16, %v3328_v44 }
 0xda4   : > { %5334 = vmatprep.subr.bf16.mxu1 %v3357_v21 }
 0xda5   : > { %5335 = vmatpush3.bf16.msra.mxu1 %v3349_v27 }
 0xda6   : > { %5336 = vmatprep.subr.bf16.mxu1 %v3358_v13 }
 0xda9   : > { %5337 = vmatpush3.bf16.msra.mxu1 %v3350_v25 }
 0xdac   : > { %3397 = vmatmul.mubr.bf16.vlgmr.msra.gmra.mrb[32].mxu1 %v7179_v40  ;;  %v6146_v40 = vld [vmem:[#allocation7 + $0x1e0] sm:$0xff]  }
 0xdad   : > { %3404 = vmatprep.mubr.bf16.mxu1 %v7183_v45  ;;  %5914 = vmatprep.subr.bf16.mxu0 %v6146_v40  ;;  %v6147_v45 = vld [vmem:[#allocation7 + $0x1e8] sm:$0xff]  }
 0xdae   : > { %5915 = vmatpush3.bf16.msra.mxu0 %v6146_v40 }
 0xdaf   : > { %5916 = vmatprep.subr.bf16.mxu0 %v6147_v45 }
 0xdb2   : > { %5917 = vmatpush3.bf16.msra.mxu0 %v6147_v45 }
 0xdb4   : > { %3405 = vmatmul.mubr.bf16.gmra.mrb[36].mxu1 %v7187_v46  ;;  %v6148_v46 = vld [vmem:[#allocation7 + $0x1f0] sm:$0xff]  }
 0xdb5   : > { %3412 = vmatprep.mubr.bf16.mxu1 %v7191_v35  ;;  %5918 = vmatprep.subr.bf16.mxu0 %v6148_v46  ;;  %v6149_v35 = vld [vmem:[#allocation7 + $0x1f8] sm:$0xff]  }
 0xdb6   : > { %5919 = vmatpush3.bf16.msra.mxu0 %v6148_v46 }
 0xdb7   : > { %5920 = vmatprep.subr.bf16.mxu0 %v6149_v35 }
 0xdba   : > { %5921 = vmatpush3.bf16.msra.mxu0 %v6149_v35 }
 0xdbc   : > { %3413 = vmatmul.mubr.bf16.gmra.mrb[40].mxu1 %v7195_v41 }
 0xdbd   : > { %3420 = vmatprep.mubr.bf16.mxu1 %v7199_v54  ;;  %v7374_v54 = vld [vmem:[%s7551_s3 + $0x6] ss:$0 sm:$0xff] }
 0xdc4   : > { %3421 = vmatmul.mubr.bf16.gmra.mrb[44].mxu1 %v7203_v56 }
 0xdc5   : > { %3428 = vmatprep.mubr.bf16.mxu1 %v7207_v58 }
 0xdcc   : > { %3429 = vmatmul.mubr.bf16.gmra.mrb[48].mxu1 %v7211_v60 }
 0xdcd   : > { %3436 = vmatprep.mubr.bf16.mxu1 %v7215_v62 }
 0xdd4   : > { %3437 = vmatmul.mubr.bf16.gmra.mrb[52].mxu1 %v7219_v47 }
 0xdd5   : > { %3444 = vmatprep.mubr.bf16.mxu1 %v7223_v63 }
 0xddc   : > { %3445 = vmatmul.mubr.bf16.gmra.mrb[56].mxu1 %v7227_v0 }
 0xddd   : > { %3452 = vmatprep.mubr.bf16.mxu1 %v7231_v1 }
 0xde4   : > { %3453 = vmatmul.mubr.bf16.gmra.mrb[60].mxu1 %v7235_v4 }
 0xde5   : > { %3460 = vmatprep.mubr.bf16.mxu1 %v7239_v61 }
 0xdec   : > { %3461 = vmatmul.mubr.bf16.gmra.mrb[64].mxu1 %v7243_v15 }
 0xded   : > { %3468 = vmatprep.mubr.bf16.mxu1 %v7247_v59 }
 0xdf4   : > { %3469 = vmatmul.mubr.bf16.gmra.mrb[68].mxu1 %v7251_v3 }
 0xdf5   : > { %3476 = vmatprep.mubr.bf16.mxu1 %v7255_v5 }
 0xdfc   : > { %3477 = vmatmul.mubr.bf16.gmra.mrb[72].mxu1 %v7259_v6 }
 0xdfd   : > { %3484 = vmatprep.mubr.bf16.mxu1 %v7263_v7 }
 0xe04   : > { %3485 = vmatmul.mubr.bf16.gmra.mrb[76].mxu1 %v7267_v8 }
 0xe05   : > { %3492 = vmatprep.mubr.bf16.mxu1 %v7271_v9 }
 0xe0c   : > { %3493 = vmatmul.mubr.bf16.gmra.mrb[80].mxu1 %v7275_v42 }
 0xe0d   : > { %3500 = vmatprep.mubr.bf16.mxu1 %v7279_v49 }
 0xe14   : > { %3501 = vmatmul.mubr.bf16.gmra.mrb[84].mxu1 %v7283_v10 }
 0xe15   : > { %3508 = vmatprep.mubr.bf16.mxu1 %v7287_v51 }
 0xe1c   : > { %3509 = vmatmul.mubr.bf16.gmra.mrb[88].mxu1 %v7291_v53 }
 0xe1d   : > { %3516 = vmatprep.mubr.bf16.mxu1 %v7295_v55 }
 0xe24   : > { %3517 = vmatmul.mubr.bf16.gmra.mrb[92].mxu1 %v7299_v57 }
 0xe7f   : > { %v5338_v41 = vpop.f32.mrb[32].mxu1 }
 0xe80   : > { %v5339_v56 = vpop.f32.mrb[33].mxu1 }
 0xe81   : > { %v5340_v58 = vadd.f32 %v5339_v56, %v5338_v41  ;;  %v5341_v60 = vpop.f32.mrb[34].mxu1 }
 0xe82   : > { %v5342_v62 = vpop.f32.mrb[35].mxu1 }
 0xe83   : > { %v3399_v47 = vadd.f32 %v5340_v58, %v7374_v54  ;;  %v5343_v63 = vadd.f32 %v5342_v62, %v5341_v60 }
 0xe85   : > { %v3402_v0 = vadd.f32 %v5343_v63, %v7374_v54  ;;  %v3525_v1 = vmax.f32 %v3399_v47, 0.0 }
 0xe87   : > { %v3526_v4 = vmax.f32 %v3402_v0, 0.0  ;;  %v5344_v61 = vpop.f32.mrb[36].mxu1 }
 0xe88   : > { %v5345_v15 = vpop.f32.mrb[37].mxu1 }
 0xe89   : > { %v5346_v59 = vadd.f32 %v5345_v15, %v5344_v61  ;;  %v5347_v3 = vpop.f32.mrb[38].mxu1  ;;  %v3557_v5 = vpack.c.bf16 %v3526_v4, %v3525_v1 }
 0xe8a   : > { %v5348_v6 = vpop.f32.mrb[39].mxu1 }
 0xe8b   : > { %v3407_v7 = vadd.f32 %v5346_v59, %v7374_v54  ;;  %v5349_v8 = vadd.f32 %v5348_v6, %v5347_v3  ;;  %5922 = vmatprep.mubr.bf16.mxu0 %v3557_v5 }
 0xe8d   : > { %v3410_v9 = vadd.f32 %v5349_v8, %v7374_v54  ;;  %v3527_v42 = vmax.f32 %v3407_v7, 0.0 }
 0xe8f   : > { %v3528_v49 = vmax.f32 %v3410_v9, 0.0  ;;  %v5350_v10 = vpop.f32.mrb[40].mxu1 }
 0xe90   : > { %v5351_v51 = vpop.f32.mrb[41].mxu1 }
 0xe91   : > { %v3558_v53 = vpack.c.bf16 %v3528_v49, %v3527_v42  ;;  %v5352_v55 = vadd.f32 %v5351_v51, %v5350_v10  ;;  %v5353_v57 = vpop.f32.mrb[42].mxu1 }
 0xe92   : > { %v5354_v17 = vpop.f32.mrb[43].mxu1 }
 0xe93   : > { %v3415_v22 = vadd.f32 %v5352_v55, %v7374_v54  ;;  %v5355_v25 = vadd.f32 %v5354_v17, %v5353_v57  ;;  %5923 = vmatmul.mubr.bf16.vlgmr.msra.gmra.mrb[0].mxu0 %v3558_v53 }
 0xe95   : > { %v3418_v26 = vadd.f32 %v5355_v25, %v7374_v54  ;;  %v3529_v27 = vmax.f32 %v3415_v22, 0.0 }
 0xe97   : > { %v3530_v28 = vmax.f32 %v3418_v26, 0.0  ;;  %v5356_v29 = vpop.f32.mrb[44].mxu1 }
 0xe98   : > { %v5357_v2 = vpop.f32.mrb[45].mxu1 }
 0xe99   : > { %v5358_v18 = vadd.f32 %v5357_v2, %v5356_v29  ;;  %v5359_v19 = vpop.f32.mrb[46].mxu1  ;;  %v3559_v20 = vpack.c.bf16 %v3530_v28, %v3529_v27 }
 0xe9a   : > { %v5360_v23 = vpop.f32.mrb[47].mxu1 }
 0xe9b   : > { %v3423_v31 = vadd.f32 %v5358_v18, %v7374_v54  ;;  %v5361_v30 = vadd.f32 %v5360_v23, %v5359_v19  ;;  %5926 = vmatprep.mubr.bf16.mxu0 %v3559_v20 }
 0xe9d   : > { %v3426_v32 = vadd.f32 %v5361_v30, %v7374_v54  ;;  %v3531_v33 = vmax.f32 %v3423_v31, 0.0 }
 0xe9f   : > { %v3532_v34 = vmax.f32 %v3426_v32, 0.0  ;;  %v5362_v37 = vpop.f32.mrb[48].mxu1 }
 0xea0   : > { %v5363_v12 = vpop.f32.mrb[49].mxu1 }
 0xea1   : > { %v3560_v38 = vpack.c.bf16 %v3532_v34, %v3531_v33  ;;  %v5364_v39 = vadd.f32 %v5363_v12, %v5362_v37  ;;  %v5365_v50 = vpop.f32.mrb[50].mxu1 }
 0xea2   : > { %v5366_v11 = vpop.f32.mrb[51].mxu1 }
 0xea3   : > { %v3431_v36 = vadd.f32 %v5364_v39, %v7374_v54  ;;  %v5367_v44 = vadd.f32 %v5366_v11, %v5365_v50  ;;  %5927 = vmatmul.mubr.bf16.gmra.mrb[4].mxu0 %v3560_v38 }
 0xea5   : > { %v3434_v24 = vadd.f32 %v5367_v44, %v7374_v54  ;;  %v3533_v13 = vmax.f32 %v3431_v36, 0.0 }
 0xea7   : > { %v3534_v16 = vmax.f32 %v3434_v24, 0.0  ;;  %v5368_v21 = vpop.f32.mrb[52].mxu1 }
 0xea8   : > { %v5369_v43 = vpop.f32.mrb[53].mxu1 }
 0xea9   : > { %v5370_v48 = vadd.f32 %v5369_v43, %v5368_v21  ;;  %v5371_v52 = vpop.f32.mrb[54].mxu1  ;;  %v3561_v14 = vpack.c.bf16 %v3534_v16, %v3533_v13 }
 0xeaa   : > { %v5372_v40 = vpop.f32.mrb[55].mxu1 }
 0xeab   : > { %v3439_v45 = vadd.f32 %v5370_v48, %v7374_v54  ;;  %v5373_v46 = vadd.f32 %v5372_v40, %v5371_v52  ;;  %5930 = vmatprep.mubr.bf16.mxu0 %v3561_v14 }
 0xead   : > { %v3442_v35 = vadd.f32 %v5373_v46, %v7374_v54  ;;  %v3535_v41 = vmax.f32 %v3439_v45, 0.0 }
 0xeaf   : > { %v3536_v56 = vmax.f32 %v3442_v35, 0.0  ;;  %v5374_v58 = vpop.f32.mrb[56].mxu1 }
 0xeb0   : > { %v5375_v60 = vpop.f32.mrb[57].mxu1 }
 0xeb1   : > { %v3562_v62 = vpack.c.bf16 %v3536_v56, %v3535_v41  ;;  %v5376_v47 = vadd.f32 %v5375_v60, %v5374_v58  ;;  %v5377_v63 = vpop.f32.mrb[58].mxu1 }
 0xeb2   : > { %v5378_v0 = vpop.f32.mrb[59].mxu1 }
 0xeb3   : > { %v3447_v1 = vadd.f32 %v5376_v47, %v7374_v54  ;;  %v5379_v4 = vadd.f32 %v5378_v0, %v5377_v63  ;;  %5931 = vmatmul.mubr.bf16.gmra.mrb[8].mxu0 %v3562_v62 }
 0xeb5   : > { %v3450_v61 = vadd.f32 %v5379_v4, %v7374_v54  ;;  %v3537_v15 = vmax.f32 %v3447_v1, 0.0 }
 0xeb7   : > { %v3538_v59 = vmax.f32 %v3450_v61, 0.0  ;;  %v5380_v3 = vpop.f32.mrb[60].mxu1 }
 0xeb8   : > { %v5381_v5 = vpop.f32.mrb[61].mxu1 }
 0xeb9   : > { %v5382_v6 = vadd.f32 %v5381_v5, %v5380_v3  ;;  %v5383_v7 = vpop.f32.mrb[62].mxu1  ;;  %v3563_v8 = vpack.c.bf16 %v3538_v59, %v3537_v15 }
 0xeba   : > { %v5384_v9 = vpop.f32.mrb[63].mxu1 }
 0xebb   : > { %v3455_v42 = vadd.f32 %v5382_v6, %v7374_v54  ;;  %v5385_v49 = vadd.f32 %v5384_v9, %v5383_v7  ;;  %5934 = vmatprep.mubr.bf16.mxu0 %v3563_v8 }
 0xebd   : > { %v3458_v10 = vadd.f32 %v5385_v49, %v7374_v54  ;;  %v3539_v51 = vmax.f32 %v3455_v42, 0.0 }
 0xebf   : > { %v3540_v53 = vmax.f32 %v3458_v10, 0.0  ;;  %v5386_v55 = vpop.f32.mrb[64].mxu1 }
 0xec0   : > { %v5387_v57 = vpop.f32.mrb[65].mxu1 }
 0xec1   : > { %v3564_v17 = vpack.c.bf16 %v3540_v53, %v3539_v51  ;;  %v5388_v22 = vadd.f32 %v5387_v57, %v5386_v55  ;;  %v5389_v25 = vpop.f32.mrb[66].mxu1 }
 0xec2   : > { %v5390_v26 = vpop.f32.mrb[67].mxu1 }
 0xec3   : > { %v3463_v27 = vadd.f32 %v5388_v22, %v7374_v54  ;;  %v5391_v28 = vadd.f32 %v5390_v26, %v5389_v25  ;;  %5935 = vmatmul.mubr.bf16.gmra.mrb[12].mxu0 %v3564_v17 }
 0xec5   : > { %v3466_v29 = vadd.f32 %v5391_v28, %v7374_v54  ;;  %v3541_v2 = vmax.f32 %v3463_v27, 0.0 }
 0xec7   : > { %v3542_v18 = vmax.f32 %v3466_v29, 0.0  ;;  %v5392_v19 = vpop.f32.mrb[68].mxu1 }
 0xec8   : > { %v5393_v20 = vpop.f32.mrb[69].mxu1 }
 0xec9   : > { %v5394_v23 = vadd.f32 %v5393_v20, %v5392_v19  ;;  %v5395_v31 = vpop.f32.mrb[70].mxu1  ;;  %v3565_v30 = vpack.c.bf16 %v3542_v18, %v3541_v2 }
 0xeca   : > { %v5396_v32 = vpop.f32.mrb[71].mxu1 }
 0xecb   : > { %v3471_v33 = vadd.f32 %v5394_v23, %v7374_v54  ;;  %v5397_v34 = vadd.f32 %v5396_v32, %v5395_v31  ;;  %5938 = vmatprep.mubr.bf16.mxu0 %v3565_v30 }
 0xecd   : > { %v3474_v37 = vadd.f32 %v5397_v34, %v7374_v54  ;;  %v3543_v12 = vmax.f32 %v3471_v33, 0.0 }
 0xecf   : > { %v3544_v38 = vmax.f32 %v3474_v37, 0.0  ;;  %v5398_v39 = vpop.f32.mrb[72].mxu1 }
 0xed0   : > { %v5399_v50 = vpop.f32.mrb[73].mxu1 }
 0xed1   : > { %v3566_v11 = vpack.c.bf16 %v3544_v38, %v3543_v12  ;;  %v5400_v36 = vadd.f32 %v5399_v50, %v5398_v39  ;;  %v5401_v44 = vpop.f32.mrb[74].mxu1 }
 0xed2   : > { %v5402_v24 = vpop.f32.mrb[75].mxu1 }
 0xed3   : > { %5939 = vmatmul.mubr.bf16.gmra.mrb[16].mxu0 %v3566_v11  ;;  %v3479_v13 = vadd.f32 %v5400_v36, %v7374_v54  ;;  %v5403_v16 = vadd.f32 %v5402_v24, %v5401_v44  ;;  %v6214_v44 = vld [vmem:[%s6633_s29 + $0x4] ss:$8 sps:$4 sm:$0xff]  }
 0xed5   : > { %v3482_v21 = vadd.f32 %v5403_v16, %v7374_v54  ;;  %v3545_v43 = vmax.f32 %v3479_v13, 0.0 }
 0xed7   : > { %v3546_v48 = vmax.f32 %v3482_v21, 0.0  ;;  %v5404_v52 = vpop.f32.mrb[76].mxu1 }
 0xed8   : > { %v5405_v14 = vpop.f32.mrb[77].mxu1 }
 0xed9   : > { %v5406_v40 = vadd.f32 %v5405_v14, %v5404_v52  ;;  %v5407_v45 = vpop.f32.mrb[78].mxu1  ;;  %v3567_v46 = vpack.c.bf16 %v3546_v48, %v3545_v43 }
 0xeda   : > { %v5408_v35 = vpop.f32.mrb[79].mxu1 }
 0xedb   : > { %v3487_v41 = vadd.f32 %v5406_v40, %v7374_v54  ;;  %v5409_v56 = vadd.f32 %v5408_v35, %v5407_v45  ;;  %5942 = vmatprep.mubr.bf16.mxu0 %v3567_v46 }
 0xedd   : > { %v3490_v58 = vadd.f32 %v5409_v56, %v7374_v54  ;;  %v3547_v60 = vmax.f32 %v3487_v41, 0.0 }
 0xedf   : > { %v3548_v62 = vmax.f32 %v3490_v58, 0.0  ;;  %v5410_v47 = vpop.f32.mrb[80].mxu1 }
 0xee0   : > { %v5411_v63 = vpop.f32.mrb[81].mxu1 }
 0xee1   : > { %v3568_v0 = vpack.c.bf16 %v3548_v62, %v3547_v60  ;;  %v5412_v1 = vadd.f32 %v5411_v63, %v5410_v47  ;;  %v5413_v4 = vpop.f32.mrb[82].mxu1 }
 0xee2   : > { %v5414_v61 = vpop.f32.mrb[83].mxu1 }
 0xee3   : > { %5943 = vmatmul.mubr.bf16.gmra.mrb[20].mxu0 %v3568_v0  ;;  %v3495_v15 = vadd.f32 %v5412_v1, %v7374_v54  ;;  %v5415_v59 = vadd.f32 %v5414_v61, %v5413_v4 }
 0xee5   : > { %v3498_v3 = vadd.f32 %v5415_v59, %v7374_v54  ;;  %v3549_v5 = vmax.f32 %v3495_v15, 0.0 }
 0xee7   : > { %v3550_v6 = vmax.f32 %v3498_v3, 0.0  ;;  %v5416_v7 = vpop.f32.mrb[84].mxu1 }
 0xee8   : > { %v5417_v8 = vpop.f32.mrb[85].mxu1 }
 0xee9   : > { %v5418_v9 = vadd.f32 %v5417_v8, %v5416_v7  ;;  %v5419_v42 = vpop.f32.mrb[86].mxu1  ;;  %v3569_v49 = vpack.c.bf16 %v3550_v6, %v3549_v5 }
 0xeea   : > { %v5420_v10 = vpop.f32.mrb[87].mxu1 }
 0xeeb   : > { %v3503_v51 = vadd.f32 %v5418_v9, %v7374_v54  ;;  %v5421_v53 = vadd.f32 %v5420_v10, %v5419_v42  ;;  %5946 = vmatprep.mubr.bf16.mxu0 %v3569_v49 }
 0xeed   : > { %v3506_v55 = vadd.f32 %v5421_v53, %v7374_v54  ;;  %v3551_v57 = vmax.f32 %v3503_v51, 0.0 }
 0xeef   : > { %v3552_v17 = vmax.f32 %v3506_v55, 0.0  ;;  %v5422_v22 = vpop.f32.mrb[88].mxu1 }
 0xef0   : > { %v5423_v25 = vpop.f32.mrb[89].mxu1 }
 0xef1   : > { %v3570_v26 = vpack.c.bf16 %v3552_v17, %v3551_v57  ;;  %v5424_v27 = vadd.f32 %v5423_v25, %v5422_v22  ;;  %v5425_v28 = vpop.f32.mrb[90].mxu1 }
 0xef2   : > { %v5426_v29 = vpop.f32.mrb[91].mxu1 }
 0xef3   : > { %5947 = vmatmul.mubr.bf16.gmra.mrb[24].mxu0 %v3570_v26  ;;  %v3511_v2 = vadd.f32 %v5424_v27, %v7374_v54  ;;  %v5427_v18 = vadd.f32 %v5426_v29, %v5425_v28 }
 0xef5   : > { %v3514_v19 = vadd.f32 %v5427_v18, %v7374_v54  ;;  %v3553_v20 = vmax.f32 %v3511_v2, 0.0 }
 0xef7   : > { %v3554_v23 = vmax.f32 %v3514_v19, 0.0  ;;  %v5428_v31 = vpop.f32.mrb[92].mxu1  ;;  %v6215_v19 = vld [vmem:[%s6633_s29] ss:$8 sps:$4 sm:$0xff]  }
 0xef8   : > { %v5429_v30 = vpop.f32.mrb[93].mxu1 }
 0xef9   : > { %v5430_v32 = vadd.f32 %v5429_v30, %v5428_v31  ;;  %v5431_v33 = vpop.f32.mrb[94].mxu1  ;;  %v3571_v34 = vpack.c.bf16 %v3554_v23, %v3553_v20  ;;  %v6216_v20 = vld [vmem:[%s6633_s29 + $0x14] ss:$8 sps:$4 sm:$0xff]   ;;  %v6217_v23 = vld [vmem:[%s6633_s29 + $0x10] ss:$8 sps:$4 sm:$0xff]  }
 0xefa   : > { %v5432_v37 = vpop.f32.mrb[95].mxu1  ;;  %v6218_v31 = vld [vmem:[%s6633_s29 + $0x24] ss:$8 sps:$4 sm:$0xff]   ;;  %v6219_v30 = vld [vmem:[%s6633_s29 + $0x20] ss:$8 sps:$4 sm:$0xff]  }
 0xefb   : > { %v3519_v12 = vadd.f32 %v5430_v32, %v7374_v54  ;;  %v5433_v38 = vadd.f32 %v5432_v37, %v5431_v33  ;;  %5950 = vmatprep.mubr.bf16.mxu0 %v3571_v34  ;;  %v6220_v32 = vld [vmem:[%s6633_s29 + $0x34] ss:$8 sps:$4 sm:$0xff]   ;;  %v6221_v33 = vld [vmem:[%s6633_s29 + $0x30] ss:$8 sps:$4 sm:$0xff]   ;;  %v6222_v34 = vld [vmem:[%s6633_s29 + $0x44] ss:$8 sps:$4 sm:$0xff]  }
 0xefc   : > { %v6223_v37 = vld [vmem:[%s6633_s29 + $0x40] ss:$8 sps:$4 sm:$0xff]  }
 0xefd   : > { %v3522_v39 = vadd.f32 %v5433_v38, %v7374_v54  ;;  %v3555_v50 = vmax.f32 %v3519_v12, 0.0  ;;  %v6224_v12 = vld [vmem:[%s6633_s29 + $0x54] ss:$8 sps:$4 sm:$0xff]   ;;  %v6225_v38 = vld [vmem:[%s6633_s29 + $0x50] ss:$8 sps:$4 sm:$0xff]  }
 0xeff   : > { %v3556_v11 = vmax.f32 %v3522_v39, 0.0  ;;  %v6226_v39 = vld [vmem:[%s6633_s29 + $0x64] ss:$8 sps:$4 sm:$0xff]  }
 0xf01   : > { %v3572_v36 = vpack.c.bf16 %v3556_v11, %v3555_v50  ;;  %v6227_v50 = vld [vmem:[%s6633_s29 + $0x60] ss:$8 sps:$4 sm:$0xff]   ;;  %v6228_v11 = vld [vmem:[%s6633_s29 + $0x74] ss:$8 sps:$4 sm:$0xff]  }
 0xf03   : > { %5951 = vmatmul.mubr.bf16.gmra.mrb[28].mxu0 %v3572_v36  ;;  %v6229_v36 = vld [vmem:[%s6633_s29 + $0x70] ss:$8 sps:$4 sm:$0xff]  }
 0xf04   : > { %3852 = vmatprep.mubr.bf16.mxu0 %v6214_v44  ;;  %v6230_v44 = vld [vmem:[%s6633_s29 + $0x84] ss:$8 sps:$4 sm:$0xff]  }
 0xf66   : > { %v5924_v24 = vpop.f32.mrb[0].mxu0 }
 0xf67   : > { %v3672_v13 = vpop.f32.mrb[1].mxu0 }
 0xf68   : > { %v5925_v16 = vpop.f32.mrb[2].mxu0 }
 0xf69   : > { %v3800_v21 = vpack.c.bf16 %v5925_v16, %v5924_v24  ;;  %v3675_v43 = vpop.f32.mrb[3].mxu0  ;;  %v6231_v24 = vld [vmem:[%s6633_s29 + $0x80] ss:$8 sps:$4 sm:$0xff]   ;;  %v6233_v16 = vld [vmem:[%s6633_s29 + $0x90] ss:$8 sps:$4 sm:$0xff]  }
 0xf6a   : > { %v3799_v48 = vpack.c.bf16 %v3675_v43, %v3672_v13  ;;  %v6232_v13 = vld [vmem:[%s6633_s29 + $0x94] ss:$8 sps:$4 sm:$0xff]   ;;  %v6235_v43 = vld [vmem:[%s6633_s29 + $0xa0] ss:$8 sps:$4 sm:$0xff]  }
 0xf76   : > { %v5928_v52 = vpop.f32.mrb[4].mxu0 }
 0xf77   : > { %v3688_v14 = vpop.f32.mrb[5].mxu0 }
 0xf78   : > { %v5929_v40 = vpop.f32.mrb[6].mxu0 }
 0xf79   : > { %v3802_v45 = vpack.c.bf16 %v5929_v40, %v5928_v52  ;;  %v3691_v46 = vpop.f32.mrb[7].mxu0  ;;  %v6237_v52 = vld [vmem:[%s6633_s29 + $0xb0] ss:$8 sps:$4 sm:$0xff]   ;;  %v6239_v40 = vld [vmem:[%s6633_s29 + $0xc0] ss:$8 sps:$4 sm:$0xff]  }
 0xf7a   : > { %v3801_v35 = vpack.c.bf16 %v3691_v46, %v3688_v14  ;;  %v6238_v14 = vld [vmem:[%s6633_s29 + $0xc4] ss:$8 sps:$4 sm:$0xff]   ;;  %v6241_v46 = vld [vmem:[%s6633_s29 + $0xd0] ss:$8 sps:$4 sm:$0xff]  }
 0xf86   : > { %v5932_v41 = vpop.f32.mrb[8].mxu0 }
 0xf87   : > { %v3704_v54 = vpop.f32.mrb[9].mxu0 }
 0xf88   : > { %v5933_v56 = vpop.f32.mrb[10].mxu0 }
 0xf89   : > { %v3804_v58 = vpack.c.bf16 %v5933_v56, %v5932_v41  ;;  %v3707_v60 = vpop.f32.mrb[11].mxu0  ;;  %v6243_v41 = vld [vmem:[%s6633_s29 + $0xe0] ss:$8 sps:$4 sm:$0xff]   ;;  %v6245_v56 = vld [vmem:[%s6633_s29 + $0xf0] ss:$8 sps:$4 sm:$0xff]  }
 0xf8a   : > { %v3803_v62 = vpack.c.bf16 %v3707_v60, %v3704_v54  ;;  %v6244_v54 = vld [vmem:[%s6633_s29 + $0xf4] ss:$8 sps:$4 sm:$0xff]   ;;  %v7443_v60 = vld [vmem:[%s7551_s3 + $0x7] ss:$0 sm:$0xff] }
 0xf96   : > { %v5936_v47 = vpop.f32.mrb[12].mxu0 }
 0xf97   : > { %v3720_v63 = vpop.f32.mrb[13].mxu0 }
 0xf98   : > { %v5937_v0 = vpop.f32.mrb[14].mxu0 }
 0xf99   : > { %v3806_v1 = vpack.c.bf16 %v5937_v0, %v5936_v47  ;;  %v3723_v4 = vpop.f32.mrb[15].mxu0 }
 0xf9a   : > { %v3805_v61 = vpack.c.bf16 %v3723_v4, %v3720_v63 }
 0xfa6   : > { %v5940_v15 = vpop.f32.mrb[16].mxu0 }
 0xfa7   : > { %v3736_v59 = vpop.f32.mrb[17].mxu0 }
 0xfa8   : > { %v5941_v3 = vpop.f32.mrb[18].mxu0 }
 0xfa9   : > { %v3808_v5 = vpack.c.bf16 %v5941_v3, %v5940_v15  ;;  %v3739_v6 = vpop.f32.mrb[19].mxu0 }
 0xfaa   : > { %v3807_v7 = vpack.c.bf16 %v3739_v6, %v3736_v59 }
 0xfac   : > { %5458 = vmatprep.subr.bf16.mxu0 %v3807_v7 }
 0xfad   : > { %5459 = vmatpush3.bf16.msra.mxu0 %v3799_v48  ;;  %v6236_v48 = vld [vmem:[%s6633_s29 + $0xb4] ss:$8 sps:$4 sm:$0xff]  }
 0xfae   : > { %5460 = vmatprep.subr.bf16.mxu0 %v3808_v5 }
 0xfb1   : > { %5461 = vmatpush3.bf16.msra.mxu0 %v3800_v21  ;;  %v6234_v21 = vld [vmem:[%s6633_s29 + $0xa4] ss:$8 sps:$4 sm:$0xff]  }
 0xfb6   : > { %v5944_v8 = vpop.f32.mrb[20].mxu0 }
 0xfb7   : > { %v3752_v9 = vpop.f32.mrb[21].mxu0 }
 0xfb8   : > { %v5945_v42 = vpop.f32.mrb[22].mxu0 }
 0xfb9   : > { %v3810_v49 = vpack.c.bf16 %v5945_v42, %v5944_v8  ;;  %v3755_v10 = vpop.f32.mrb[23].mxu0 }
 0xfba   : > { %v3809_v51 = vpack.c.bf16 %v3755_v10, %v3752_v9 }
 0xfbc   : > { %5462 = vmatprep.subr.bf16.mxu0 %v3809_v51 }
 0xfbd   : > { %5463 = vmatpush3.bf16.msra.mxu0 %v3801_v35  ;;  %v6242_v35 = vld [vmem:[%s6633_s29 + $0xe4] ss:$8 sps:$4 sm:$0xff]  }
 0xfbe   : > { %5464 = vmatprep.subr.bf16.mxu0 %v3810_v49 }
 0xfc1   : > { %5465 = vmatpush3.bf16.msra.mxu0 %v3802_v45  ;;  %v6240_v45 = vld [vmem:[%s6633_s29 + $0xd4] ss:$8 sps:$4 sm:$0xff]   ;;  %s7449_s29 = scalar_lea.vmem [#allocation8], %s4304_s23  ;;  %s4498_s23 = sshll.u32 %s6466_s19, 11 }
 0xfc2   : > { %s4187_s21 = sshll.u32 %s7449_s29, 4  ;;  %s7501_s8 = scalar_lea.hbm %s7552_s4, %s4498_s23  ;;  %s7503_s21 = int_to_ptr.vmem [resolvable:$true] %s4187_s21 }
 0xfc3   : > { %s6334_s11 = scalar_lea.vmem %s7503_s21, 2048  ;;  %s6417_s19 = smov [#allocation8]  }
 0xfc4   : > { %p6335_p3 = scmp.ne.s32.totalorder %s7503_s21, %s6334_s11  ;;  %s6338_s5 = sshll.u32 %s6417_s19, 4  ;;  %s6339_s5 = int_to_ptr.vmem [resolvable:$false] %s6338_s5 }
 0xfc5   : > { %s6340_s6 = scalar_lea.vmem %s6339_s5, 4096  ;;  %p6341_p1 = scmp.lt.s32.totalorder %s7503_s21, %s6339_s5 }
 0xfc6   : > { %v5948_v53 = vpop.f32.mrb[24].mxu0  ;;  %p6336_p7 = pnand %p6335_p3, %p6539_p12  ;;  %p6342_p5 = scmp.lt.s32.totalorder %s6340_s6, %s6334_s11 }
 0xfc7   : > { %v3768_v55 = vpop.f32.mrb[25].mxu0 }
 0xfc8   : > { %v5949_v57 = vpop.f32.mrb[26].mxu0  ;;  %p6337_p9 = pneg %p6336_p7  ;;  %p6343_p2 = por %p6342_p5, %p6341_p1 }
 0xfc9   : > { %v3812_v17 = vpack.c.bf16 %v5949_v57, %v5948_v53  ;;  %v3771_v22 = vpop.f32.mrb[27].mxu0 }
 0xfca   : > { %v3811_v25 = vpack.c.bf16 %v3771_v22, %v3768_v55  ;;  %p6344_p6 = pnand %p6343_p2, %p6337_p9 }
 0xfcc   : > { %5466 = vmatprep.subr.bf16.mxu0 %v3811_v25 }
 0xfcd   : > { %5467 = vmatpush3.bf16.msra.mxu0 %v3803_v62 }
 0xfce   : > { %5468 = vmatprep.subr.bf16.mxu0 %v3812_v17 }
 0xfd1   : > { %5469 = vmatpush3.bf16.msra.mxu0 %v3804_v58 }
 0xfd6   : > { %v5952_v26 = vpop.f32.mrb[28].mxu0 }
 0xfd7   : > { %v3784_v27 = vpop.f32.mrb[29].mxu0 }
 0xfd8   : > { %v5953_v28 = vpop.f32.mrb[30].mxu0 }
 0xfd9   : > { %v3814_v29 = vpack.c.bf16 %v5953_v28, %v5952_v26  ;;  %v3787_v2 = vpop.f32.mrb[31].mxu0 }
 0xfda   : > { %v3813_v18 = vpack.c.bf16 %v3787_v2, %v3784_v27 }
 0xfdc   : > { %5470 = vmatprep.subr.bf16.mxu0 %v3813_v18 }
 0xfdd   : > { %5471 = vmatpush3.bf16.msra.mxu0 %v3805_v61 }
 0xfde   : > { %5472 = vmatprep.subr.bf16.mxu0 %v3814_v29 }
 0xfe1   : > { %5473 = vmatpush3.bf16.msra.mxu0 %v3806_v1 }
 0xfe4   : > { %3853 = vmatmul.mubr.bf16.vlgmr.msra.gmra.mrb[32].mxu0 %v6215_v19 }
 0xfe5   : > { %3860 = vmatprep.mubr.bf16.mxu0 %v6216_v20 }
 0xfec   : > { %3861 = vmatmul.mubr.bf16.gmra.mrb[36].mxu0 %v6217_v23 }
 0xfed   : > { %3868 = vmatprep.mubr.bf16.mxu0 %v6218_v31 }
 0xff4   : > { %3869 = vmatmul.mubr.bf16.gmra.mrb[40].mxu0 %v6219_v30 }
 0xff5   : > { %3876 = vmatprep.mubr.bf16.mxu0 %v6220_v32 }
 0xffc   : > { %3877 = vmatmul.mubr.bf16.gmra.mrb[44].mxu0 %v6221_v33 }
 0xffd   : > { %3884 = vmatprep.mubr.bf16.mxu0 %v6222_v34 }
0x1004   : > { %3885 = vmatmul.mubr.bf16.gmra.mrb[48].mxu0 %v6223_v37 }
0x1005   : > { %3892 = vmatprep.mubr.bf16.mxu0 %v6224_v12 }
0x100c   : > { %3893 = vmatmul.mubr.bf16.gmra.mrb[52].mxu0 %v6225_v38 }
0x100d   : > { %3900 = vmatprep.mubr.bf16.mxu0 %v6226_v39 }
0x1014   : > { %3901 = vmatmul.mubr.bf16.gmra.mrb[56].mxu0 %v6227_v50 }
0x1015   : > { %3908 = vmatprep.mubr.bf16.mxu0 %v6228_v11 }
0x101c   : > { %3909 = vmatmul.mubr.bf16.gmra.mrb[60].mxu0 %v6229_v36 }
0x101d   : > { %3916 = vmatprep.mubr.bf16.mxu0 %v6230_v44 }
0x1024   : > { %3917 = vmatmul.mubr.bf16.gmra.mrb[64].mxu0 %v6231_v24 }
0x1025   : > { %3924 = vmatprep.mubr.bf16.mxu0 %v6232_v13 }
0x102c   : > { %3925 = vmatmul.mubr.bf16.gmra.mrb[68].mxu0 %v6233_v16 }
0x102d   : > { %3932 = vmatprep.mubr.bf16.mxu0 %v6234_v21 }
0x1034   : > { %3933 = vmatmul.mubr.bf16.gmra.mrb[72].mxu0 %v6235_v43 }
0x1035   : > { %3940 = vmatprep.mubr.bf16.mxu0 %v6236_v48 }
0x103c   : > { %3941 = vmatmul.mubr.bf16.gmra.mrb[76].mxu0 %v6237_v52 }
0x103d   : > { %3948 = vmatprep.mubr.bf16.mxu0 %v6238_v14 }
0x1044   : > { %3949 = vmatmul.mubr.bf16.gmra.mrb[80].mxu0 %v6239_v40 }
0x1045   : > { %3956 = vmatprep.mubr.bf16.mxu0 %v6240_v45 }
0x104c   : > { %3957 = vmatmul.mubr.bf16.gmra.mrb[84].mxu0 %v6241_v46 }
0x104d   : > { %3964 = vmatprep.mubr.bf16.mxu0 %v6242_v35 }
0x1054   : > { %3965 = vmatmul.mubr.bf16.gmra.mrb[88].mxu0 %v6243_v41 }
0x1055   : > { %3972 = vmatprep.mubr.bf16.mxu0 %v6244_v54 }
0x105c   : > { %3973 = vmatmul.mubr.bf16.gmra.mrb[92].mxu0 %v6245_v56 }
0x10b7   : > { %v5474_v58 = vpop.f32.mrb[32].mxu0 }
0x10b8   : > { %v5475_v62 = vpop.f32.mrb[33].mxu0 }
0x10b9   : > { %v5476_v47 = vadd.f32 %v5475_v62, %v5474_v58  ;;  %v5477_v63 = vpop.f32.mrb[34].mxu0 }
0x10ba   : > { %v5478_v0 = vpop.f32.mrb[35].mxu0 }
0x10bb   : > { %v3855_v1 = vadd.f32 %v5476_v47, %v7443_v60  ;;  %v5479_v4 = vadd.f32 %v5478_v0, %v5477_v63 }
0x10bd   : > { %v3858_v61 = vadd.f32 %v5479_v4, %v7443_v60  ;;  %v3981_v15 = vmax.f32 %v3855_v1, 0.0 }
0x10bf   : > { %v3982_v59 = vmax.f32 %v3858_v61, 0.0  ;;  %v5480_v3 = vpop.f32.mrb[36].mxu0 }
0x10c0   : > { %v5481_v5 = vpop.f32.mrb[37].mxu0 }
0x10c1   : > { %v4502_v6 = vpack.c.bf16 %v3982_v59, %v3981_v15  ;;  %v5482_v7 = vadd.f32 %v5481_v5, %v5480_v3  ;;  %v5483_v8 = vpop.f32.mrb[38].mxu0 }
0x10c2   : > { %v5484_v9 = vpop.f32.mrb[39].mxu0 }
0x10c3   : > { %4503 = vst [vmem:[%s7449_s29] sm:$0xff] %v4502_v6   ;;  %v3863_v42 = vadd.f32 %v5482_v7, %v7443_v60  ;;  %v5485_v49 = vadd.f32 %v5484_v9, %v5483_v8 }
0x10c5   : > { %v3866_v10 = vadd.f32 %v5485_v49, %v7443_v60  ;;  %v3983_v51 = vmax.f32 %v3863_v42, 0.0 }
0x10c7   : > { %v3984_v53 = vmax.f32 %v3866_v10, 0.0  ;;  %v5486_v55 = vpop.f32.mrb[40].mxu0 }
0x10c8   : > { %v5487_v57 = vpop.f32.mrb[41].mxu0 }
0x10c9   : > { %v4507_v17 = vpack.c.bf16 %v3984_v53, %v3983_v51  ;;  %v5488_v22 = vadd.f32 %v5487_v57, %v5486_v55  ;;  %v5489_v25 = vpop.f32.mrb[42].mxu0 }
0x10ca   : > { %v5490_v26 = vpop.f32.mrb[43].mxu0 }
0x10cb   : > { %4579 = vst [vmem:[%s7449_s29 + $0x8] sm:$0xff] %v4507_v17   ;;  %v3871_v27 = vadd.f32 %v5488_v22, %v7443_v60  ;;  %v5491_v28 = vadd.f32 %v5490_v26, %v5489_v25 }
0x10cd   : > { %v3874_v29 = vadd.f32 %v5491_v28, %v7443_v60  ;;  %v3985_v2 = vmax.f32 %v3871_v27, 0.0 }
0x10cf   : > { %v3986_v18 = vmax.f32 %v3874_v29, 0.0  ;;  %v5492_v19 = vpop.f32.mrb[44].mxu0 }
0x10d0   : > { %v5493_v20 = vpop.f32.mrb[45].mxu0 }
0x10d1   : > { %v4512_v23 = vpack.c.bf16 %v3986_v18, %v3985_v2  ;;  %v5494_v31 = vadd.f32 %v5493_v20, %v5492_v19  ;;  %v5495_v30 = vpop.f32.mrb[46].mxu0 }
0x10d2   : > { %v5496_v32 = vpop.f32.mrb[47].mxu0 }
0x10d3   : > { %4580 = vst [vmem:[%s7449_s29 + $0x10] sm:$0xff] %v4512_v23   ;;  %v3879_v33 = vadd.f32 %v5494_v31, %v7443_v60  ;;  %v5497_v34 = vadd.f32 %v5496_v32, %v5495_v30 }
0x10d5   : > { %v3882_v37 = vadd.f32 %v5497_v34, %v7443_v60  ;;  %v3987_v12 = vmax.f32 %v3879_v33, 0.0 }
0x10d7   : > { %v3988_v38 = vmax.f32 %v3882_v37, 0.0  ;;  %v5498_v39 = vpop.f32.mrb[48].mxu0 }
0x10d8   : > { %v5499_v50 = vpop.f32.mrb[49].mxu0 }
0x10d9   : > { %v4517_v11 = vpack.c.bf16 %v3988_v38, %v3987_v12  ;;  %v5500_v36 = vadd.f32 %v5499_v50, %v5498_v39  ;;  %v5501_v44 = vpop.f32.mrb[50].mxu0 }
0x10da   : > { %v5502_v24 = vpop.f32.mrb[51].mxu0 }
0x10db   : > { %4581 = vst [vmem:[%s7449_s29 + $0x18] sm:$0xff] %v4517_v11   ;;  %v3887_v13 = vadd.f32 %v5500_v36, %v7443_v60  ;;  %v5503_v16 = vadd.f32 %v5502_v24, %v5501_v44 }
0x10dd   : > { %v3890_v21 = vadd.f32 %v5503_v16, %v7443_v60  ;;  %v3989_v43 = vmax.f32 %v3887_v13, 0.0 }
0x10df   : > { %v3990_v48 = vmax.f32 %v3890_v21, 0.0  ;;  %v5504_v52 = vpop.f32.mrb[52].mxu0 }
0x10e0   : > { %v5505_v14 = vpop.f32.mrb[53].mxu0 }
0x10e1   : > { %v4522_v40 = vpack.c.bf16 %v3990_v48, %v3989_v43  ;;  %v5506_v45 = vadd.f32 %v5505_v14, %v5504_v52  ;;  %v5507_v46 = vpop.f32.mrb[54].mxu0 }
0x10e2   : > { %v5508_v35 = vpop.f32.mrb[55].mxu0 }
0x10e3   : > { %4582 = vst [vmem:[%s7449_s29 + $0x20] sm:$0xff] %v4522_v40   ;;  %v3895_v41 = vadd.f32 %v5506_v45, %v7443_v60  ;;  %v5509_v54 = vadd.f32 %v5508_v35, %v5507_v46 }
0x10e5   : > { %v3898_v56 = vadd.f32 %v5509_v54, %v7443_v60  ;;  %v3991_v58 = vmax.f32 %v3895_v41, 0.0 }
0x10e7   : > { %v3992_v62 = vmax.f32 %v3898_v56, 0.0  ;;  %v5510_v47 = vpop.f32.mrb[56].mxu0 }
0x10e8   : > { %v5511_v63 = vpop.f32.mrb[57].mxu0 }
0x10e9   : > { %v4527_v0 = vpack.c.bf16 %v3992_v62, %v3991_v58  ;;  %v5512_v1 = vadd.f32 %v5511_v63, %v5510_v47  ;;  %v5513_v4 = vpop.f32.mrb[58].mxu0 }
0x10ea   : > { %v5514_v61 = vpop.f32.mrb[59].mxu0 }
0x10eb   : > { %4583 = vst [vmem:[%s7449_s29 + $0x28] sm:$0xff] %v4527_v0   ;;  %v3903_v15 = vadd.f32 %v5512_v1, %v7443_v60  ;;  %v5515_v59 = vadd.f32 %v5514_v61, %v5513_v4 }
0x10ed   : > { %v3906_v3 = vadd.f32 %v5515_v59, %v7443_v60  ;;  %v3993_v5 = vmax.f32 %v3903_v15, 0.0 }
0x10ef   : > { %v3994_v6 = vmax.f32 %v3906_v3, 0.0  ;;  %v5516_v7 = vpop.f32.mrb[60].mxu0 }
0x10f0   : > { %v5517_v8 = vpop.f32.mrb[61].mxu0 }
0x10f1   : > { %v4532_v9 = vpack.c.bf16 %v3994_v6, %v3993_v5  ;;  %v5518_v42 = vadd.f32 %v5517_v8, %v5516_v7  ;;  %v5519_v49 = vpop.f32.mrb[62].mxu0 }
0x10f2   : > { %v5520_v10 = vpop.f32.mrb[63].mxu0 }
0x10f3   : > { %4584 = vst [vmem:[%s7449_s29 + $0x30] sm:$0xff] %v4532_v9   ;;  %v3911_v51 = vadd.f32 %v5518_v42, %v7443_v60  ;;  %v5521_v53 = vadd.f32 %v5520_v10, %v5519_v49 }
0x10f5   : > { %v3914_v55 = vadd.f32 %v5521_v53, %v7443_v60  ;;  %v3995_v57 = vmax.f32 %v3911_v51, 0.0 }
0x10f7   : > { %v3996_v17 = vmax.f32 %v3914_v55, 0.0  ;;  %v5522_v22 = vpop.f32.mrb[64].mxu0 }
0x10f8   : > { %v5523_v25 = vpop.f32.mrb[65].mxu0 }
0x10f9   : > { %v4537_v26 = vpack.c.bf16 %v3996_v17, %v3995_v57  ;;  %v5524_v27 = vadd.f32 %v5523_v25, %v5522_v22  ;;  %v5525_v28 = vpop.f32.mrb[66].mxu0 }
0x10fa   : > { %v5526_v29 = vpop.f32.mrb[67].mxu0 }
0x10fb   : > { %4585 = vst [vmem:[%s7449_s29 + $0x38] sm:$0xff] %v4537_v26   ;;  %v3919_v2 = vadd.f32 %v5524_v27, %v7443_v60  ;;  %v5527_v18 = vadd.f32 %v5526_v29, %v5525_v28 }
0x10fd   : > { %v3922_v19 = vadd.f32 %v5527_v18, %v7443_v60  ;;  %v3997_v20 = vmax.f32 %v3919_v2, 0.0 }
0x10ff   : > { %v3998_v23 = vmax.f32 %v3922_v19, 0.0  ;;  %v5528_v31 = vpop.f32.mrb[68].mxu0 }
0x1100   : > { %v5529_v30 = vpop.f32.mrb[69].mxu0 }
0x1101   : > { %v4542_v32 = vpack.c.bf16 %v3998_v23, %v3997_v20  ;;  %v5530_v33 = vadd.f32 %v5529_v30, %v5528_v31  ;;  %v5531_v34 = vpop.f32.mrb[70].mxu0 }
0x1102   : > { %v5532_v37 = vpop.f32.mrb[71].mxu0 }
0x1103   : > { %4586 = vst [vmem:[%s7449_s29 + $0x40] sm:$0xff] %v4542_v32   ;;  %v3927_v12 = vadd.f32 %v5530_v33, %v7443_v60  ;;  %v5533_v38 = vadd.f32 %v5532_v37, %v5531_v34 }
0x1105   : > { %v3930_v39 = vadd.f32 %v5533_v38, %v7443_v60  ;;  %v3999_v50 = vmax.f32 %v3927_v12, 0.0 }
0x1107   : > { %v4000_v11 = vmax.f32 %v3930_v39, 0.0  ;;  %v5534_v36 = vpop.f32.mrb[72].mxu0 }
0x1108   : > { %v5535_v44 = vpop.f32.mrb[73].mxu0 }
0x1109   : > { %v4547_v24 = vpack.c.bf16 %v4000_v11, %v3999_v50  ;;  %v5536_v13 = vadd.f32 %v5535_v44, %v5534_v36  ;;  %v5537_v16 = vpop.f32.mrb[74].mxu0 }
0x110a   : > { %v5538_v21 = vpop.f32.mrb[75].mxu0 }
0x110b   : > { %4587 = vst [vmem:[%s7449_s29 + $0x48] sm:$0xff] %v4547_v24   ;;  %v3935_v43 = vadd.f32 %v5536_v13, %v7443_v60  ;;  %v5539_v48 = vadd.f32 %v5538_v21, %v5537_v16 }
0x110d   : > { %v3938_v52 = vadd.f32 %v5539_v48, %v7443_v60  ;;  %v4001_v14 = vmax.f32 %v3935_v43, 0.0 }
0x110f   : > { %v4002_v40 = vmax.f32 %v3938_v52, 0.0  ;;  %v5540_v45 = vpop.f32.mrb[76].mxu0 }
0x1110   : > { %v5541_v46 = vpop.f32.mrb[77].mxu0 }
0x1111   : > { %v4552_v35 = vpack.c.bf16 %v4002_v40, %v4001_v14  ;;  %v5542_v41 = vadd.f32 %v5541_v46, %v5540_v45  ;;  %v5543_v54 = vpop.f32.mrb[78].mxu0 }
0x1112   : > { %v5544_v56 = vpop.f32.mrb[79].mxu0 }
0x1113   : > { %4588 = vst [vmem:[%s7449_s29 + $0x50] sm:$0xff] %v4552_v35   ;;  %v3943_v58 = vadd.f32 %v5542_v41, %v7443_v60  ;;  %v5545_v62 = vadd.f32 %v5544_v56, %v5543_v54 }
0x1115   : > { %v3946_v47 = vadd.f32 %v5545_v62, %v7443_v60  ;;  %v4003_v63 = vmax.f32 %v3943_v58, 0.0 }
0x1117   : > { %v4004_v0 = vmax.f32 %v3946_v47, 0.0  ;;  %v5546_v1 = vpop.f32.mrb[80].mxu0 }
0x1118   : > { %v5547_v4 = vpop.f32.mrb[81].mxu0 }
0x1119   : > { %v4557_v61 = vpack.c.bf16 %v4004_v0, %v4003_v63  ;;  %v5548_v15 = vadd.f32 %v5547_v4, %v5546_v1  ;;  %v5549_v59 = vpop.f32.mrb[82].mxu0 }
0x111a   : > { %v5550_v3 = vpop.f32.mrb[83].mxu0 }
0x111b   : > { %4589 = vst [vmem:[%s7449_s29 + $0x58] sm:$0xff] %v4557_v61   ;;  %v3951_v5 = vadd.f32 %v5548_v15, %v7443_v60  ;;  %v5551_v6 = vadd.f32 %v5550_v3, %v5549_v59 }
0x111d   : > { %v3954_v7 = vadd.f32 %v5551_v6, %v7443_v60  ;;  %v4005_v8 = vmax.f32 %v3951_v5, 0.0 }
0x111f   : > { %v4006_v9 = vmax.f32 %v3954_v7, 0.0  ;;  %v5552_v42 = vpop.f32.mrb[84].mxu0 }
0x1120   : > { %v5553_v49 = vpop.f32.mrb[85].mxu0 }
0x1121   : > { %v4562_v10 = vpack.c.bf16 %v4006_v9, %v4005_v8  ;;  %v5554_v51 = vadd.f32 %v5553_v49, %v5552_v42  ;;  %v5555_v53 = vpop.f32.mrb[86].mxu0 }
0x1122   : > { %v5556_v55 = vpop.f32.mrb[87].mxu0 }
0x1123   : > { %4590 = vst [vmem:[%s7449_s29 + $0x60] sm:$0xff] %v4562_v10   ;;  %v3959_v57 = vadd.f32 %v5554_v51, %v7443_v60  ;;  %v5557_v17 = vadd.f32 %v5556_v55, %v5555_v53 }
0x1125   : > { %v3962_v22 = vadd.f32 %v5557_v17, %v7443_v60  ;;  %v4007_v25 = vmax.f32 %v3959_v57, 0.0 }
0x1127   : > { %v4008_v26 = vmax.f32 %v3962_v22, 0.0  ;;  %v5558_v27 = vpop.f32.mrb[88].mxu0 }
0x1128   : > { %v5559_v28 = vpop.f32.mrb[89].mxu0 }
0x1129   : > { %v4567_v29 = vpack.c.bf16 %v4008_v26, %v4007_v25  ;;  %v5560_v2 = vadd.f32 %v5559_v28, %v5558_v27  ;;  %v5561_v18 = vpop.f32.mrb[90].mxu0 }
0x112a   : > { %v5562_v19 = vpop.f32.mrb[91].mxu0 }
0x112b   : > { %4591 = vst [vmem:[%s7449_s29 + $0x68] sm:$0xff] %v4567_v29   ;;  %v3967_v20 = vadd.f32 %v5560_v2, %v7443_v60  ;;  %v5563_v23 = vadd.f32 %v5562_v19, %v5561_v18 }
0x112d   : > { %v3970_v31 = vadd.f32 %v5563_v23, %v7443_v60  ;;  %v4009_v30 = vmax.f32 %v3967_v20, 0.0 }
0x112f   : > { %v4010_v32 = vmax.f32 %v3970_v31, 0.0  ;;  %v5564_v33 = vpop.f32.mrb[92].mxu0 }
0x1130   : > { %v5565_v34 = vpop.f32.mrb[93].mxu0 }
0x1131   : > { %v4572_v37 = vpack.c.bf16 %v4010_v32, %v4009_v30  ;;  %v5566_v12 = vadd.f32 %v5565_v34, %v5564_v33  ;;  %v5567_v38 = vpop.f32.mrb[94].mxu0 }
0x1132   : > { %v5568_v39 = vpop.f32.mrb[95].mxu0 }
0x1133   : > { %4592 = vst [vmem:[%s7449_s29 + $0x70] sm:$0xff] %v4572_v37   ;;  %v3975_v50 = vadd.f32 %v5566_v12, %v7443_v60  ;;  %v5569_v11 = vadd.f32 %v5568_v39, %v5567_v38 }
0x1135   : > { %v3978_v36 = vadd.f32 %v5569_v11, %v7443_v60  ;;  %v4011_v44 = vmax.f32 %v3975_v50, 0.0 }
0x1137   : > { %v4012_v24 = vmax.f32 %v3978_v36, 0.0 }
0x1139   : > { %v4577_v13 = vpack.c.bf16 %v4012_v24, %v4011_v44 }
0x113b   : > { %4593 = vst [vmem:[%s7449_s29 + $0x78] sm:$0xff] %v4577_v13  }
0x113c   : > { %6347 = shalt.err (!%p6344_p6)
}
0x113d   : > { %s6348_s7 = scalar_lea.hbm %s7501_s8, 2048  ;;  %s6352_s20 = scalar_lea.hbm %s7552_s4, 4096 }
0x113e   : > { %p6349_p8 = scmp.ne.s32.totalorder %s7501_s8, %s6348_s7  ;;  %p6353_p4 = scmp.lt.u32.totalorder %s7501_s8, %s7552_s4 }
0x113f   : > { %p6354_p11 = scmp.lt.u32.totalorder %s6352_s20, %s6348_s7  ;;  %p6356_p3 = scmp.lt.u32.totalorder %s6348_s7, %s7501_s8 }
0x1140   : > { %p6350_p10 = pnand %p6349_p8, %p6539_p12 }
0x1141   : > { %p6355_p13 = por %p6354_p11, %p6353_p4 }
0x1142   : > { %p6351_p0 = pneg %p6350_p10 }
0x1143   : > { %p6357_p7 = por %p6356_p3, %p6355_p13 }
0x1145   : > { %p6358_p9 = pnand %p6357_p7, %p6351_p0 }
0x1147   : > { %6361 = shalt.err (!%p6358_p9)
}
0x1148   : > { %s6418_s13 = smov 64   ;;  %s6419_s9 = smov 4  }
0x1149   : > { %5962 = dma.vmem_to_hbm [thread:$0]  (%p6539_p12), %s7503_s21, 2048, %s7501_s8, %s4174_s10, %s6418_s13, %s6418_s13, %s6419_s9  }
0x114a PF: > { %s4202_s29 = sand.u32 1, %s6396_s15   ;;  %p7575_p1 = scmp.ne.s32.totalorder %s7561_s22, 0 }
0x114b   : > { %p7576_p5 = scmp.ge.s32.totalorder %s6408_s18, 2  ;;  %s4203_s23 = scalar_lea.sflag [#allocation4], %s4202_s29 }
0x114d   : > { %p5976_p2 = pnand %p7576_p5, %p7575_p1 }
0x114f   : > { %6391 = dma.done.wait (!%p5976_p2), %s4203_s23, 2048  }
0x1150   : > { %6393 = vsyncadd (!%p5976_p2), %s4203_s23, 4294965248  ;;  %p20_p6 = scmp.ge.s32.totalorder %s6501_s27, 4   ;;  %s7577_s15 = smov %s6400_s16 }
0x1151   : > { %s7578_s16 = smov %s6404_s17  ;;  %s7579_s17 = smov %s6535_s24 }
0x1152   : > { %s7580_s18 = smov %s6501_s27  ;;  %22 = sbr.rel (!%p20_p6) target bundleno = 10 (0xa), region = 105 }
0x1159   :  { %4208 = vsyncpa [#allocation3], 1 }
0x115a   :  { %4210 = vsyncpa [#allocation3 + $0x1], 1 }
0x115b   :  { %4211 = vsyncpa [#allocation6], 1 }
0x115c   :  { %4213 = vsyncpa [#allocation6 + $0x1], 1 }
0x115d   :  { %4214 = vsyncpa [#allocation4], 1 }
0x115e   :  { %4216 = vsyncpa [#allocation4 + $0x1], 1 }

</bundles_post_ra>
